<compile_context>
chip_gen: v5e
topology: v5e:2x2
jax: 0.10.0
libtpu: 0.0.40
codegen_flags: <defaults>
</compile_context>

<pallas_src>
import functools
import math

import jax
import jax.numpy as jnp
from jax.experimental import pallas as pl
from jax.experimental.pallas import tpu as pltpu


def _round_up(x, m):
    return (x + m - 1) // m * m


def _choose_time_chunk(T, tc_max):
    """Prefer the largest divisor of T <= tc_max (no padded/masked steps);
    fall back to tc_max with masking only if the best divisor is tiny."""
    tc_max = int(max(1, min(T, tc_max)))
    best = 1
    for d in range(1, tc_max + 1):
        if T % d == 0:
            best = d
    if best * 4 >= tc_max:
        return best, False
    return tc_max, True


def lstm_net_kernel(xg_ref, w_hh_ref, w_lin_ref, b_lin_ref, out_ref,
                    h_scr, c_scr, *, seq_len, apply_mask, unroll):
    """One (batch-tile, time-chunk) grid step of the LSTM recurrence.

    xg_ref:      (Tc, BT, 4*Hp) f32   precomputed x@W_ih^T + b (gate pre-acts)
    w_hh_ref:    (Hp, 4*Hp)           pre-transposed, per-gate padded W_hh
    w_lin_ref:   (Hp, Op)             pre-transposed, padded Linear weight
    b_lin_ref:   (1, Op) f32          padded Linear bias
    out_ref:     (BT, Op) f32         linear(h_n) for this batch tile
    h_scr/c_scr: (BT, Hp) f32         state carried across time chunks
    """
    Tc = xg_ref.shape[0]
    Hp = w_hh_ref.shape[0]
    mm_dtype = w_hh_ref.dtype
    t_chunk = pl.program_id(1)
    n_chunks = pl.num_programs(1)

    @pl.when(t_chunk == 0)
    def _():
        h_scr[...] = jnp.zeros_like(h_scr)
        c_scr[...] = jnp.zeros_like(c_scr)

    def step(t, carry):
        h, c = carry
        h_mm = h.astype(mm_dtype)   # no-op in f32 mode; bf16 for fast MXU path

        def pre(g):
            # Gate pre-activation: streamed x-projection (+bias) + recurrence.
            # Gate slices are lane aligned because Hp is a multiple of 128.
            return (xg_ref[t, :, g * Hp:(g + 1) * Hp]
                    + jnp.dot(h_mm, w_hh_ref[:, g * Hp:(g + 1) * Hp],
                              preferred_element_type=jnp.float32))

        # PyTorch gate order: 0=input, 1=forget, 2=cell(g), 3=output.  Each
        # gate is consumed right after it is produced so at most ~3 gate-sized
        # temporaries are live (keeps the unrolled body under 64 vregs).
        c_new = jax.nn.sigmoid(pre(1)) * c
        c_new = c_new + jax.nn.sigmoid(pre(0)) * jnp.tanh(pre(2))
        h_new = jax.nn.sigmoid(pre(3)) * jnp.tanh(c_new)

        if apply_mask:   # only traced when T was padded up to a chunk multiple
            valid = (t_chunk * Tc + t) < seq_len
            h_new = jnp.where(valid, h_new, h)
            c_new = jnp.where(valid, c_new, c)
        return (h_new, c_new)

    h, c = jax.lax.fori_loop(0, Tc, step, (h_scr[...], c_scr[...]),
                             unroll=unroll)
    h_scr[...] = h
    c_scr[...] = c

    @pl.when(t_chunk == n_chunks - 1)
    def _():
        out_ref[...] = (jnp.dot(h.astype(w_lin_ref.dtype), w_lin_ref[...],
                                preferred_element_type=jnp.float32)
                        + b_lin_ref[...])


def pack_params(params, Hp, Op, compute_dtype):
    """Pre-transpose + per-gate lane-pad PyTorch-layout weights once."""
    w_ih = params["w_ih"]      # (4H, D)
    w_hh = params["w_hh"]      # (4H, H)
    b = params["b"]            # (1, 4H)  fused b_ih + b_hh
    w_lin = params["w_lin"]    # (O, H)
    b_lin = params["b_lin"]    # (1, O)

    H = w_hh.shape[1]
    O = w_lin.shape[0]

    def pad_transpose_gates(w):
        # (4H, X) stacked (i,f,g,o) -> (X, 4*Hp); each gate block lane aligned.
        # Padded hidden lanes get zero weights/bias => their h,c stay exactly 0.
        X = w.shape[1]
        w4 = w.reshape(4, H, X)
        w4p = jnp.zeros((4, Hp, X), w.dtype).at[:, :H, :].set(w4)
        return w4p.reshape(4 * Hp, X).T

    w_ih_p = pad_transpose_gates(w_ih)                                # (D, 4Hp)
    w_hh_p = jnp.zeros((Hp, 4 * Hp), w_hh.dtype).at[:H, :].set(
        pad_transpose_gates(w_hh))                                    # (Hp, 4Hp)
    b_p = jnp.zeros((4, Hp), jnp.float32).at[:, :H].set(
        b.reshape(4, H)).reshape(1, 4 * Hp)                           # (1, 4Hp)
    w_lin_p = jnp.zeros((Hp, Op), w_lin.dtype).at[:H, :O].set(w_lin.T)
    b_lin_p = jnp.zeros((1, Op), jnp.float32).at[:, :O].set(b_lin)

    # Matmul operands in compute_dtype (bf16 halves weight VMEM/DMA and hits
    # the fast MXU path on v6e/v7x); biases stay f32.
    return {"w_ih": w_ih_p.astype(compute_dtype),
            "w_hh": w_hh_p.astype(compute_dtype),
            "b": b_p,
            "w_lin": w_lin_p.astype(compute_dtype),
            "b_lin": b_lin_p}


def lstm_net_forward(x, params, *, compute_dtype=jnp.float32,
                     min_batch_tiles=1):
    """linear(h_n) of a single-layer batch_first LSTM.  Returns (1, B, O).

    compute_dtype: dtype of the matmul operands.  float32 matches the PyTorch
      reference to ~1e-6; bfloat16 is recommended on v6e/v7x.
    min_batch_tiles: set to 2 on v7x (2 TensorCores/chip) so the "parallel"
      batch axis can split across both cores; leave 1 on v5e/v6e (extra batch
      tiles would serialize the latency-bound recurrence on a single core).
    """
    B, T, D = x.shape
    H = params["w_hh"].shape[1]
    O = params["w_lin"].shape[0]

    Hp = _round_up(H, 128)      # per-gate lane-aligned blocks
    G = 4 * Hp                  # total (padded) gate width
    Op = _round_up(O, 128)      # lane-dense output stores

    # ---- batch tiling -------------------------------------------------------
    BT = min(128, _round_up(B, 8))
    if min_batch_tiles > 1 and B > 8:
        BT = min(BT, _round_up(-(-B // min_batch_tiles), 8))
    Bp = _round_up(B, BT)

    # ---- VMEM budget -> time-chunk length -----------------------------------
    w_bytes = jnp.dtype(compute_dtype).itemsize
    try:
        vmem_cap = int(pltpu.get_tpu_info().vmem_capacity_bytes)
    except Exception:
        vmem_cap = 64 * 2**20            # conservative fallback (v7x per-core)
    vmem_limit = int(0.9 * vmem_cap)

    fixed_bytes = (2 * (Hp * G + Hp * Op + Op) * w_bytes   # weights (<=2 bufs)
                   + 2 * BT * Op * 4                       # output block
                   + 2 * BT * Hp * 4                       # h / c scratch
                   + (2 << 20))                            # slack
    gate_bytes_per_step = 2 * BT * G * 4                   # double-buffered stream
    tc_max = min(T, max(1, (vmem_limit - fixed_bytes) // gate_bytes_per_step),
                 256)
    Tc, apply_mask = _choose_time_chunk(T, tc_max)
    Tp = _round_up(T, Tc)
    unroll = max(1, math.gcd(Tc, 8))     # partial unroll (vreg pressure)

    packed = pack_params(params, Hp, Op, compute_dtype)

    # ---- hoisted input projection: one big, efficient XLA matmul ------------
    # Streaming its result through a double-buffered BlockSpec overlaps its DMA
    # with the serial recurrence inside the kernel.
    x_tm = jnp.swapaxes(x, 0, 1).astype(compute_dtype)               # (T, B, D)
    xg = jnp.einsum("tbd,dg->tbg", x_tm, packed["w_ih"],
                    preferred_element_type=jnp.float32) + packed["b"]
    xg = jnp.pad(xg, ((0, Tp - T), (0, Bp - B), (0, 0)))             # (Tp,Bp,G)

    grid = (Bp // BT, Tp // Tc)
    kernel = functools.partial(lstm_net_kernel, seq_len=T,
                               apply_mask=apply_mask, unroll=unroll)

    flops = int(2 * Tp * Bp * Hp * G + 2 * Bp * Hp * Op)
    transcendentals = int(5 * Tp * Bp * Hp)
    bytes_accessed = int(4 * Tp * Bp * G + w_bytes * (Hp * G + Hp * Op)
                         + 4 * Op + 4 * Bp * Op)
    cost = pl.CostEstimate(flops=flops, transcendentals=transcendentals,
                           bytes_accessed=bytes_accessed)

    def build(single_buffer_weights):
        wkw = ({"pipeline_mode": pl.Buffered(1)} if single_buffer_weights
               else {})
        return pl.pallas_call(
            kernel,
            out_shape=jax.ShapeDtypeStruct((Bp, Op), jnp.float32),
            grid_spec=pltpu.PrefetchScalarGridSpec(
                num_scalar_prefetch=0,
                grid=grid,
                in_specs=[
                    # Streamed gate pre-activations (default double buffering
                    # -> DMA of chunk t+1 overlaps recurrence of chunk t).
                    pl.BlockSpec((Tc, BT, G), lambda b, t: (t, b, 0)),
                    # Constant weights: single buffer (index never changes).
                    pl.BlockSpec((Hp, G), lambda b, t: (0, 0), **wkw),
                    pl.BlockSpec((Hp, Op), lambda b, t: (0, 0), **wkw),
                    pl.BlockSpec((1, Op), lambda b, t: (0, 0), **wkw),
                ],
                out_specs=pl.BlockSpec((BT, Op), lambda b, t: (b, 0)),
                scratch_shapes=[pltpu.VMEM((BT, Hp), jnp.float32),   # h
                                pltpu.VMEM((BT, Hp), jnp.float32)],  # c
            ),
            compiler_params=pltpu.CompilerParams(
                dimension_semantics=("parallel", "arbitrary"),
                vmem_limit_bytes=vmem_limit),
            cost_estimate=cost,
        )

    args = (xg, packed["w_hh"], packed["w_lin"], packed["b_lin"])
    try:
        out = build(True)(*args)
    except Exception:
        # pipeline_mode=pl.Buffered(1) not supported by this jax build for
        # top-level pallas_call operands -> fall back to default double
        # buffering (extra VMEM only; numerics identical).
        out = build(False)(*args)

    # PyTorch returns linear(h_n) with h_n of shape (num_layers=1, B, H).
    return out[:B, :O].reshape(1, B, O)


def init_params(key, input_dim, hidden_dim, output_dim):
    """Deterministic init mimicking PyTorch's U(-1/sqrt(H), 1/sqrt(H))."""
    k = jax.random.split(key, 7)
    s = 1.0 / jnp.sqrt(hidden_dim)
    u = lambda kk, shape: jax.random.uniform(kk, shape, jnp.float32, -s, s)

    w_ih = u(k[0], (4 * hidden_dim, input_dim))
    w_hh = u(k[1], (4 * hidden_dim, hidden_dim))
    b_ih = u(k[2], (4 * hidden_dim,))
    b_hh = u(k[3], (4 * hidden_dim,))
    w_lin = u(k[4], (output_dim, hidden_dim))
    b_lin = u(k[5], (output_dim,))

    return {
        "w_ih": w_ih,
        "w_hh": w_hh,
        "b": (b_ih + b_hh).reshape(1, 4 * hidden_dim),
        "w_lin": w_lin,
        "b_lin": b_lin.reshape(1, output_dim),
    }


def reference_forward(x, params):
    """Pure-JAX reference replicating nn.LSTM (batch_first) + Linear(h_n)."""
    B, T, D = x.shape
    H = params["w_hh"].shape[1]
    w_ih_t = params["w_ih"].T
    w_hh_t = params["w_hh"].T
    b = params["b"]

    def step(carry, x_t):
        h, c = carry
        gates = x_t @ w_ih_t + h @ w_hh_t + b
        i_g = jax.nn.sigmoid(gates[:, 0 * H:1 * H])
        f_g = jax.nn.sigmoid(gates[:, 1 * H:2 * H])
        g_g = jnp.tanh(gates[:, 2 * H:3 * H])
        o_g = jax.nn.sigmoid(gates[:, 3 * H:4 * H])
        c_new = f_g * c + i_g * g_g
        h_new = o_g * jnp.tanh(c_new)
        return (h_new, c_new), None

    h0 = jnp.zeros((B, H), jnp.float32)
    c0 = jnp.zeros((B, H), jnp.float32)
    (h_n, _), _ = jax.lax.scan(step, (h0, c0), jnp.swapaxes(x, 0, 1))
    out = h_n @ params["w_lin"].T + params["b_lin"]
    return out.reshape(1, B, -1)


if __name__ == "__main__":
    batch, seq, input_dim, hidden_dim, output_dim = 2, 8, 16, 32, 4

    key = jax.random.PRNGKey(0)
    k_x, k_p = jax.random.split(key)
    x = jax.random.normal(k_x, (batch, seq, input_dim), jnp.float32)
    params = init_params(k_p, input_dim, hidden_dim, output_dim)

    ref = reference_forward(x, params)

    # f32 path: matches the PyTorch/JAX reference tightly.
    out = jax.block_until_ready(lstm_net_forward(x, params))
    assert out.shape == (1, batch, output_dim)
    assert jnp.allclose(out, ref, atol=1e-5, rtol=1e-5), float(
        jnp.max(jnp.abs(out - ref)))

    # bf16 matmul-operand path (recommended on v6e/v7x): looser tolerance.
    out_bf16 = jax.block_until_ready(
        lstm_net_forward(x, params, compute_dtype=jnp.bfloat16))
    assert jnp.allclose(out_bf16, ref, atol=5e-2, rtol=5e-2), float(
        jnp.max(jnp.abs(out_bf16 - ref)))

    print("KERNEL_OK")
</pallas_src>

<mosaic_0001>
module attributes {stable_mosaic.version = 11 : i64} {
  func.func @lstm_net_kernel(%arg0: i32, %arg1: i32, %arg2: memref<8x8x512xf32, #tpu.memory_space<vmem>>, %arg3: memref<128x512xf32, #tpu.memory_space<vmem>>, %arg4: memref<128x128xf32, #tpu.memory_space<vmem>>, %arg5: memref<1x128xf32, #tpu.memory_space<vmem>>, %arg6: memref<8x128xf32, #tpu.memory_space<vmem>>, %arg7: memref<8x128xf32, #tpu.memory_space<vmem>>, %arg8: memref<8x128xf32, #tpu.memory_space<vmem>>) attributes {dimension_semantics = [#tpu.dimension_semantics<parallel>, #tpu.dimension_semantics<arbitrary>], iteration_bounds = array<i64: 1, 1>, scalar_prefetch = 0 : i64, scratch_operands = 2 : i64, tpu.core_type = #tpu.core_type<tc>, window_params = [{transform_indices = @transform_0, window_bounds = array<i64: 8, 8, 512>}, {pipeline_mode = #tpu.pipeline_mode<synchronous>, transform_indices = @transform_1, window_bounds = array<i64: 128, 512>}, {pipeline_mode = #tpu.pipeline_mode<synchronous>, transform_indices = @transform_2, window_bounds = array<i64: 128, 128>}, {pipeline_mode = #tpu.pipeline_mode<synchronous>, transform_indices = @transform_3, window_bounds = array<i64: 1, 128>}, {transform_indices = @transform_4, window_bounds = array<i64: 8, 128>}]} {
    %c0_i32 = arith.constant 0 : i32
    %0 = arith.cmpi eq, %arg1, %c0_i32 : i32
    %1 = arith.extui %0 : i1 to i32
    %c0_i32_0 = arith.constant 0 : i32
    %2 = arith.cmpi ne, %1, %c0_i32_0 : i32
    scf.if %2 {
      %cst_191 = arith.constant 0.000000e+00 : f32
      %370 = vector.broadcast %cst_191 : f32 to vector<8x128xf32>
      %c0_192 = arith.constant 0 : index
      %c0_193 = arith.constant 0 : index
      %371 = vector.load %arg7[%c0_192, %c0_193] : memref<8x128xf32, #tpu.memory_space<vmem>>, vector<8x128xf32>
      tpu.vector_store %arg7[%c0_192, %c0_193], %370 {strides = array<i32>} : memref<8x128xf32, #tpu.memory_space<vmem>>, vector<8x128xf32>,
      %cst_194 = arith.constant 0.000000e+00 : f32
      %372 = vector.broadcast %cst_194 : f32 to vector<8x128xf32>
      %c0_195 = arith.constant 0 : index
      %c0_196 = arith.constant 0 : index
      %373 = vector.load %arg8[%c0_195, %c0_196] : memref<8x128xf32, #tpu.memory_space<vmem>>, vector<8x128xf32>
      tpu.vector_store %arg8[%c0_195, %c0_196], %372 {strides = array<i32>} : memref<8x128xf32, #tpu.memory_space<vmem>>, vector<8x128xf32>,
    } else {
    }
    %c0 = arith.constant 0 : index
    %c0_1 = arith.constant 0 : index
    %3 = vector.load %arg7[%c0, %c0_1] : memref<8x128xf32, #tpu.memory_space<vmem>>, vector<8x128xf32>
    %c0_2 = arith.constant 0 : index
    %c0_3 = arith.constant 0 : index
    %4 = vector.load %arg8[%c0_2, %c0_3] : memref<8x128xf32, #tpu.memory_space<vmem>>, vector<8x128xf32>
    %c0_i32_4 = arith.constant 0 : i32
    %5 = arith.index_cast %c0_i32_4 : i32 to index
    %c0_5 = arith.constant 0 : index
    %c128 = arith.constant 128 : index
    %6 = vector.load %arg2[%5, %c0_5, %c128] : memref<8x8x512xf32, #tpu.memory_space<vmem>>, vector<1x8x128xf32>
    %7 = vector.shape_cast %6 : vector<1x8x128xf32> to vector<8x128xf32>
    %c0_6 = arith.constant 0 : index
    %c128_7 = arith.constant 128 : index
    %8 = vector.load %arg3[%c0_6, %c128_7] : memref<128x512xf32, #tpu.memory_space<vmem>>, vector<128x128xf32>
    %cst = arith.constant dense<0.000000e+00> : vector<8x128xf32>
    %9 = tpu.matmul %3, %8, %cst {dimension_numbers = #tpu.dot_dimension_numbers<[1], [0], [0], [1], [0, 0, 1, 1], [], []>} : vector<8x128xf32>, vector<128x128xf32>, vector<8x128xf32> -> vector<8x128xf32>
    %10 = arith.addf %7, %9 : vector<8x128xf32>
    %11 = arith.negf %10 : vector<8x128xf32>
    %12 = math.exp %11 : vector<8x128xf32>
    %cst_8 = arith.constant 1.000000e+00 : f32
    %13 = vector.broadcast %cst_8 : f32 to vector<8x128xf32>
    %14 = arith.addf %13, %12 : vector<8x128xf32>
    %15 = arith.divf %13, %14 : vector<8x128xf32>
    %16 = arith.mulf %15, %4 : vector<8x128xf32>
    %17 = arith.index_cast %c0_i32_4 : i32 to index
    %c0_9 = arith.constant 0 : index
    %c0_10 = arith.constant 0 : index
    %18 = vector.load %arg2[%17, %c0_9, %c0_10] : memref<8x8x512xf32, #tpu.memory_space<vmem>>, vector<1x8x128xf32>
    %19 = vector.shape_cast %18 : vector<1x8x128xf32> to vector<8x128xf32>
    %c0_11 = arith.constant 0 : index
    %c0_12 = arith.constant 0 : index
    %20 = vector.load %arg3[%c0_11, %c0_12] : memref<128x512xf32, #tpu.memory_space<vmem>>, vector<128x128xf32>
    %cst_13 = arith.constant dense<0.000000e+00> : vector<8x128xf32>
    %21 = tpu.matmul %3, %20, %cst_13 {dimension_numbers = #tpu.dot_dimension_numbers<[1], [0], [0], [1], [0, 0, 1, 1], [], []>} : vector<8x128xf32>, vector<128x128xf32>, vector<8x128xf32> -> vector<8x128xf32>
    %22 = arith.addf %19, %21 : vector<8x128xf32>
    %23 = arith.negf %22 : vector<8x128xf32>
    %24 = math.exp %23 : vector<8x128xf32>
    %cst_14 = arith.constant 1.000000e+00 : f32
    %25 = vector.broadcast %cst_14 : f32 to vector<8x128xf32>
    %26 = arith.addf %25, %24 : vector<8x128xf32>
    %27 = arith.divf %25, %26 : vector<8x128xf32>
    %28 = arith.index_cast %c0_i32_4 : i32 to index
    %c0_15 = arith.constant 0 : index
    %c256 = arith.constant 256 : index
    %29 = vector.load %arg2[%28, %c0_15, %c256] : memref<8x8x512xf32, #tpu.memory_space<vmem>>, vector<1x8x128xf32>
    %30 = vector.shape_cast %29 : vector<1x8x128xf32> to vector<8x128xf32>
    %c0_16 = arith.constant 0 : index
    %c256_17 = arith.constant 256 : index
    %31 = vector.load %arg3[%c0_16, %c256_17] : memref<128x512xf32, #tpu.memory_space<vmem>>, vector<128x128xf32>
    %cst_18 = arith.constant dense<0.000000e+00> : vector<8x128xf32>
    %32 = tpu.matmul %3, %31, %cst_18 {dimension_numbers = #tpu.dot_dimension_numbers<[1], [0], [0], [1], [0, 0, 1, 1], [], []>} : vector<8x128xf32>, vector<128x128xf32>, vector<8x128xf32> -> vector<8x128xf32>
    %33 = arith.addf %30, %32 : vector<8x128xf32>
    %34 = math.tanh %33 : vector<8x128xf32>
    %35 = arith.mulf %27, %34 : vector<8x128xf32>
    %36 = arith.addf %16, %35 : vector<8x128xf32>
    %37 = arith.index_cast %c0_i32_4 : i32 to index
    %c0_19 = arith.constant 0 : index
    %c384 = arith.constant 384 : index
    %38 = vector.load %arg2[%37, %c0_19, %c384] : memref<8x8x512xf32, #tpu.memory_space<vmem>>, vector<1x8x128xf32>
    %39 = vector.shape_cast %38 : vector<1x8x128xf32> to vector<8x128xf32>
    %c0_20 = arith.constant 0 : index
    %c384_21 = arith.constant 384 : index
    %40 = vector.load %arg3[%c0_20, %c384_21] : memref<128x512xf32, #tpu.memory_space<vmem>>, vector<128x128xf32>
    %cst_22 = arith.constant dense<0.000000e+00> : vector<8x128xf32>
    %41 = tpu.matmul %3, %40, %cst_22 {dimension_numbers = #tpu.dot_dimension_numbers<[1], [0], [0], [1], [0, 0, 1, 1], [], []>} : vector<8x128xf32>, vector<128x128xf32>, vector<8x128xf32> -> vector<8x128xf32>
    %42 = arith.addf %39, %41 : vector<8x128xf32>
    %43 = arith.negf %42 : vector<8x128xf32>
    %44 = math.exp %43 : vector<8x128xf32>
    %cst_23 = arith.constant 1.000000e+00 : f32
    %45 = vector.broadcast %cst_23 : f32 to vector<8x128xf32>
    %46 = arith.addf %45, %44 : vector<8x128xf32>
    %47 = arith.divf %45, %46 : vector<8x128xf32>
    %48 = math.tanh %36 : vector<8x128xf32>
    %49 = arith.mulf %47, %48 : vector<8x128xf32>
    %c1_i32 = arith.constant 1 : i32
    %50 = arith.index_cast %c1_i32 : i32 to index
    %c0_24 = arith.constant 0 : index
    %c128_25 = arith.constant 128 : index
    %51 = vector.load %arg2[%50, %c0_24, %c128_25] : memref<8x8x512xf32, #tpu.memory_space<vmem>>, vector<1x8x128xf32>
    %52 = vector.shape_cast %51 : vector<1x8x128xf32> to vector<8x128xf32>
    %c0_26 = arith.constant 0 : index
    %c128_27 = arith.constant 128 : index
    %53 = vector.load %arg3[%c0_26, %c128_27] : memref<128x512xf32, #tpu.memory_space<vmem>>, vector<128x128xf32>
    %cst_28 = arith.constant dense<0.000000e+00> : vector<8x128xf32>
    %54 = tpu.matmul %49, %53, %cst_28 {dimension_numbers = #tpu.dot_dimension_numbers<[1], [0], [0], [1], [0, 0, 1, 1], [], []>} : vector<8x128xf32>, vector<128x128xf32>, vector<8x128xf32> -> vector<8x128xf32>
    %55 = arith.addf %52, %54 : vector<8x128xf32>
    %56 = arith.negf %55 : vector<8x128xf32>
    %57 = math.exp %56 : vector<8x128xf32>
    %cst_29 = arith.constant 1.000000e+00 : f32
    %58 = vector.broadcast %cst_29 : f32 to vector<8x128xf32>
    %59 = arith.addf %58, %57 : vector<8x128xf32>
    %60 = arith.divf %58, %59 : vector<8x128xf32>
    %61 = arith.mulf %60, %36 : vector<8x128xf32>
    %62 = arith.index_cast %c1_i32 : i32 to index
    %c0_30 = arith.constant 0 : index
    %c0_31 = arith.constant 0 : index
    %63 = vector.load %arg2[%62, %c0_30, %c0_31] : memref<8x8x512xf32, #tpu.memory_space<vmem>>, vector<1x8x128xf32>
    %64 = vector.shape_cast %63 : vector<1x8x128xf32> to vector<8x128xf32>
    %c0_32 = arith.constant 0 : index
    %c0_33 = arith.constant 0 : index
    %65 = vector.load %arg3[%c0_32, %c0_33] : memref<128x512xf32, #tpu.memory_space<vmem>>, vector<128x128xf32>
    %cst_34 = arith.constant dense<0.000000e+00> : vector<8x128xf32>
    %66 = tpu.matmul %49, %65, %cst_34 {dimension_numbers = #tpu.dot_dimension_numbers<[1], [0], [0], [1], [0, 0, 1, 1], [], []>} : vector<8x128xf32>, vector<128x128xf32>, vector<8x128xf32> -> vector<8x128xf32>
    %67 = arith.addf %64, %66 : vector<8x128xf32>
    %68 = arith.negf %67 : vector<8x128xf32>
    %69 = math.exp %68 : vector<8x128xf32>
    %cst_35 = arith.constant 1.000000e+00 : f32
    %70 = vector.broadcast %cst_35 : f32 to vector<8x128xf32>
    %71 = arith.addf %70, %69 : vector<8x128xf32>
    %72 = arith.divf %70, %71 : vector<8x128xf32>
    %73 = arith.index_cast %c1_i32 : i32 to index
    %c0_36 = arith.constant 0 : index
    %c256_37 = arith.constant 256 : index
    %74 = vector.load %arg2[%73, %c0_36, %c256_37] : memref<8x8x512xf32, #tpu.memory_space<vmem>>, vector<1x8x128xf32>
    %75 = vector.shape_cast %74 : vector<1x8x128xf32> to vector<8x128xf32>
    %c0_38 = arith.constant 0 : index
    %c256_39 = arith.constant 256 : index
    %76 = vector.load %arg3[%c0_38, %c256_39] : memref<128x512xf32, #tpu.memory_space<vmem>>, vector<128x128xf32>
    %cst_40 = arith.constant dense<0.000000e+00> : vector<8x128xf32>
    %77 = tpu.matmul %49, %76, %cst_40 {dimension_numbers = #tpu.dot_dimension_numbers<[1], [0], [0], [1], [0, 0, 1, 1], [], []>} : vector<8x128xf32>, vector<128x128xf32>, vector<8x128xf32> -> vector<8x128xf32>
    %78 = arith.addf %75, %77 : vector<8x128xf32>
    %79 = math.tanh %78 : vector<8x128xf32>
    %80 = arith.mulf %72, %79 : vector<8x128xf32>
    %81 = arith.addf %61, %80 : vector<8x128xf32>
    %82 = arith.index_cast %c1_i32 : i32 to index
    %c0_41 = arith.constant 0 : index
    %c384_42 = arith.constant 384 : index
    %83 = vector.load %arg2[%82, %c0_41, %c384_42] : memref<8x8x512xf32, #tpu.memory_space<vmem>>, vector<1x8x128xf32>
    %84 = vector.shape_cast %83 : vector<1x8x128xf32> to vector<8x128xf32>
    %c0_43 = arith.constant 0 : index
    %c384_44 = arith.constant 384 : index
    %85 = vector.load %arg3[%c0_43, %c384_44] : memref<128x512xf32, #tpu.memory_space<vmem>>, vector<128x128xf32>
    %cst_45 = arith.constant dense<0.000000e+00> : vector<8x128xf32>
    %86 = tpu.matmul %49, %85, %cst_45 {dimension_numbers = #tpu.dot_dimension_numbers<[1], [0], [0], [1], [0, 0, 1, 1], [], []>} : vector<8x128xf32>, vector<128x128xf32>, vector<8x128xf32> -> vector<8x128xf32>
    %87 = arith.addf %84, %86 : vector<8x128xf32>
    %88 = arith.negf %87 : vector<8x128xf32>
    %89 = math.exp %88 : vector<8x128xf32>
    %cst_46 = arith.constant 1.000000e+00 : f32
    %90 = vector.broadcast %cst_46 : f32 to vector<8x128xf32>
    %91 = arith.addf %90, %89 : vector<8x128xf32>
    %92 = arith.divf %90, %91 : vector<8x128xf32>
    %93 = math.tanh %81 : vector<8x128xf32>
    %94 = arith.mulf %92, %93 : vector<8x128xf32>
    %c2_i32 = arith.constant 2 : i32
    %95 = arith.index_cast %c2_i32 : i32 to index
    %c0_47 = arith.constant 0 : index
    %c128_48 = arith.constant 128 : index
    %96 = vector.load %arg2[%95, %c0_47, %c128_48] : memref<8x8x512xf32, #tpu.memory_space<vmem>>, vector<1x8x128xf32>
    %97 = vector.shape_cast %96 : vector<1x8x128xf32> to vector<8x128xf32>
    %c0_49 = arith.constant 0 : index
    %c128_50 = arith.constant 128 : index
    %98 = vector.load %arg3[%c0_49, %c128_50] : memref<128x512xf32, #tpu.memory_space<vmem>>, vector<128x128xf32>
    %cst_51 = arith.constant dense<0.000000e+00> : vector<8x128xf32>
    %99 = tpu.matmul %94, %98, %cst_51 {dimension_numbers = #tpu.dot_dimension_numbers<[1], [0], [0], [1], [0, 0, 1, 1], [], []>} : vector<8x128xf32>, vector<128x128xf32>, vector<8x128xf32> -> vector<8x128xf32>
    %100 = arith.addf %97, %99 : vector<8x128xf32>
    %101 = arith.negf %100 : vector<8x128xf32>
    %102 = math.exp %101 : vector<8x128xf32>
    %cst_52 = arith.constant 1.000000e+00 : f32
    %103 = vector.broadcast %cst_52 : f32 to vector<8x128xf32>
    %104 = arith.addf %103, %102 : vector<8x128xf32>
    %105 = arith.divf %103, %104 : vector<8x128xf32>
    %106 = arith.mulf %105, %81 : vector<8x128xf32>
    %107 = arith.index_cast %c2_i32 : i32 to index
    %c0_53 = arith.constant 0 : index
    %c0_54 = arith.constant 0 : index
    %108 = vector.load %arg2[%107, %c0_53, %c0_54] : memref<8x8x512xf32, #tpu.memory_space<vmem>>, vector<1x8x128xf32>
    %109 = vector.shape_cast %108 : vector<1x8x128xf32> to vector<8x128xf32>
    %c0_55 = arith.constant 0 : index
    %c0_56 = arith.constant 0 : index
    %110 = vector.load %arg3[%c0_55, %c0_56] : memref<128x512xf32, #tpu.memory_space<vmem>>, vector<128x128xf32>
    %cst_57 = arith.constant dense<0.000000e+00> : vector<8x128xf32>
    %111 = tpu.matmul %94, %110, %cst_57 {dimension_numbers = #tpu.dot_dimension_numbers<[1], [0], [0], [1], [0, 0, 1, 1], [], []>} : vector<8x128xf32>, vector<128x128xf32>, vector<8x128xf32> -> vector<8x128xf32>
    %112 = arith.addf %109, %111 : vector<8x128xf32>
    %113 = arith.negf %112 : vector<8x128xf32>
    %114 = math.exp %113 : vector<8x128xf32>
    %cst_58 = arith.constant 1.000000e+00 : f32
    %115 = vector.broadcast %cst_58 : f32 to vector<8x128xf32>
    %116 = arith.addf %115, %114 : vector<8x128xf32>
    %117 = arith.divf %115, %116 : vector<8x128xf32>
    %118 = arith.index_cast %c2_i32 : i32 to index
    %c0_59 = arith.constant 0 : index
    %c256_60 = arith.constant 256 : index
    %119 = vector.load %arg2[%118, %c0_59, %c256_60] : memref<8x8x512xf32, #tpu.memory_space<vmem>>, vector<1x8x128xf32>
    %120 = vector.shape_cast %119 : vector<1x8x128xf32> to vector<8x128xf32>
    %c0_61 = arith.constant 0 : index
    %c256_62 = arith.constant 256 : index
    %121 = vector.load %arg3[%c0_61, %c256_62] : memref<128x512xf32, #tpu.memory_space<vmem>>, vector<128x128xf32>
    %cst_63 = arith.constant dense<0.000000e+00> : vector<8x128xf32>
    %122 = tpu.matmul %94, %121, %cst_63 {dimension_numbers = #tpu.dot_dimension_numbers<[1], [0], [0], [1], [0, 0, 1, 1], [], []>} : vector<8x128xf32>, vector<128x128xf32>, vector<8x128xf32> -> vector<8x128xf32>
    %123 = arith.addf %120, %122 : vector<8x128xf32>
    %124 = math.tanh %123 : vector<8x128xf32>
    %125 = arith.mulf %117, %124 : vector<8x128xf32>
    %126 = arith.addf %106, %125 : vector<8x128xf32>
    %127 = arith.index_cast %c2_i32 : i32 to index
    %c0_64 = arith.constant 0 : index
    %c384_65 = arith.constant 384 : index
    %128 = vector.load %arg2[%127, %c0_64, %c384_65] : memref<8x8x512xf32, #tpu.memory_space<vmem>>, vector<1x8x128xf32>
    %129 = vector.shape_cast %128 : vector<1x8x128xf32> to vector<8x128xf32>
    %c0_66 = arith.constant 0 : index
    %c384_67 = arith.constant 384 : index
    %130 = vector.load %arg3[%c0_66, %c384_67] : memref<128x512xf32, #tpu.memory_space<vmem>>, vector<128x128xf32>
    %cst_68 = arith.constant dense<0.000000e+00> : vector<8x128xf32>
    %131 = tpu.matmul %94, %130, %cst_68 {dimension_numbers = #tpu.dot_dimension_numbers<[1], [0], [0], [1], [0, 0, 1, 1], [], []>} : vector<8x128xf32>, vector<128x128xf32>, vector<8x128xf32> -> vector<8x128xf32>
    %132 = arith.addf %129, %131 : vector<8x128xf32>
    %133 = arith.negf %132 : vector<8x128xf32>
    %134 = math.exp %133 : vector<8x128xf32>
    %cst_69 = arith.constant 1.000000e+00 : f32
    %135 = vector.broadcast %cst_69 : f32 to vector<8x128xf32>
    %136 = arith.addf %135, %134 : vector<8x128xf32>
    %137 = arith.divf %135, %136 : vector<8x128xf32>
    %138 = math.tanh %126 : vector<8x128xf32>
    %139 = arith.mulf %137, %138 : vector<8x128xf32>
    %c3_i32 = arith.constant 3 : i32
    %140 = arith.index_cast %c3_i32 : i32 to index
    %c0_70 = arith.constant 0 : index
    %c128_71 = arith.constant 128 : index
    %141 = vector.load %arg2[%140, %c0_70, %c128_71] : memref<8x8x512xf32, #tpu.memory_space<vmem>>, vector<1x8x128xf32>
    %142 = vector.shape_cast %141 : vector<1x8x128xf32> to vector<8x128xf32>
    %c0_72 = arith.constant 0 : index
    %c128_73 = arith.constant 128 : index
    %143 = vector.load %arg3[%c0_72, %c128_73] : memref<128x512xf32, #tpu.memory_space<vmem>>, vector<128x128xf32>
    %cst_74 = arith.constant dense<0.000000e+00> : vector<8x128xf32>
    %144 = tpu.matmul %139, %143, %cst_74 {dimension_numbers = #tpu.dot_dimension_numbers<[1], [0], [0], [1], [0, 0, 1, 1], [], []>} : vector<8x128xf32>, vector<128x128xf32>, vector<8x128xf32> -> vector<8x128xf32>
    %145 = arith.addf %142, %144 : vector<8x128xf32>
    %146 = arith.negf %145 : vector<8x128xf32>
    %147 = math.exp %146 : vector<8x128xf32>
    %cst_75 = arith.constant 1.000000e+00 : f32
    %148 = vector.broadcast %cst_75 : f32 to vector<8x128xf32>
    %149 = arith.addf %148, %147 : vector<8x128xf32>
    %150 = arith.divf %148, %149 : vector<8x128xf32>
    %151 = arith.mulf %150, %126 : vector<8x128xf32>
    %152 = arith.index_cast %c3_i32 : i32 to index
    %c0_76 = arith.constant 0 : index
    %c0_77 = arith.constant 0 : index
    %153 = vector.load %arg2[%152, %c0_76, %c0_77] : memref<8x8x512xf32, #tpu.memory_space<vmem>>, vector<1x8x128xf32>
    %154 = vector.shape_cast %153 : vector<1x8x128xf32> to vector<8x128xf32>
    %c0_78 = arith.constant 0 : index
    %c0_79 = arith.constant 0 : index
    %155 = vector.load %arg3[%c0_78, %c0_79] : memref<128x512xf32, #tpu.memory_space<vmem>>, vector<128x128xf32>
    %cst_80 = arith.constant dense<0.000000e+00> : vector<8x128xf32>
    %156 = tpu.matmul %139, %155, %cst_80 {dimension_numbers = #tpu.dot_dimension_numbers<[1], [0], [0], [1], [0, 0, 1, 1], [], []>} : vector<8x128xf32>, vector<128x128xf32>, vector<8x128xf32> -> vector<8x128xf32>
    %157 = arith.addf %154, %156 : vector<8x128xf32>
    %158 = arith.negf %157 : vector<8x128xf32>
    %159 = math.exp %158 : vector<8x128xf32>
    %cst_81 = arith.constant 1.000000e+00 : f32
    %160 = vector.broadcast %cst_81 : f32 to vector<8x128xf32>
    %161 = arith.addf %160, %159 : vector<8x128xf32>
    %162 = arith.divf %160, %161 : vector<8x128xf32>
    %163 = arith.index_cast %c3_i32 : i32 to index
    %c0_82 = arith.constant 0 : index
    %c256_83 = arith.constant 256 : index
    %164 = vector.load %arg2[%163, %c0_82, %c256_83] : memref<8x8x512xf32, #tpu.memory_space<vmem>>, vector<1x8x128xf32>
    %165 = vector.shape_cast %164 : vector<1x8x128xf32> to vector<8x128xf32>
    %c0_84 = arith.constant 0 : index
    %c256_85 = arith.constant 256 : index
    %166 = vector.load %arg3[%c0_84, %c256_85] : memref<128x512xf32, #tpu.memory_space<vmem>>, vector<128x128xf32>
    %cst_86 = arith.constant dense<0.000000e+00> : vector<8x128xf32>
    %167 = tpu.matmul %139, %166, %cst_86 {dimension_numbers = #tpu.dot_dimension_numbers<[1], [0], [0], [1], [0, 0, 1, 1], [], []>} : vector<8x128xf32>, vector<128x128xf32>, vector<8x128xf32> -> vector<8x128xf32>
    %168 = arith.addf %165, %167 : vector<8x128xf32>
    %169 = math.tanh %168 : vector<8x128xf32>
    %170 = arith.mulf %162, %169 : vector<8x128xf32>
    %171 = arith.addf %151, %170 : vector<8x128xf32>
    %172 = arith.index_cast %c3_i32 : i32 to index
    %c0_87 = arith.constant 0 : index
    %c384_88 = arith.constant 384 : index
    %173 = vector.load %arg2[%172, %c0_87, %c384_88] : memref<8x8x512xf32, #tpu.memory_space<vmem>>, vector<1x8x128xf32>
    %174 = vector.shape_cast %173 : vector<1x8x128xf32> to vector<8x128xf32>
    %c0_89 = arith.constant 0 : index
    %c384_90 = arith.constant 384 : index
    %175 = vector.load %arg3[%c0_89, %c384_90] : memref<128x512xf32, #tpu.memory_space<vmem>>, vector<128x128xf32>
    %cst_91 = arith.constant dense<0.000000e+00> : vector<8x128xf32>
    %176 = tpu.matmul %139, %175, %cst_91 {dimension_numbers = #tpu.dot_dimension_numbers<[1], [0], [0], [1], [0, 0, 1, 1], [], []>} : vector<8x128xf32>, vector<128x128xf32>, vector<8x128xf32> -> vector<8x128xf32>
    %177 = arith.addf %174, %176 : vector<8x128xf32>
    %178 = arith.negf %177 : vector<8x128xf32>
    %179 = math.exp %178 : vector<8x128xf32>
    %cst_92 = arith.constant 1.000000e+00 : f32
    %180 = vector.broadcast %cst_92 : f32 to vector<8x128xf32>
    %181 = arith.addf %180, %179 : vector<8x128xf32>
    %182 = arith.divf %180, %181 : vector<8x128xf32>
    %183 = math.tanh %171 : vector<8x128xf32>
    %184 = arith.mulf %182, %183 : vector<8x128xf32>
    %c4_i32 = arith.constant 4 : i32
    %185 = arith.index_cast %c4_i32 : i32 to index
    %c0_93 = arith.constant 0 : index
    %c128_94 = arith.constant 128 : index
    %186 = vector.load %arg2[%185, %c0_93, %c128_94] : memref<8x8x512xf32, #tpu.memory_space<vmem>>, vector<1x8x128xf32>
    %187 = vector.shape_cast %186 : vector<1x8x128xf32> to vector<8x128xf32>
    %c0_95 = arith.constant 0 : index
    %c128_96 = arith.constant 128 : index
    %188 = vector.load %arg3[%c0_95, %c128_96] : memref<128x512xf32, #tpu.memory_space<vmem>>, vector<128x128xf32>
    %cst_97 = arith.constant dense<0.000000e+00> : vector<8x128xf32>
    %189 = tpu.matmul %184, %188, %cst_97 {dimension_numbers = #tpu.dot_dimension_numbers<[1], [0], [0], [1], [0, 0, 1, 1], [], []>} : vector<8x128xf32>, vector<128x128xf32>, vector<8x128xf32> -> vector<8x128xf32>
    %190 = arith.addf %187, %189 : vector<8x128xf32>
    %191 = arith.negf %190 : vector<8x128xf32>
    %192 = math.exp %191 : vector<8x128xf32>
    %cst_98 = arith.constant 1.000000e+00 : f32
    %193 = vector.broadcast %cst_98 : f32 to vector<8x128xf32>
    %194 = arith.addf %193, %192 : vector<8x128xf32>
    %195 = arith.divf %193, %194 : vector<8x128xf32>
    %196 = arith.mulf %195, %171 : vector<8x128xf32>
    %197 = arith.index_cast %c4_i32 : i32 to index
    %c0_99 = arith.constant 0 : index
    %c0_100 = arith.constant 0 : index
    %198 = vector.load %arg2[%197, %c0_99, %c0_100] : memref<8x8x512xf32, #tpu.memory_space<vmem>>, vector<1x8x128xf32>
    %199 = vector.shape_cast %198 : vector<1x8x128xf32> to vector<8x128xf32>
    %c0_101 = arith.constant 0 : index
    %c0_102 = arith.constant 0 : index
    %200 = vector.load %arg3[%c0_101, %c0_102] : memref<128x512xf32, #tpu.memory_space<vmem>>, vector<128x128xf32>
    %cst_103 = arith.constant dense<0.000000e+00> : vector<8x128xf32>
    %201 = tpu.matmul %184, %200, %cst_103 {dimension_numbers = #tpu.dot_dimension_numbers<[1], [0], [0], [1], [0, 0, 1, 1], [], []>} : vector<8x128xf32>, vector<128x128xf32>, vector<8x128xf32> -> vector<8x128xf32>
    %202 = arith.addf %199, %201 : vector<8x128xf32>
    %203 = arith.negf %202 : vector<8x128xf32>
    %204 = math.exp %203 : vector<8x128xf32>
    %cst_104 = arith.constant 1.000000e+00 : f32
    %205 = vector.broadcast %cst_104 : f32 to vector<8x128xf32>
    %206 = arith.addf %205, %204 : vector<8x128xf32>
    %207 = arith.divf %205, %206 : vector<8x128xf32>
    %208 = arith.index_cast %c4_i32 : i32 to index
    %c0_105 = arith.constant 0 : index
    %c256_106 = arith.constant 256 : index
    %209 = vector.load %arg2[%208, %c0_105, %c256_106] : memref<8x8x512xf32, #tpu.memory_space<vmem>>, vector<1x8x128xf32>
    %210 = vector.shape_cast %209 : vector<1x8x128xf32> to vector<8x128xf32>
    %c0_107 = arith.constant 0 : index
    %c256_108 = arith.constant 256 : index
    %211 = vector.load %arg3[%c0_107, %c256_108] : memref<128x512xf32, #tpu.memory_space<vmem>>, vector<128x128xf32>
    %cst_109 = arith.constant dense<0.000000e+00> : vector<8x128xf32>
    %212 = tpu.matmul %184, %211, %cst_109 {dimension_numbers = #tpu.dot_dimension_numbers<[1], [0], [0], [1], [0, 0, 1, 1], [], []>} : vector<8x128xf32>, vector<128x128xf32>, vector<8x128xf32> -> vector<8x128xf32>
    %213 = arith.addf %210, %212 : vector<8x128xf32>
    %214 = math.tanh %213 : vector<8x128xf32>
    %215 = arith.mulf %207, %214 : vector<8x128xf32>
    %216 = arith.addf %196, %215 : vector<8x128xf32>
    %217 = arith.index_cast %c4_i32 : i32 to index
    %c0_110 = arith.constant 0 : index
    %c384_111 = arith.constant 384 : index
    %218 = vector.load %arg2[%217, %c0_110, %c384_111] : memref<8x8x512xf32, #tpu.memory_space<vmem>>, vector<1x8x128xf32>
    %219 = vector.shape_cast %218 : vector<1x8x128xf32> to vector<8x128xf32>
    %c0_112 = arith.constant 0 : index
    %c384_113 = arith.constant 384 : index
    %220 = vector.load %arg3[%c0_112, %c384_113] : memref<128x512xf32, #tpu.memory_space<vmem>>, vector<128x128xf32>
    %cst_114 = arith.constant dense<0.000000e+00> : vector<8x128xf32>
    %221 = tpu.matmul %184, %220, %cst_114 {dimension_numbers = #tpu.dot_dimension_numbers<[1], [0], [0], [1], [0, 0, 1, 1], [], []>} : vector<8x128xf32>, vector<128x128xf32>, vector<8x128xf32> -> vector<8x128xf32>
    %222 = arith.addf %219, %221 : vector<8x128xf32>
    %223 = arith.negf %222 : vector<8x128xf32>
    %224 = math.exp %223 : vector<8x128xf32>
    %cst_115 = arith.constant 1.000000e+00 : f32
    %225 = vector.broadcast %cst_115 : f32 to vector<8x128xf32>
    %226 = arith.addf %225, %224 : vector<8x128xf32>
    %227 = arith.divf %225, %226 : vector<8x128xf32>
    %228 = math.tanh %216 : vector<8x128xf32>
    %229 = arith.mulf %227, %228 : vector<8x128xf32>
    %c5_i32 = arith.constant 5 : i32
    %230 = arith.index_cast %c5_i32 : i32 to index
    %c0_116 = arith.constant 0 : index
    %c128_117 = arith.constant 128 : index
    %231 = vector.load %arg2[%230, %c0_116, %c128_117] : memref<8x8x512xf32, #tpu.memory_space<vmem>>, vector<1x8x128xf32>
    %232 = vector.shape_cast %231 : vector<1x8x128xf32> to vector<8x128xf32>
    %c0_118 = arith.constant 0 : index
    %c128_119 = arith.constant 128 : index
    %233 = vector.load %arg3[%c0_118, %c128_119] : memref<128x512xf32, #tpu.memory_space<vmem>>, vector<128x128xf32>
    %cst_120 = arith.constant dense<0.000000e+00> : vector<8x128xf32>
    %234 = tpu.matmul %229, %233, %cst_120 {dimension_numbers = #tpu.dot_dimension_numbers<[1], [0], [0], [1], [0, 0, 1, 1], [], []>} : vector<8x128xf32>, vector<128x128xf32>, vector<8x128xf32> -> vector<8x128xf32>
    %235 = arith.addf %232, %234 : vector<8x128xf32>
    %236 = arith.negf %235 : vector<8x128xf32>
    %237 = math.exp %236 : vector<8x128xf32>
    %cst_121 = arith.constant 1.000000e+00 : f32
    %238 = vector.broadcast %cst_121 : f32 to vector<8x128xf32>
    %239 = arith.addf %238, %237 : vector<8x128xf32>
    %240 = arith.divf %238, %239 : vector<8x128xf32>
    %241 = arith.mulf %240, %216 : vector<8x128xf32>
    %242 = arith.index_cast %c5_i32 : i32 to index
    %c0_122 = arith.constant 0 : index
    %c0_123 = arith.constant 0 : index
    %243 = vector.load %arg2[%242, %c0_122, %c0_123] : memref<8x8x512xf32, #tpu.memory_space<vmem>>, vector<1x8x128xf32>
    %244 = vector.shape_cast %243 : vector<1x8x128xf32> to vector<8x128xf32>
    %c0_124 = arith.constant 0 : index
    %c0_125 = arith.constant 0 : index
    %245 = vector.load %arg3[%c0_124, %c0_125] : memref<128x512xf32, #tpu.memory_space<vmem>>, vector<128x128xf32>
    %cst_126 = arith.constant dense<0.000000e+00> : vector<8x128xf32>
    %246 = tpu.matmul %229, %245, %cst_126 {dimension_numbers = #tpu.dot_dimension_numbers<[1], [0], [0], [1], [0, 0, 1, 1], [], []>} : vector<8x128xf32>, vector<128x128xf32>, vector<8x128xf32> -> vector<8x128xf32>
    %247 = arith.addf %244, %246 : vector<8x128xf32>
    %248 = arith.negf %247 : vector<8x128xf32>
    %249 = math.exp %248 : vector<8x128xf32>
    %cst_127 = arith.constant 1.000000e+00 : f32
    %250 = vector.broadcast %cst_127 : f32 to vector<8x128xf32>
    %251 = arith.addf %250, %249 : vector<8x128xf32>
    %252 = arith.divf %250, %251 : vector<8x128xf32>
    %253 = arith.index_cast %c5_i32 : i32 to index
    %c0_128 = arith.constant 0 : index
    %c256_129 = arith.constant 256 : index
    %254 = vector.load %arg2[%253, %c0_128, %c256_129] : memref<8x8x512xf32, #tpu.memory_space<vmem>>, vector<1x8x128xf32>
    %255 = vector.shape_cast %254 : vector<1x8x128xf32> to vector<8x128xf32>
    %c0_130 = arith.constant 0 : index
    %c256_131 = arith.constant 256 : index
    %256 = vector.load %arg3[%c0_130, %c256_131] : memref<128x512xf32, #tpu.memory_space<vmem>>, vector<128x128xf32>
    %cst_132 = arith.constant dense<0.000000e+00> : vector<8x128xf32>
    %257 = tpu.matmul %229, %256, %cst_132 {dimension_numbers = #tpu.dot_dimension_numbers<[1], [0], [0], [1], [0, 0, 1, 1], [], []>} : vector<8x128xf32>, vector<128x128xf32>, vector<8x128xf32> -> vector<8x128xf32>
    %258 = arith.addf %255, %257 : vector<8x128xf32>
    %259 = math.tanh %258 : vector<8x128xf32>
    %260 = arith.mulf %252, %259 : vector<8x128xf32>
    %261 = arith.addf %241, %260 : vector<8x128xf32>
    %262 = arith.index_cast %c5_i32 : i32 to index
    %c0_133 = arith.constant 0 : index
    %c384_134 = arith.constant 384 : index
    %263 = vector.load %arg2[%262, %c0_133, %c384_134] : memref<8x8x512xf32, #tpu.memory_space<vmem>>, vector<1x8x128xf32>
    %264 = vector.shape_cast %263 : vector<1x8x128xf32> to vector<8x128xf32>
    %c0_135 = arith.constant 0 : index
    %c384_136 = arith.constant 384 : index
    %265 = vector.load %arg3[%c0_135, %c384_136] : memref<128x512xf32, #tpu.memory_space<vmem>>, vector<128x128xf32>
    %cst_137 = arith.constant dense<0.000000e+00> : vector<8x128xf32>
    %266 = tpu.matmul %229, %265, %cst_137 {dimension_numbers = #tpu.dot_dimension_numbers<[1], [0], [0], [1], [0, 0, 1, 1], [], []>} : vector<8x128xf32>, vector<128x128xf32>, vector<8x128xf32> -> vector<8x128xf32>
    %267 = arith.addf %264, %266 : vector<8x128xf32>
    %268 = arith.negf %267 : vector<8x128xf32>
    %269 = math.exp %268 : vector<8x128xf32>
    %cst_138 = arith.constant 1.000000e+00 : f32
    %270 = vector.broadcast %cst_138 : f32 to vector<8x128xf32>
    %271 = arith.addf %270, %269 : vector<8x128xf32>
    %272 = arith.divf %270, %271 : vector<8x128xf32>
    %273 = math.tanh %261 : vector<8x128xf32>
    %274 = arith.mulf %272, %273 : vector<8x128xf32>
    %c6_i32 = arith.constant 6 : i32
    %275 = arith.index_cast %c6_i32 : i32 to index
    %c0_139 = arith.constant 0 : index
    %c128_140 = arith.constant 128 : index
    %276 = vector.load %arg2[%275, %c0_139, %c128_140] : memref<8x8x512xf32, #tpu.memory_space<vmem>>, vector<1x8x128xf32>
    %277 = vector.shape_cast %276 : vector<1x8x128xf32> to vector<8x128xf32>
    %c0_141 = arith.constant 0 : index
    %c128_142 = arith.constant 128 : index
    %278 = vector.load %arg3[%c0_141, %c128_142] : memref<128x512xf32, #tpu.memory_space<vmem>>, vector<128x128xf32>
    %cst_143 = arith.constant dense<0.000000e+00> : vector<8x128xf32>
    %279 = tpu.matmul %274, %278, %cst_143 {dimension_numbers = #tpu.dot_dimension_numbers<[1], [0], [0], [1], [0, 0, 1, 1], [], []>} : vector<8x128xf32>, vector<128x128xf32>, vector<8x128xf32> -> vector<8x128xf32>
    %280 = arith.addf %277, %279 : vector<8x128xf32>
    %281 = arith.negf %280 : vector<8x128xf32>
    %282 = math.exp %281 : vector<8x128xf32>
    %cst_144 = arith.constant 1.000000e+00 : f32
    %283 = vector.broadcast %cst_144 : f32 to vector<8x128xf32>
    %284 = arith.addf %283, %282 : vector<8x128xf32>
    %285 = arith.divf %283, %284 : vector<8x128xf32>
    %286 = arith.mulf %285, %261 : vector<8x128xf32>
    %287 = arith.index_cast %c6_i32 : i32 to index
    %c0_145 = arith.constant 0 : index
    %c0_146 = arith.constant 0 : index
    %288 = vector.load %arg2[%287, %c0_145, %c0_146] : memref<8x8x512xf32, #tpu.memory_space<vmem>>, vector<1x8x128xf32>
    %289 = vector.shape_cast %288 : vector<1x8x128xf32> to vector<8x128xf32>
    %c0_147 = arith.constant 0 : index
    %c0_148 = arith.constant 0 : index
    %290 = vector.load %arg3[%c0_147, %c0_148] : memref<128x512xf32, #tpu.memory_space<vmem>>, vector<128x128xf32>
    %cst_149 = arith.constant dense<0.000000e+00> : vector<8x128xf32>
    %291 = tpu.matmul %274, %290, %cst_149 {dimension_numbers = #tpu.dot_dimension_numbers<[1], [0], [0], [1], [0, 0, 1, 1], [], []>} : vector<8x128xf32>, vector<128x128xf32>, vector<8x128xf32> -> vector<8x128xf32>
    %292 = arith.addf %289, %291 : vector<8x128xf32>
    %293 = arith.negf %292 : vector<8x128xf32>
    %294 = math.exp %293 : vector<8x128xf32>
    %cst_150 = arith.constant 1.000000e+00 : f32
    %295 = vector.broadcast %cst_150 : f32 to vector<8x128xf32>
    %296 = arith.addf %295, %294 : vector<8x128xf32>
    %297 = arith.divf %295, %296 : vector<8x128xf32>
    %298 = arith.index_cast %c6_i32 : i32 to index
    %c0_151 = arith.constant 0 : index
    %c256_152 = arith.constant 256 : index
    %299 = vector.load %arg2[%298, %c0_151, %c256_152] : memref<8x8x512xf32, #tpu.memory_space<vmem>>, vector<1x8x128xf32>
    %300 = vector.shape_cast %299 : vector<1x8x128xf32> to vector<8x128xf32>
    %c0_153 = arith.constant 0 : index
    %c256_154 = arith.constant 256 : index
    %301 = vector.load %arg3[%c0_153, %c256_154] : memref<128x512xf32, #tpu.memory_space<vmem>>, vector<128x128xf32>
    %cst_155 = arith.constant dense<0.000000e+00> : vector<8x128xf32>
    %302 = tpu.matmul %274, %301, %cst_155 {dimension_numbers = #tpu.dot_dimension_numbers<[1], [0], [0], [1], [0, 0, 1, 1], [], []>} : vector<8x128xf32>, vector<128x128xf32>, vector<8x128xf32> -> vector<8x128xf32>
    %303 = arith.addf %300, %302 : vector<8x128xf32>
    %304 = math.tanh %303 : vector<8x128xf32>
    %305 = arith.mulf %297, %304 : vector<8x128xf32>
    %306 = arith.addf %286, %305 : vector<8x128xf32>
    %307 = arith.index_cast %c6_i32 : i32 to index
    %c0_156 = arith.constant 0 : index
    %c384_157 = arith.constant 384 : index
    %308 = vector.load %arg2[%307, %c0_156, %c384_157] : memref<8x8x512xf32, #tpu.memory_space<vmem>>, vector<1x8x128xf32>
    %309 = vector.shape_cast %308 : vector<1x8x128xf32> to vector<8x128xf32>
    %c0_158 = arith.constant 0 : index
    %c384_159 = arith.constant 384 : index
    %310 = vector.load %arg3[%c0_158, %c384_159] : memref<128x512xf32, #tpu.memory_space<vmem>>, vector<128x128xf32>
    %cst_160 = arith.constant dense<0.000000e+00> : vector<8x128xf32>
    %311 = tpu.matmul %274, %310, %cst_160 {dimension_numbers = #tpu.dot_dimension_numbers<[1], [0], [0], [1], [0, 0, 1, 1], [], []>} : vector<8x128xf32>, vector<128x128xf32>, vector<8x128xf32> -> vector<8x128xf32>
    %312 = arith.addf %309, %311 : vector<8x128xf32>
    %313 = arith.negf %312 : vector<8x128xf32>
    %314 = math.exp %313 : vector<8x128xf32>
    %cst_161 = arith.constant 1.000000e+00 : f32
    %315 = vector.broadcast %cst_161 : f32 to vector<8x128xf32>
    %316 = arith.addf %315, %314 : vector<8x128xf32>
    %317 = arith.divf %315, %316 : vector<8x128xf32>
    %318 = math.tanh %306 : vector<8x128xf32>
    %319 = arith.mulf %317, %318 : vector<8x128xf32>
    %c7_i32 = arith.constant 7 : i32
    %320 = arith.index_cast %c7_i32 : i32 to index
    %c0_162 = arith.constant 0 : index
    %c128_163 = arith.constant 128 : index
    %321 = vector.load %arg2[%320, %c0_162, %c128_163] : memref<8x8x512xf32, #tpu.memory_space<vmem>>, vector<1x8x128xf32>
    %322 = vector.shape_cast %321 : vector<1x8x128xf32> to vector<8x128xf32>
    %c0_164 = arith.constant 0 : index
    %c128_165 = arith.constant 128 : index
    %323 = vector.load %arg3[%c0_164, %c128_165] : memref<128x512xf32, #tpu.memory_space<vmem>>, vector<128x128xf32>
    %cst_166 = arith.constant dense<0.000000e+00> : vector<8x128xf32>
    %324 = tpu.matmul %319, %323, %cst_166 {dimension_numbers = #tpu.dot_dimension_numbers<[1], [0], [0], [1], [0, 0, 1, 1], [], []>} : vector<8x128xf32>, vector<128x128xf32>, vector<8x128xf32> -> vector<8x128xf32>
    %325 = arith.addf %322, %324 : vector<8x128xf32>
    %326 = arith.negf %325 : vector<8x128xf32>
    %327 = math.exp %326 : vector<8x128xf32>
    %cst_167 = arith.constant 1.000000e+00 : f32
    %328 = vector.broadcast %cst_167 : f32 to vector<8x128xf32>
    %329 = arith.addf %328, %327 : vector<8x128xf32>
    %330 = arith.divf %328, %329 : vector<8x128xf32>
    %331 = arith.mulf %330, %306 : vector<8x128xf32>
    %332 = arith.index_cast %c7_i32 : i32 to index
    %c0_168 = arith.constant 0 : index
    %c0_169 = arith.constant 0 : index
    %333 = vector.load %arg2[%332, %c0_168, %c0_169] : memref<8x8x512xf32, #tpu.memory_space<vmem>>, vector<1x8x128xf32>
    %334 = vector.shape_cast %333 : vector<1x8x128xf32> to vector<8x128xf32>
    %c0_170 = arith.constant 0 : index
    %c0_171 = arith.constant 0 : index
    %335 = vector.load %arg3[%c0_170, %c0_171] : memref<128x512xf32, #tpu.memory_space<vmem>>, vector<128x128xf32>
    %cst_172 = arith.constant dense<0.000000e+00> : vector<8x128xf32>
    %336 = tpu.matmul %319, %335, %cst_172 {dimension_numbers = #tpu.dot_dimension_numbers<[1], [0], [0], [1], [0, 0, 1, 1], [], []>} : vector<8x128xf32>, vector<128x128xf32>, vector<8x128xf32> -> vector<8x128xf32>
    %337 = arith.addf %334, %336 : vector<8x128xf32>
    %338 = arith.negf %337 : vector<8x128xf32>
    %339 = math.exp %338 : vector<8x128xf32>
    %cst_173 = arith.constant 1.000000e+00 : f32
    %340 = vector.broadcast %cst_173 : f32 to vector<8x128xf32>
    %341 = arith.addf %340, %339 : vector<8x128xf32>
    %342 = arith.divf %340, %341 : vector<8x128xf32>
    %343 = arith.index_cast %c7_i32 : i32 to index
    %c0_174 = arith.constant 0 : index
    %c256_175 = arith.constant 256 : index
    %344 = vector.load %arg2[%343, %c0_174, %c256_175] : memref<8x8x512xf32, #tpu.memory_space<vmem>>, vector<1x8x128xf32>
    %345 = vector.shape_cast %344 : vector<1x8x128xf32> to vector<8x128xf32>
    %c0_176 = arith.constant 0 : index
    %c256_177 = arith.constant 256 : index
    %346 = vector.load %arg3[%c0_176, %c256_177] : memref<128x512xf32, #tpu.memory_space<vmem>>, vector<128x128xf32>
    %cst_178 = arith.constant dense<0.000000e+00> : vector<8x128xf32>
    %347 = tpu.matmul %319, %346, %cst_178 {dimension_numbers = #tpu.dot_dimension_numbers<[1], [0], [0], [1], [0, 0, 1, 1], [], []>} : vector<8x128xf32>, vector<128x128xf32>, vector<8x128xf32> -> vector<8x128xf32>
    %348 = arith.addf %345, %347 : vector<8x128xf32>
    %349 = math.tanh %348 : vector<8x128xf32>
    %350 = arith.mulf %342, %349 : vector<8x128xf32>
    %351 = arith.addf %331, %350 : vector<8x128xf32>
    %352 = arith.index_cast %c7_i32 : i32 to index
    %c0_179 = arith.constant 0 : index
    %c384_180 = arith.constant 384 : index
    %353 = vector.load %arg2[%352, %c0_179, %c384_180] : memref<8x8x512xf32, #tpu.memory_space<vmem>>, vector<1x8x128xf32>
    %354 = vector.shape_cast %353 : vector<1x8x128xf32> to vector<8x128xf32>
    %c0_181 = arith.constant 0 : index
    %c384_182 = arith.constant 384 : index
    %355 = vector.load %arg3[%c0_181, %c384_182] : memref<128x512xf32, #tpu.memory_space<vmem>>, vector<128x128xf32>
    %cst_183 = arith.constant dense<0.000000e+00> : vector<8x128xf32>
    %356 = tpu.matmul %319, %355, %cst_183 {dimension_numbers = #tpu.dot_dimension_numbers<[1], [0], [0], [1], [0, 0, 1, 1], [], []>} : vector<8x128xf32>, vector<128x128xf32>, vector<8x128xf32> -> vector<8x128xf32>
    %357 = arith.addf %354, %356 : vector<8x128xf32>
    %358 = arith.negf %357 : vector<8x128xf32>
    %359 = math.exp %358 : vector<8x128xf32>
    %cst_184 = arith.constant 1.000000e+00 : f32
    %360 = vector.broadcast %cst_184 : f32 to vector<8x128xf32>
    %361 = arith.addf %360, %359 : vector<8x128xf32>
    %362 = arith.divf %360, %361 : vector<8x128xf32>
    %363 = math.tanh %351 : vector<8x128xf32>
    %364 = arith.mulf %362, %363 : vector<8x128xf32>
    %c8_i32 = arith.constant 8 : i32
    %c0_185 = arith.constant 0 : index
    %c0_186 = arith.constant 0 : index
    %365 = vector.load %arg7[%c0_185, %c0_186] : memref<8x128xf32, #tpu.memory_space<vmem>>, vector<8x128xf32>
    tpu.vector_store %arg7[%c0_185, %c0_186], %364 {strides = array<i32>} : memref<8x128xf32, #tpu.memory_space<vmem>>, vector<8x128xf32>,
    %c0_187 = arith.constant 0 : index
    %c0_188 = arith.constant 0 : index
    %366 = vector.load %arg8[%c0_187, %c0_188] : memref<8x128xf32, #tpu.memory_space<vmem>>, vector<8x128xf32>
    tpu.vector_store %arg8[%c0_187, %c0_188], %351 {strides = array<i32>} : memref<8x128xf32, #tpu.memory_space<vmem>>, vector<8x128xf32>,
    %c0_i32_189 = arith.constant 0 : i32
    %367 = arith.cmpi eq, %arg1, %c0_i32_189 : i32
    %368 = arith.extui %367 : i1 to i32
    %c0_i32_190 = arith.constant 0 : i32
    %369 = arith.cmpi ne, %368, %c0_i32_190 : i32
    scf.if %369 {
      %c0_191 = arith.constant 0 : index
      %c0_192 = arith.constant 0 : index
      %370 = vector.load %arg4[%c0_191, %c0_192] : memref<128x128xf32, #tpu.memory_space<vmem>>, vector<128x128xf32>
      %cst_193 = arith.constant dense<0.000000e+00> : vector<8x128xf32>
      %371 = tpu.matmul %364, %370, %cst_193 {dimension_numbers = #tpu.dot_dimension_numbers<[1], [0], [0], [1], [0, 0, 1, 1], [], []>} : vector<8x128xf32>, vector<128x128xf32>, vector<8x128xf32> -> vector<8x128xf32>
      %c0_194 = arith.constant 0 : index
      %c0_195 = arith.constant 0 : index
      %372 = vector.load %arg5[%c0_194, %c0_195] : memref<1x128xf32, #tpu.memory_space<vmem>>, vector<1x128xf32>
      %373 = vector.broadcast %372 : vector<1x128xf32> to vector<8x128xf32>
      %374 = arith.addf %371, %373 : vector<8x128xf32>
      %c0_196 = arith.constant 0 : index
      %c0_197 = arith.constant 0 : index
      %375 = vector.load %arg6[%c0_196, %c0_197] : memref<8x128xf32, #tpu.memory_space<vmem>>, vector<8x128xf32>
      tpu.vector_store %arg6[%c0_196, %c0_197], %374 {strides = array<i32>} : memref<8x128xf32, #tpu.memory_space<vmem>>, vector<8x128xf32>,
    } else {
    }
    return
  }
  func.func @transform_0(%arg0: i32, %arg1: i32) -> (i32, i32, i32) {
    %c0_i32 = arith.constant 0 : i32
    %c0_i32_0 = arith.constant 0 : i32
    return %arg1, %arg0, %c0_i32 : i32, i32, i32
  }
  func.func @transform_1(%arg0: i32, %arg1: i32) -> (i32, i32) {
    %c0_i32 = arith.constant 0 : i32
    %c0_i32_0 = arith.constant 0 : i32
    %c0_i32_1 = arith.constant 0 : i32
    return %c0_i32, %c0_i32_0 : i32, i32
  }
  func.func @transform_2(%arg0: i32, %arg1: i32) -> (i32, i32) {
    %c0_i32 = arith.constant 0 : i32
    %c0_i32_0 = arith.constant 0 : i32
    %c0_i32_1 = arith.constant 0 : i32
    return %c0_i32, %c0_i32_0 : i32, i32
  }
  func.func @transform_3(%arg0: i32, %arg1: i32) -> (i32, i32) {
    %c0_i32 = arith.constant 0 : i32
    %c0_i32_0 = arith.constant 0 : i32
    %c0_i32_1 = arith.constant 0 : i32
    return %c0_i32, %c0_i32_0 : i32, i32
  }
  func.func @transform_4(%arg0: i32, %arg1: i32) -> (i32, i32) {
    %c0_i32 = arith.constant 0 : i32
    %c0_i32_0 = arith.constant 0 : i32
    return %arg0, %c0_i32 : i32, i32
  }
}

module attributes {stable_mosaic.version = 11 : i64} {
  func.func @lstm_net_kernel(%arg0: i32, %arg1: i32, %arg2: memref<8x8x512xf32, #tpu.memory_space<vmem>>, %arg3: memref<128x512xf32, #tpu.memory_space<vmem>>, %arg4: memref<128x128xf32, #tpu.memory_space<vmem>>, %arg5: memref<1x128xf32, #tpu.memory_space<vmem>>, %arg6: memref<8x128xf32, #tpu.memory_space<vmem>>, %arg7: memref<8x128xf32, #tpu.memory_space<vmem>>, %arg8: memref<8x128xf32, #tpu.memory_space<vmem>>) attributes {dimension_semantics = [#tpu.dimension_semantics<parallel>, #tpu.dimension_semantics<arbitrary>], iteration_bounds = array<i64: 1, 1>, scalar_prefetch = 0 : i64, scratch_operands = 2 : i64, tpu.core_type = #tpu.core_type<tc>, window_params = [{transform_indices = @transform_0, window_bounds = array<i64: 8, 8, 512>}, {pipeline_mode = #tpu.pipeline_mode<synchronous>, transform_indices = @transform_1, window_bounds = array<i64: 128, 512>}, {pipeline_mode = #tpu.pipeline_mode<synchronous>, transform_indices = @transform_2, window_bounds = array<i64: 128, 128>}, {pipeline_mode = #tpu.pipeline_mode<synchronous>, transform_indices = @transform_3, window_bounds = array<i64: 1, 128>}, {transform_indices = @transform_4, window_bounds = array<i64: 8, 128>}]} {
    %c0_i32 = arith.constant 0 : i32
    %0 = arith.cmpi eq, %arg1, %c0_i32 : i32
    %1 = arith.extui %0 : i1 to i32
    %c0_i32_0 = arith.constant 0 : i32
    %2 = arith.cmpi ne, %1, %c0_i32_0 : i32
    scf.if %2 {
      %cst_191 = arith.constant 0.000000e+00 : f32
      %370 = vector.broadcast %cst_191 : f32 to vector<8x128xf32>
      %c0_192 = arith.constant 0 : index
      %c0_193 = arith.constant 0 : index
      %371 = vector.load %arg7[%c0_192, %c0_193] : memref<8x128xf32, #tpu.memory_space<vmem>>, vector<8x128xf32>
      tpu.vector_store %arg7[%c0_192, %c0_193], %370 {strides = array<i32>} : memref<8x128xf32, #tpu.memory_space<vmem>>, vector<8x128xf32>,
      %cst_194 = arith.constant 0.000000e+00 : f32
      %372 = vector.broadcast %cst_194 : f32 to vector<8x128xf32>
      %c0_195 = arith.constant 0 : index
      %c0_196 = arith.constant 0 : index
      %373 = vector.load %arg8[%c0_195, %c0_196] : memref<8x128xf32, #tpu.memory_space<vmem>>, vector<8x128xf32>
      tpu.vector_store %arg8[%c0_195, %c0_196], %372 {strides = array<i32>} : memref<8x128xf32, #tpu.memory_space<vmem>>, vector<8x128xf32>,
    } else {
    }
    %c0 = arith.constant 0 : index
    %c0_1 = arith.constant 0 : index
    %3 = vector.load %arg7[%c0, %c0_1] : memref<8x128xf32, #tpu.memory_space<vmem>>, vector<8x128xf32>
    %c0_2 = arith.constant 0 : index
    %c0_3 = arith.constant 0 : index
    %4 = vector.load %arg8[%c0_2, %c0_3] : memref<8x128xf32, #tpu.memory_space<vmem>>, vector<8x128xf32>
    %c0_i32_4 = arith.constant 0 : i32
    %5 = arith.index_cast %c0_i32_4 : i32 to index
    %c0_5 = arith.constant 0 : index
    %c128 = arith.constant 128 : index
    %6 = vector.load %arg2[%5, %c0_5, %c128] : memref<8x8x512xf32, #tpu.memory_space<vmem>>, vector<1x8x128xf32>
    %7 = vector.shape_cast %6 : vector<1x8x128xf32> to vector<8x128xf32>
    %c0_6 = arith.constant 0 : index
    %c128_7 = arith.constant 128 : index
    %8 = vector.load %arg3[%c0_6, %c128_7] : memref<128x512xf32, #tpu.memory_space<vmem>>, vector<128x128xf32>
    %cst = arith.constant dense<0.000000e+00> : vector<8x128xf32>
    %9 = tpu.matmul %3, %8, %cst {dimension_numbers = #tpu.dot_dimension_numbers<[1], [0], [0], [1], [0, 0, 1, 1], [], []>} : vector<8x128xf32>, vector<128x128xf32>, vector<8x128xf32> -> vector<8x128xf32>
    %10 = arith.addf %7, %9 : vector<8x128xf32>
    %11 = arith.negf %10 : vector<8x128xf32>
    %12 = math.exp %11 : vector<8x128xf32>
    %cst_8 = arith.constant 1.000000e+00 : f32
    %13 = vector.broadcast %cst_8 : f32 to vector<8x128xf32>
    %14 = arith.addf %13, %12 : vector<8x128xf32>
    %15 = arith.divf %13, %14 : vector<8x128xf32>
    %16 = arith.mulf %15, %4 : vector<8x128xf32>
    %17 = arith.index_cast %c0_i32_4 : i32 to index
    %c0_9 = arith.constant 0 : index
    %c0_10 = arith.constant 0 : index
    %18 = vector.load %arg2[%17, %c0_9, %c0_10] : memref<8x8x512xf32, #tpu.memory_space<vmem>>, vector<1x8x128xf32>
    %19 = vector.shape_cast %18 : vector<1x8x128xf32> to vector<8x128xf32>
    %c0_11 = arith.constant 0 : index
    %c0_12 = arith.constant 0 : index
    %20 = vector.load %arg3[%c0_11, %c0_12] : memref<128x512xf32, #tpu.memory_space<vmem>>, vector<128x128xf32>
    %cst_13 = arith.constant dense<0.000000e+00> : vector<8x128xf32>
    %21 = tpu.matmul %3, %20, %cst_13 {dimension_numbers = #tpu.dot_dimension_numbers<[1], [0], [0], [1], [0, 0, 1, 1], [], []>} : vector<8x128xf32>, vector<128x128xf32>, vector<8x128xf32> -> vector<8x128xf32>
    %22 = arith.addf %19, %21 : vector<8x128xf32>
    %23 = arith.negf %22 : vector<8x128xf32>
    %24 = math.exp %23 : vector<8x128xf32>
    %cst_14 = arith.constant 1.000000e+00 : f32
    %25 = vector.broadcast %cst_14 : f32 to vector<8x128xf32>
    %26 = arith.addf %25, %24 : vector<8x128xf32>
    %27 = arith.divf %25, %26 : vector<8x128xf32>
    %28 = arith.index_cast %c0_i32_4 : i32 to index
    %c0_15 = arith.constant 0 : index
    %c256 = arith.constant 256 : index
    %29 = vector.load %arg2[%28, %c0_15, %c256] : memref<8x8x512xf32, #tpu.memory_space<vmem>>, vector<1x8x128xf32>
    %30 = vector.shape_cast %29 : vector<1x8x128xf32> to vector<8x128xf32>
    %c0_16 = arith.constant 0 : index
    %c256_17 = arith.constant 256 : index
    %31 = vector.load %arg3[%c0_16, %c256_17] : memref<128x512xf32, #tpu.memory_space<vmem>>, vector<128x128xf32>
    %cst_18 = arith.constant dense<0.000000e+00> : vector<8x128xf32>
    %32 = tpu.matmul %3, %31, %cst_18 {dimension_numbers = #tpu.dot_dimension_numbers<[1], [0], [0], [1], [0, 0, 1, 1], [], []>} : vector<8x128xf32>, vector<128x128xf32>, vector<8x128xf32> -> vector<8x128xf32>
    %33 = arith.addf %30, %32 : vector<8x128xf32>
    %34 = math.tanh %33 : vector<8x128xf32>
    %35 = arith.mulf %27, %34 : vector<8x128xf32>
    %36 = arith.addf %16, %35 : vector<8x128xf32>
    %37 = arith.index_cast %c0_i32_4 : i32 to index
    %c0_19 = arith.constant 0 : index
    %c384 = arith.constant 384 : index
    %38 = vector.load %arg2[%37, %c0_19, %c384] : memref<8x8x512xf32, #tpu.memory_space<vmem>>, vector<1x8x128xf32>
    %39 = vector.shape_cast %38 : vector<1x8x128xf32> to vector<8x128xf32>
    %c0_20 = arith.constant 0 : index
    %c384_21 = arith.constant 384 : index
    %40 = vector.load %arg3[%c0_20, %c384_21] : memref<128x512xf32, #tpu.memory_space<vmem>>, vector<128x128xf32>
    %cst_22 = arith.constant dense<0.000000e+00> : vector<8x128xf32>
    %41 = tpu.matmul %3, %40, %cst_22 {dimension_numbers = #tpu.dot_dimension_numbers<[1], [0], [0], [1], [0, 0, 1, 1], [], []>} : vector<8x128xf32>, vector<128x128xf32>, vector<8x128xf32> -> vector<8x128xf32>
    %42 = arith.addf %39, %41 : vector<8x128xf32>
    %43 = arith.negf %42 : vector<8x128xf32>
    %44 = math.exp %43 : vector<8x128xf32>
    %cst_23 = arith.constant 1.000000e+00 : f32
    %45 = vector.broadcast %cst_23 : f32 to vector<8x128xf32>
    %46 = arith.addf %45, %44 : vector<8x128xf32>
    %47 = arith.divf %45, %46 : vector<8x128xf32>
    %48 = math.tanh %36 : vector<8x128xf32>
    %49 = arith.mulf %47, %48 : vector<8x128xf32>
    %c1_i32 = arith.constant 1 : i32
    %50 = arith.index_cast %c1_i32 : i32 to index
    %c0_24 = arith.constant 0 : index
    %c128_25 = arith.constant 128 : index
    %51 = vector.load %arg2[%50, %c0_24, %c128_25] : memref<8x8x512xf32, #tpu.memory_space<vmem>>, vector<1x8x128xf32>
    %52 = vector.shape_cast %51 : vector<1x8x128xf32> to vector<8x128xf32>
    %c0_26 = arith.constant 0 : index
    %c128_27 = arith.constant 128 : index
    %53 = vector.load %arg3[%c0_26, %c128_27] : memref<128x512xf32, #tpu.memory_space<vmem>>, vector<128x128xf32>
    %cst_28 = arith.constant dense<0.000000e+00> : vector<8x128xf32>
    %54 = tpu.matmul %49, %53, %cst_28 {dimension_numbers = #tpu.dot_dimension_numbers<[1], [0], [0], [1], [0, 0, 1, 1], [], []>} : vector<8x128xf32>, vector<128x128xf32>, vector<8x128xf32> -> vector<8x128xf32>
    %55 = arith.addf %52, %54 : vector<8x128xf32>
    %56 = arith.negf %55 : vector<8x128xf32>
    %57 = math.exp %56 : vector<8x128xf32>
    %cst_29 = arith.constant 1.000000e+00 : f32
    %58 = vector.broadcast %cst_29 : f32 to vector<8x128xf32>
    %59 = arith.addf %58, %57 : vector<8x128xf32>
    %60 = arith.divf %58, %59 : vector<8x128xf32>
    %61 = arith.mulf %60, %36 : vector<8x128xf32>
    %62 = arith.index_cast %c1_i32 : i32 to index
    %c0_30 = arith.constant 0 : index
    %c0_31 = arith.constant 0 : index
    %63 = vector.load %arg2[%62, %c0_30, %c0_31] : memref<8x8x512xf32, #tpu.memory_space<vmem>>, vector<1x8x128xf32>
    %64 = vector.shape_cast %63 : vector<1x8x128xf32> to vector<8x128xf32>
    %c0_32 = arith.constant 0 : index
    %c0_33 = arith.constant 0 : index
    %65 = vector.load %arg3[%c0_32, %c0_33] : memref<128x512xf32, #tpu.memory_space<vmem>>, vector<128x128xf32>
    %cst_34 = arith.constant dense<0.000000e+00> : vector<8x128xf32>
    %66 = tpu.matmul %49, %65, %cst_34 {dimension_numbers = #tpu.dot_dimension_numbers<[1], [0], [0], [1], [0, 0, 1, 1], [], []>} : vector<8x128xf32>, vector<128x128xf32>, vector<8x128xf32> -> vector<8x128xf32>
    %67 = arith.addf %64, %66 : vector<8x128xf32>
    %68 = arith.negf %67 : vector<8x128xf32>
    %69 = math.exp %68 : vector<8x128xf32>
    %cst_35 = arith.constant 1.000000e+00 : f32
    %70 = vector.broadcast %cst_35 : f32 to vector<8x128xf32>
    %71 = arith.addf %70, %69 : vector<8x128xf32>
    %72 = arith.divf %70, %71 : vector<8x128xf32>
    %73 = arith.index_cast %c1_i32 : i32 to index
    %c0_36 = arith.constant 0 : index
    %c256_37 = arith.constant 256 : index
    %74 = vector.load %arg2[%73, %c0_36, %c256_37] : memref<8x8x512xf32, #tpu.memory_space<vmem>>, vector<1x8x128xf32>
    %75 = vector.shape_cast %74 : vector<1x8x128xf32> to vector<8x128xf32>
    %c0_38 = arith.constant 0 : index
    %c256_39 = arith.constant 256 : index
    %76 = vector.load %arg3[%c0_38, %c256_39] : memref<128x512xf32, #tpu.memory_space<vmem>>, vector<128x128xf32>
    %cst_40 = arith.constant dense<0.000000e+00> : vector<8x128xf32>
    %77 = tpu.matmul %49, %76, %cst_40 {dimension_numbers = #tpu.dot_dimension_numbers<[1], [0], [0], [1], [0, 0, 1, 1], [], []>} : vector<8x128xf32>, vector<128x128xf32>, vector<8x128xf32> -> vector<8x128xf32>
    %78 = arith.addf %75, %77 : vector<8x128xf32>
    %79 = math.tanh %78 : vector<8x128xf32>
    %80 = arith.mulf %72, %79 : vector<8x128xf32>
    %81 = arith.addf %61, %80 : vector<8x128xf32>
    %82 = arith.index_cast %c1_i32 : i32 to index
    %c0_41 = arith.constant 0 : index
    %c384_42 = arith.constant 384 : index
    %83 = vector.load %arg2[%82, %c0_41, %c384_42] : memref<8x8x512xf32, #tpu.memory_space<vmem>>, vector<1x8x128xf32>
    %84 = vector.shape_cast %83 : vector<1x8x128xf32> to vector<8x128xf32>
    %c0_43 = arith.constant 0 : index
    %c384_44 = arith.constant 384 : index
    %85 = vector.load %arg3[%c0_43, %c384_44] : memref<128x512xf32, #tpu.memory_space<vmem>>, vector<128x128xf32>
    %cst_45 = arith.constant dense<0.000000e+00> : vector<8x128xf32>
    %86 = tpu.matmul %49, %85, %cst_45 {dimension_numbers = #tpu.dot_dimension_numbers<[1], [0], [0], [1], [0, 0, 1, 1], [], []>} : vector<8x128xf32>, vector<128x128xf32>, vector<8x128xf32> -> vector<8x128xf32>
    %87 = arith.addf %84, %86 : vector<8x128xf32>
    %88 = arith.negf %87 : vector<8x128xf32>
    %89 = math.exp %88 : vector<8x128xf32>
    %cst_46 = arith.constant 1.000000e+00 : f32
    %90 = vector.broadcast %cst_46 : f32 to vector<8x128xf32>
    %91 = arith.addf %90, %89 : vector<8x128xf32>
    %92 = arith.divf %90, %91 : vector<8x128xf32>
    %93 = math.tanh %81 : vector<8x128xf32>
    %94 = arith.mulf %92, %93 : vector<8x128xf32>
    %c2_i32 = arith.constant 2 : i32
    %95 = arith.index_cast %c2_i32 : i32 to index
    %c0_47 = arith.constant 0 : index
    %c128_48 = arith.constant 128 : index
    %96 = vector.load %arg2[%95, %c0_47, %c128_48] : memref<8x8x512xf32, #tpu.memory_space<vmem>>, vector<1x8x128xf32>
    %97 = vector.shape_cast %96 : vector<1x8x128xf32> to vector<8x128xf32>
    %c0_49 = arith.constant 0 : index
    %c128_50 = arith.constant 128 : index
    %98 = vector.load %arg3[%c0_49, %c128_50] : memref<128x512xf32, #tpu.memory_space<vmem>>, vector<128x128xf32>
    %cst_51 = arith.constant dense<0.000000e+00> : vector<8x128xf32>
    %99 = tpu.matmul %94, %98, %cst_51 {dimension_numbers = #tpu.dot_dimension_numbers<[1], [0], [0], [1], [0, 0, 1, 1], [], []>} : vector<8x128xf32>, vector<128x128xf32>, vector<8x128xf32> -> vector<8x128xf32>
    %100 = arith.addf %97, %99 : vector<8x128xf32>
    %101 = arith.negf %100 : vector<8x128xf32>
    %102 = math.exp %101 : vector<8x128xf32>
    %cst_52 = arith.constant 1.000000e+00 : f32
    %103 = vector.broadcast %cst_52 : f32 to vector<8x128xf32>
    %104 = arith.addf %103, %102 : vector<8x128xf32>
    %105 = arith.divf %103, %104 : vector<8x128xf32>
    %106 = arith.mulf %105, %81 : vector<8x128xf32>
    %107 = arith.index_cast %c2_i32 : i32 to index
    %c0_53 = arith.constant 0 : index
    %c0_54 = arith.constant 0 : index
    %108 = vector.load %arg2[%107, %c0_53, %c0_54] : memref<8x8x512xf32, #tpu.memory_space<vmem>>, vector<1x8x128xf32>
    %109 = vector.shape_cast %108 : vector<1x8x128xf32> to vector<8x128xf32>
    %c0_55 = arith.constant 0 : index
    %c0_56 = arith.constant 0 : index
    %110 = vector.load %arg3[%c0_55, %c0_56] : memref<128x512xf32, #tpu.memory_space<vmem>>, vector<128x128xf32>
    %cst_57 = arith.constant dense<0.000000e+00> : vector<8x128xf32>
    %111 = tpu.matmul %94, %110, %cst_57 {dimension_numbers = #tpu.dot_dimension_numbers<[1], [0], [0], [1], [0, 0, 1, 1], [], []>} : vector<8x128xf32>, vector<128x128xf32>, vector<8x128xf32> -> vector<8x128xf32>
    %112 = arith.addf %109, %111 : vector<8x128xf32>
    %113 = arith.negf %112 : vector<8x128xf32>
    %114 = math.exp %113 : vector<8x128xf32>
    %cst_58 = arith.constant 1.000000e+00 : f32
    %115 = vector.broadcast %cst_58 : f32 to vector<8x128xf32>
    %116 = arith.addf %115, %114 : vector<8x128xf32>
    %117 = arith.divf %115, %116 : vector<8x128xf32>
    %118 = arith.index_cast %c2_i32 : i32 to index
    %c0_59 = arith.constant 0 : index
    %c256_60 = arith.constant 256 : index
    %119 = vector.load %arg2[%118, %c0_59, %c256_60] : memref<8x8x512xf32, #tpu.memory_space<vmem>>, vector<1x8x128xf32>
    %120 = vector.shape_cast %119 : vector<1x8x128xf32> to vector<8x128xf32>
    %c0_61 = arith.constant 0 : index
    %c256_62 = arith.constant 256 : index
    %121 = vector.load %arg3[%c0_61, %c256_62] : memref<128x512xf32, #tpu.memory_space<vmem>>, vector<128x128xf32>
    %cst_63 = arith.constant dense<0.000000e+00> : vector<8x128xf32>
    %122 = tpu.matmul %94, %121, %cst_63 {dimension_numbers = #tpu.dot_dimension_numbers<[1], [0], [0], [1], [0, 0, 1, 1], [], []>} : vector<8x128xf32>, vector<128x128xf32>, vector<8x128xf32> -> vector<8x128xf32>
    %123 = arith.addf %120, %122 : vector<8x128xf32>
    %124 = math.tanh %123 : vector<8x128xf32>
    %125 = arith.mulf %117, %124 : vector<8x128xf32>
    %126 = arith.addf %106, %125 : vector<8x128xf32>
    %127 = arith.index_cast %c2_i32 : i32 to index
    %c0_64 = arith.constant 0 : index
    %c384_65 = arith.constant 384 : index
    %128 = vector.load %arg2[%127, %c0_64, %c384_65] : memref<8x8x512xf32, #tpu.memory_space<vmem>>, vector<1x8x128xf32>
    %129 = vector.shape_cast %128 : vector<1x8x128xf32> to vector<8x128xf32>
    %c0_66 = arith.constant 0 : index
    %c384_67 = arith.constant 384 : index
    %130 = vector.load %arg3[%c0_66, %c384_67] : memref<128x512xf32, #tpu.memory_space<vmem>>, vector<128x128xf32>
    %cst_68 = arith.constant dense<0.000000e+00> : vector<8x128xf32>
    %131 = tpu.matmul %94, %130, %cst_68 {dimension_numbers = #tpu.dot_dimension_numbers<[1], [0], [0], [1], [0, 0, 1, 1], [], []>} : vector<8x128xf32>, vector<128x128xf32>, vector<8x128xf32> -> vector<8x128xf32>
    %132 = arith.addf %129, %131 : vector<8x128xf32>
    %133 = arith.negf %132 : vector<8x128xf32>
    %134 = math.exp %133 : vector<8x128xf32>
    %cst_69 = arith.constant 1.000000e+00 : f32
    %135 = vector.broadcast %cst_69 : f32 to vector<8x128xf32>
    %136 = arith.addf %135, %134 : vector<8x128xf32>
    %137 = arith.divf %135, %136 : vector<8x128xf32>
    %138 = math.tanh %126 : vector<8x128xf32>
    %139 = arith.mulf %137, %138 : vector<8x128xf32>
    %c3_i32 = arith.constant 3 : i32
    %140 = arith.index_cast %c3_i32 : i32 to index
    %c0_70 = arith.constant 0 : index
    %c128_71 = arith.constant 128 : index
    %141 = vector.load %arg2[%140, %c0_70, %c128_71] : memref<8x8x512xf32, #tpu.memory_space<vmem>>, vector<1x8x128xf32>
    %142 = vector.shape_cast %141 : vector<1x8x128xf32> to vector<8x128xf32>
    %c0_72 = arith.constant 0 : index
    %c128_73 = arith.constant 128 : index
    %143 = vector.load %arg3[%c0_72, %c128_73] : memref<128x512xf32, #tpu.memory_space<vmem>>, vector<128x128xf32>
    %cst_74 = arith.constant dense<0.000000e+00> : vector<8x128xf32>
    %144 = tpu.matmul %139, %143, %cst_74 {dimension_numbers = #tpu.dot_dimension_numbers<[1], [0], [0], [1], [0, 0, 1, 1], [], []>} : vector<8x128xf32>, vector<128x128xf32>, vector<8x128xf32> -> vector<8x128xf32>
    %145 = arith.addf %142, %144 : vector<8x128xf32>
    %146 = arith.negf %145 : vector<8x128xf32>
    %147 = math.exp %146 : vector<8x128xf32>
    %cst_75 = arith.constant 1.000000e+00 : f32
    %148 = vector.broadcast %cst_75 : f32 to vector<8x128xf32>
    %149 = arith.addf %148, %147 : vector<8x128xf32>
    %150 = arith.divf %148, %149 : vector<8x128xf32>
    %151 = arith.mulf %150, %126 : vector<8x128xf32>
    %152 = arith.index_cast %c3_i32 : i32 to index
    %c0_76 = arith.constant 0 : index
    %c0_77 = arith.constant 0 : index
    %153 = vector.load %arg2[%152, %c0_76, %c0_77] : memref<8x8x512xf32, #tpu.memory_space<vmem>>, vector<1x8x128xf32>
    %154 = vector.shape_cast %153 : vector<1x8x128xf32> to vector<8x128xf32>
    %c0_78 = arith.constant 0 : index
    %c0_79 = arith.constant 0 : index
    %155 = vector.load %arg3[%c0_78, %c0_79] : memref<128x512xf32, #tpu.memory_space<vmem>>, vector<128x128xf32>
    %cst_80 = arith.constant dense<0.000000e+00> : vector<8x128xf32>
    %156 = tpu.matmul %139, %155, %cst_80 {dimension_numbers = #tpu.dot_dimension_numbers<[1], [0], [0], [1], [0, 0, 1, 1], [], []>} : vector<8x128xf32>, vector<128x128xf32>, vector<8x128xf32> -> vector<8x128xf32>
    %157 = arith.addf %154, %156 : vector<8x128xf32>
    %158 = arith.negf %157 : vector<8x128xf32>
    %159 = math.exp %158 : vector<8x128xf32>
    %cst_81 = arith.constant 1.000000e+00 : f32
    %160 = vector.broadcast %cst_81 : f32 to vector<8x128xf32>
    %161 = arith.addf %160, %159 : vector<8x128xf32>
    %162 = arith.divf %160, %161 : vector<8x128xf32>
    %163 = arith.index_cast %c3_i32 : i32 to index
    %c0_82 = arith.constant 0 : index
    %c256_83 = arith.constant 256 : index
    %164 = vector.load %arg2[%163, %c0_82, %c256_83] : memref<8x8x512xf32, #tpu.memory_space<vmem>>, vector<1x8x128xf32>
    %165 = vector.shape_cast %164 : vector<1x8x128xf32> to vector<8x128xf32>
    %c0_84 = arith.constant 0 : index
    %c256_85 = arith.constant 256 : index
    %166 = vector.load %arg3[%c0_84, %c256_85] : memref<128x512xf32, #tpu.memory_space<vmem>>, vector<128x128xf32>
    %cst_86 = arith.constant dense<0.000000e+00> : vector<8x128xf32>
    %167 = tpu.matmul %139, %166, %cst_86 {dimension_numbers = #tpu.dot_dimension_numbers<[1], [0], [0], [1], [0, 0, 1, 1], [], []>} : vector<8x128xf32>, vector<128x128xf32>, vector<8x128xf32> -> vector<8x128xf32>
    %168 = arith.addf %165, %167 : vector<8x128xf32>
    %169 = math.tanh %168 : vector<8x128xf32>
    %170 = arith.mulf %162, %169 : vector<8x128xf32>
    %171 = arith.addf %151, %170 : vector<8x128xf32>
    %172 = arith.index_cast %c3_i32 : i32 to index
    %c0_87 = arith.constant 0 : index
    %c384_88 = arith.constant 384 : index
    %173 = vector.load %arg2[%172, %c0_87, %c384_88] : memref<8x8x512xf32, #tpu.memory_space<vmem>>, vector<1x8x128xf32>
    %174 = vector.shape_cast %173 : vector<1x8x128xf32> to vector<8x128xf32>
    %c0_89 = arith.constant 0 : index
    %c384_90 = arith.constant 384 : index
    %175 = vector.load %arg3[%c0_89, %c384_90] : memref<128x512xf32, #tpu.memory_space<vmem>>, vector<128x128xf32>
    %cst_91 = arith.constant dense<0.000000e+00> : vector<8x128xf32>
    %176 = tpu.matmul %139, %175, %cst_91 {dimension_numbers = #tpu.dot_dimension_numbers<[1], [0], [0], [1], [0, 0, 1, 1], [], []>} : vector<8x128xf32>, vector<128x128xf32>, vector<8x128xf32> -> vector<8x128xf32>
    %177 = arith.addf %174, %176 : vector<8x128xf32>
    %178 = arith.negf %177 : vector<8x128xf32>
    %179 = math.exp %178 : vector<8x128xf32>
    %cst_92 = arith.constant 1.000000e+00 : f32
    %180 = vector.broadcast %cst_92 : f32 to vector<8x128xf32>
    %181 = arith.addf %180, %179 : vector<8x128xf32>
    %182 = arith.divf %180, %181 : vector<8x128xf32>
    %183 = math.tanh %171 : vector<8x128xf32>
    %184 = arith.mulf %182, %183 : vector<8x128xf32>
    %c4_i32 = arith.constant 4 : i32
    %185 = arith.index_cast %c4_i32 : i32 to index
    %c0_93 = arith.constant 0 : index
    %c128_94 = arith.constant 128 : index
    %186 = vector.load %arg2[%185, %c0_93, %c128_94] : memref<8x8x512xf32, #tpu.memory_space<vmem>>, vector<1x8x128xf32>
    %187 = vector.shape_cast %186 : vector<1x8x128xf32> to vector<8x128xf32>
    %c0_95 = arith.constant 0 : index
    %c128_96 = arith.constant 128 : index
    %188 = vector.load %arg3[%c0_95, %c128_96] : memref<128x512xf32, #tpu.memory_space<vmem>>, vector<128x128xf32>
    %cst_97 = arith.constant dense<0.000000e+00> : vector<8x128xf32>
    %189 = tpu.matmul %184, %188, %cst_97 {dimension_numbers = #tpu.dot_dimension_numbers<[1], [0], [0], [1], [0, 0, 1, 1], [], []>} : vector<8x128xf32>, vector<128x128xf32>, vector<8x128xf32> -> vector<8x128xf32>
    %190 = arith.addf %187, %189 : vector<8x128xf32>
    %191 = arith.negf %190 : vector<8x128xf32>
    %192 = math.exp %191 : vector<8x128xf32>
    %cst_98 = arith.constant 1.000000e+00 : f32
    %193 = vector.broadcast %cst_98 : f32 to vector<8x128xf32>
    %194 = arith.addf %193, %192 : vector<8x128xf32>
    %195 = arith.divf %193, %194 : vector<8x128xf32>
    %196 = arith.mulf %195, %171 : vector<8x128xf32>
    %197 = arith.index_cast %c4_i32 : i32 to index
    %c0_99 = arith.constant 0 : index
    %c0_100 = arith.constant 0 : index
    %198 = vector.load %arg2[%197, %c0_99, %c0_100] : memref<8x8x512xf32, #tpu.memory_space<vmem>>, vector<1x8x128xf32>
    %199 = vector.shape_cast %198 : vector<1x8x128xf32> to vector<8x128xf32>
    %c0_101 = arith.constant 0 : index
    %c0_102 = arith.constant 0 : index
    %200 = vector.load %arg3[%c0_101, %c0_102] : memref<128x512xf32, #tpu.memory_space<vmem>>, vector<128x128xf32>
    %cst_103 = arith.constant dense<0.000000e+00> : vector<8x128xf32>
    %201 = tpu.matmul %184, %200, %cst_103 {dimension_numbers = #tpu.dot_dimension_numbers<[1], [0], [0], [1], [0, 0, 1, 1], [], []>} : vector<8x128xf32>, vector<128x128xf32>, vector<8x128xf32> -> vector<8x128xf32>
    %202 = arith.addf %199, %201 : vector<8x128xf32>
    %203 = arith.negf %202 : vector<8x128xf32>
    %204 = math.exp %203 : vector<8x128xf32>
    %cst_104 = arith.constant 1.000000e+00 : f32
    %205 = vector.broadcast %cst_104 : f32 to vector<8x128xf32>
    %206 = arith.addf %205, %204 : vector<8x128xf32>
    %207 = arith.divf %205, %206 : vector<8x128xf32>
    %208 = arith.index_cast %c4_i32 : i32 to index
    %c0_105 = arith.constant 0 : index
    %c256_106 = arith.constant 256 : index
    %209 = vector.load %arg2[%208, %c0_105, %c256_106] : memref<8x8x512xf32, #tpu.memory_space<vmem>>, vector<1x8x128xf32>
    %210 = vector.shape_cast %209 : vector<1x8x128xf32> to vector<8x128xf32>
    %c0_107 = arith.constant 0 : index
    %c256_108 = arith.constant 256 : index
    %211 = vector.load %arg3[%c0_107, %c256_108] : memref<128x512xf32, #tpu.memory_space<vmem>>, vector<128x128xf32>
    %cst_109 = arith.constant dense<0.000000e+00> : vector<8x128xf32>
    %212 = tpu.matmul %184, %211, %cst_109 {dimension_numbers = #tpu.dot_dimension_numbers<[1], [0], [0], [1], [0, 0, 1, 1], [], []>} : vector<8x128xf32>, vector<128x128xf32>, vector<8x128xf32> -> vector<8x128xf32>
    %213 = arith.addf %210, %212 : vector<8x128xf32>
    %214 = math.tanh %213 : vector<8x128xf32>
    %215 = arith.mulf %207, %214 : vector<8x128xf32>
    %216 = arith.addf %196, %215 : vector<8x128xf32>
    %217 = arith.index_cast %c4_i32 : i32 to index
    %c0_110 = arith.constant 0 : index
    %c384_111 = arith.constant 384 : index
    %218 = vector.load %arg2[%217, %c0_110, %c384_111] : memref<8x8x512xf32, #tpu.memory_space<vmem>>, vector<1x8x128xf32>
    %219 = vector.shape_cast %218 : vector<1x8x128xf32> to vector<8x128xf32>
    %c0_112 = arith.constant 0 : index
    %c384_113 = arith.constant 384 : index
    %220 = vector.load %arg3[%c0_112, %c384_113] : memref<128x512xf32, #tpu.memory_space<vmem>>, vector<128x128xf32>
    %cst_114 = arith.constant dense<0.000000e+00> : vector<8x128xf32>
    %221 = tpu.matmul %184, %220, %cst_114 {dimension_numbers = #tpu.dot_dimension_numbers<[1], [0], [0], [1], [0, 0, 1, 1], [], []>} : vector<8x128xf32>, vector<128x128xf32>, vector<8x128xf32> -> vector<8x128xf32>
    %222 = arith.addf %219, %221 : vector<8x128xf32>
    %223 = arith.negf %222 : vector<8x128xf32>
    %224 = math.exp %223 : vector<8x128xf32>
    %cst_115 = arith.constant 1.000000e+00 : f32
    %225 = vector.broadcast %cst_115 : f32 to vector<8x128xf32>
    %226 = arith.addf %225, %224 : vector<8x128xf32>
    %227 = arith.divf %225, %226 : vector<8x128xf32>
    %228 = math.tanh %216 : vector<8x128xf32>
    %229 = arith.mulf %227, %228 : vector<8x128xf32>
    %c5_i32 = arith.constant 5 : i32
    %230 = arith.index_cast %c5_i32 : i32 to index
    %c0_116 = arith.constant 0 : index
    %c128_117 = arith.constant 128 : index
    %231 = vector.load %arg2[%230, %c0_116, %c128_117] : memref<8x8x512xf32, #tpu.memory_space<vmem>>, vector<1x8x128xf32>
    %232 = vector.shape_cast %231 : vector<1x8x128xf32> to vector<8x128xf32>
    %c0_118 = arith.constant 0 : index
    %c128_119 = arith.constant 128 : index
    %233 = vector.load %arg3[%c0_118, %c128_119] : memref<128x512xf32, #tpu.memory_space<vmem>>, vector<128x128xf32>
    %cst_120 = arith.constant dense<0.000000e+00> : vector<8x128xf32>
    %234 = tpu.matmul %229, %233, %cst_120 {dimension_numbers = #tpu.dot_dimension_numbers<[1], [0], [0], [1], [0, 0, 1, 1], [], []>} : vector<8x128xf32>, vector<128x128xf32>, vector<8x128xf32> -> vector<8x128xf32>
    %235 = arith.addf %232, %234 : vector<8x128xf32>
    %236 = arith.negf %235 : vector<8x128xf32>
    %237 = math.exp %236 : vector<8x128xf32>
    %cst_121 = arith.constant 1.000000e+00 : f32
    %238 = vector.broadcast %cst_121 : f32 to vector<8x128xf32>
    %239 = arith.addf %238, %237 : vector<8x128xf32>
    %240 = arith.divf %238, %239 : vector<8x128xf32>
    %241 = arith.mulf %240, %216 : vector<8x128xf32>
    %242 = arith.index_cast %c5_i32 : i32 to index
    %c0_122 = arith.constant 0 : index
    %c0_123 = arith.constant 0 : index
    %243 = vector.load %arg2[%242, %c0_122, %c0_123] : memref<8x8x512xf32, #tpu.memory_space<vmem>>, vector<1x8x128xf32>
    %244 = vector.shape_cast %243 : vector<1x8x128xf32> to vector<8x128xf32>
    %c0_124 = arith.constant 0 : index
    %c0_125 = arith.constant 0 : index
    %245 = vector.load %arg3[%c0_124, %c0_125] : memref<128x512xf32, #tpu.memory_space<vmem>>, vector<128x128xf32>
    %cst_126 = arith.constant dense<0.000000e+00> : vector<8x128xf32>
    %246 = tpu.matmul %229, %245, %cst_126 {dimension_numbers = #tpu.dot_dimension_numbers<[1], [0], [0], [1], [0, 0, 1, 1], [], []>} : vector<8x128xf32>, vector<128x128xf32>, vector<8x128xf32> -> vector<8x128xf32>
    %247 = arith.addf %244, %246 : vector<8x128xf32>
    %248 = arith.negf %247 : vector<8x128xf32>
    %249 = math.exp %248 : vector<8x128xf32>
    %cst_127 = arith.constant 1.000000e+00 : f32
    %250 = vector.broadcast %cst_127 : f32 to vector<8x128xf32>
    %251 = arith.addf %250, %249 : vector<8x128xf32>
    %252 = arith.divf %250, %251 : vector<8x128xf32>
    %253 = arith.index_cast %c5_i32 : i32 to index
    %c0_128 = arith.constant 0 : index
    %c256_129 = arith.constant 256 : index
    %254 = vector.load %arg2[%253, %c0_128, %c256_129] : memref<8x8x512xf32, #tpu.memory_space<vmem>>, vector<1x8x128xf32>
    %255 = vector.shape_cast %254 : vector<1x8x128xf32> to vector<8x128xf32>
    %c0_130 = arith.constant 0 : index
    %c256_131 = arith.constant 256 : index
    %256 = vector.load %arg3[%c0_130, %c256_131] : memref<128x512xf32, #tpu.memory_space<vmem>>, vector<128x128xf32>
    %cst_132 = arith.constant dense<0.000000e+00> : vector<8x128xf32>
    %257 = tpu.matmul %229, %256, %cst_132 {dimension_numbers = #tpu.dot_dimension_numbers<[1], [0], [0], [1], [0, 0, 1, 1], [], []>} : vector<8x128xf32>, vector<128x128xf32>, vector<8x128xf32> -> vector<8x128xf32>
    %258 = arith.addf %255, %257 : vector<8x128xf32>
    %259 = math.tanh %258 : vector<8x128xf32>
    %260 = arith.mulf %252, %259 : vector<8x128xf32>
    %261 = arith.addf %241, %260 : vector<8x128xf32>
    %262 = arith.index_cast %c5_i32 : i32 to index
    %c0_133 = arith.constant 0 : index
    %c384_134 = arith.constant 384 : index
    %263 = vector.load %arg2[%262, %c0_133, %c384_134] : memref<8x8x512xf32, #tpu.memory_space<vmem>>, vector<1x8x128xf32>
    %264 = vector.shape_cast %263 : vector<1x8x128xf32> to vector<8x128xf32>
    %c0_135 = arith.constant 0 : index
    %c384_136 = arith.constant 384 : index
    %265 = vector.load %arg3[%c0_135, %c384_136] : memref<128x512xf32, #tpu.memory_space<vmem>>, vector<128x128xf32>
    %cst_137 = arith.constant dense<0.000000e+00> : vector<8x128xf32>
    %266 = tpu.matmul %229, %265, %cst_137 {dimension_numbers = #tpu.dot_dimension_numbers<[1], [0], [0], [1], [0, 0, 1, 1], [], []>} : vector<8x128xf32>, vector<128x128xf32>, vector<8x128xf32> -> vector<8x128xf32>
    %267 = arith.addf %264, %266 : vector<8x128xf32>
    %268 = arith.negf %267 : vector<8x128xf32>
    %269 = math.exp %268 : vector<8x128xf32>
    %cst_138 = arith.constant 1.000000e+00 : f32
    %270 = vector.broadcast %cst_138 : f32 to vector<8x128xf32>
    %271 = arith.addf %270, %269 : vector<8x128xf32>
    %272 = arith.divf %270, %271 : vector<8x128xf32>
    %273 = math.tanh %261 : vector<8x128xf32>
    %274 = arith.mulf %272, %273 : vector<8x128xf32>
    %c6_i32 = arith.constant 6 : i32
    %275 = arith.index_cast %c6_i32 : i32 to index
    %c0_139 = arith.constant 0 : index
    %c128_140 = arith.constant 128 : index
    %276 = vector.load %arg2[%275, %c0_139, %c128_140] : memref<8x8x512xf32, #tpu.memory_space<vmem>>, vector<1x8x128xf32>
    %277 = vector.shape_cast %276 : vector<1x8x128xf32> to vector<8x128xf32>
    %c0_141 = arith.constant 0 : index
    %c128_142 = arith.constant 128 : index
    %278 = vector.load %arg3[%c0_141, %c128_142] : memref<128x512xf32, #tpu.memory_space<vmem>>, vector<128x128xf32>
    %cst_143 = arith.constant dense<0.000000e+00> : vector<8x128xf32>
    %279 = tpu.matmul %274, %278, %cst_143 {dimension_numbers = #tpu.dot_dimension_numbers<[1], [0], [0], [1], [0, 0, 1, 1], [], []>} : vector<8x128xf32>, vector<128x128xf32>, vector<8x128xf32> -> vector<8x128xf32>
    %280 = arith.addf %277, %279 : vector<8x128xf32>
    %281 = arith.negf %280 : vector<8x128xf32>
    %282 = math.exp %281 : vector<8x128xf32>
    %cst_144 = arith.constant 1.000000e+00 : f32
    %283 = vector.broadcast %cst_144 : f32 to vector<8x128xf32>
    %284 = arith.addf %283, %282 : vector<8x128xf32>
    %285 = arith.divf %283, %284 : vector<8x128xf32>
    %286 = arith.mulf %285, %261 : vector<8x128xf32>
    %287 = arith.index_cast %c6_i32 : i32 to index
    %c0_145 = arith.constant 0 : index
    %c0_146 = arith.constant 0 : index
    %288 = vector.load %arg2[%287, %c0_145, %c0_146] : memref<8x8x512xf32, #tpu.memory_space<vmem>>, vector<1x8x128xf32>
    %289 = vector.shape_cast %288 : vector<1x8x128xf32> to vector<8x128xf32>
    %c0_147 = arith.constant 0 : index
    %c0_148 = arith.constant 0 : index
    %290 = vector.load %arg3[%c0_147, %c0_148] : memref<128x512xf32, #tpu.memory_space<vmem>>, vector<128x128xf32>
    %cst_149 = arith.constant dense<0.000000e+00> : vector<8x128xf32>
    %291 = tpu.matmul %274, %290, %cst_149 {dimension_numbers = #tpu.dot_dimension_numbers<[1], [0], [0], [1], [0, 0, 1, 1], [], []>} : vector<8x128xf32>, vector<128x128xf32>, vector<8x128xf32> -> vector<8x128xf32>
    %292 = arith.addf %289, %291 : vector<8x128xf32>
    %293 = arith.negf %292 : vector<8x128xf32>
    %294 = math.exp %293 : vector<8x128xf32>
    %cst_150 = arith.constant 1.000000e+00 : f32
    %295 = vector.broadcast %cst_150 : f32 to vector<8x128xf32>
    %296 = arith.addf %295, %294 : vector<8x128xf32>
    %297 = arith.divf %295, %296 : vector<8x128xf32>
    %298 = arith.index_cast %c6_i32 : i32 to index
    %c0_151 = arith.constant 0 : index
    %c256_152 = arith.constant 256 : index
    %299 = vector.load %arg2[%298, %c0_151, %c256_152] : memref<8x8x512xf32, #tpu.memory_space<vmem>>, vector<1x8x128xf32>
    %300 = vector.shape_cast %299 : vector<1x8x128xf32> to vector<8x128xf32>
    %c0_153 = arith.constant 0 : index
    %c256_154 = arith.constant 256 : index
    %301 = vector.load %arg3[%c0_153, %c256_154] : memref<128x512xf32, #tpu.memory_space<vmem>>, vector<128x128xf32>
    %cst_155 = arith.constant dense<0.000000e+00> : vector<8x128xf32>
    %302 = tpu.matmul %274, %301, %cst_155 {dimension_numbers = #tpu.dot_dimension_numbers<[1], [0], [0], [1], [0, 0, 1, 1], [], []>} : vector<8x128xf32>, vector<128x128xf32>, vector<8x128xf32> -> vector<8x128xf32>
    %303 = arith.addf %300, %302 : vector<8x128xf32>
    %304 = math.tanh %303 : vector<8x128xf32>
    %305 = arith.mulf %297, %304 : vector<8x128xf32>
    %306 = arith.addf %286, %305 : vector<8x128xf32>
    %307 = arith.index_cast %c6_i32 : i32 to index
    %c0_156 = arith.constant 0 : index
    %c384_157 = arith.constant 384 : index
    %308 = vector.load %arg2[%307, %c0_156, %c384_157] : memref<8x8x512xf32, #tpu.memory_space<vmem>>, vector<1x8x128xf32>
    %309 = vector.shape_cast %308 : vector<1x8x128xf32> to vector<8x128xf32>
    %c0_158 = arith.constant 0 : index
    %c384_159 = arith.constant 384 : index
    %310 = vector.load %arg3[%c0_158, %c384_159] : memref<128x512xf32, #tpu.memory_space<vmem>>, vector<128x128xf32>
    %cst_160 = arith.constant dense<0.000000e+00> : vector<8x128xf32>
    %311 = tpu.matmul %274, %310, %cst_160 {dimension_numbers = #tpu.dot_dimension_numbers<[1], [0], [0], [1], [0, 0, 1, 1], [], []>} : vector<8x128xf32>, vector<128x128xf32>, vector<8x128xf32> -> vector<8x128xf32>
    %312 = arith.addf %309, %311 : vector<8x128xf32>
    %313 = arith.negf %312 : vector<8x128xf32>
    %314 = math.exp %313 : vector<8x128xf32>
    %cst_161 = arith.constant 1.000000e+00 : f32
    %315 = vector.broadcast %cst_161 : f32 to vector<8x128xf32>
    %316 = arith.addf %315, %314 : vector<8x128xf32>
    %317 = arith.divf %315, %316 : vector<8x128xf32>
    %318 = math.tanh %306 : vector<8x128xf32>
    %319 = arith.mulf %317, %318 : vector<8x128xf32>
    %c7_i32 = arith.constant 7 : i32
    %320 = arith.index_cast %c7_i32 : i32 to index
    %c0_162 = arith.constant 0 : index
    %c128_163 = arith.constant 128 : index
    %321 = vector.load %arg2[%320, %c0_162, %c128_163] : memref<8x8x512xf32, #tpu.memory_space<vmem>>, vector<1x8x128xf32>
    %322 = vector.shape_cast %321 : vector<1x8x128xf32> to vector<8x128xf32>
    %c0_164 = arith.constant 0 : index
    %c128_165 = arith.constant 128 : index
    %323 = vector.load %arg3[%c0_164, %c128_165] : memref<128x512xf32, #tpu.memory_space<vmem>>, vector<128x128xf32>
    %cst_166 = arith.constant dense<0.000000e+00> : vector<8x128xf32>
    %324 = tpu.matmul %319, %323, %cst_166 {dimension_numbers = #tpu.dot_dimension_numbers<[1], [0], [0], [1], [0, 0, 1, 1], [], []>} : vector<8x128xf32>, vector<128x128xf32>, vector<8x128xf32> -> vector<8x128xf32>
    %325 = arith.addf %322, %324 : vector<8x128xf32>
    %326 = arith.negf %325 : vector<8x128xf32>
    %327 = math.exp %326 : vector<8x128xf32>
    %cst_167 = arith.constant 1.000000e+00 : f32
    %328 = vector.broadcast %cst_167 : f32 to vector<8x128xf32>
    %329 = arith.addf %328, %327 : vector<8x128xf32>
    %330 = arith.divf %328, %329 : vector<8x128xf32>
    %331 = arith.mulf %330, %306 : vector<8x128xf32>
    %332 = arith.index_cast %c7_i32 : i32 to index
    %c0_168 = arith.constant 0 : index
    %c0_169 = arith.constant 0 : index
    %333 = vector.load %arg2[%332, %c0_168, %c0_169] : memref<8x8x512xf32, #tpu.memory_space<vmem>>, vector<1x8x128xf32>
    %334 = vector.shape_cast %333 : vector<1x8x128xf32> to vector<8x128xf32>
    %c0_170 = arith.constant 0 : index
    %c0_171 = arith.constant 0 : index
    %335 = vector.load %arg3[%c0_170, %c0_171] : memref<128x512xf32, #tpu.memory_space<vmem>>, vector<128x128xf32>
    %cst_172 = arith.constant dense<0.000000e+00> : vector<8x128xf32>
    %336 = tpu.matmul %319, %335, %cst_172 {dimension_numbers = #tpu.dot_dimension_numbers<[1], [0], [0], [1], [0, 0, 1, 1], [], []>} : vector<8x128xf32>, vector<128x128xf32>, vector<8x128xf32> -> vector<8x128xf32>
    %337 = arith.addf %334, %336 : vector<8x128xf32>
    %338 = arith.negf %337 : vector<8x128xf32>
    %339 = math.exp %338 : vector<8x128xf32>
    %cst_173 = arith.constant 1.000000e+00 : f32
    %340 = vector.broadcast %cst_173 : f32 to vector<8x128xf32>
    %341 = arith.addf %340, %339 : vector<8x128xf32>
    %342 = arith.divf %340, %341 : vector<8x128xf32>
    %343 = arith.index_cast %c7_i32 : i32 to index
    %c0_174 = arith.constant 0 : index
    %c256_175 = arith.constant 256 : index
    %344 = vector.load %arg2[%343, %c0_174, %c256_175] : memref<8x8x512xf32, #tpu.memory_space<vmem>>, vector<1x8x128xf32>
    %345 = vector.shape_cast %344 : vector<1x8x128xf32> to vector<8x128xf32>
    %c0_176 = arith.constant 0 : index
    %c256_177 = arith.constant 256 : index
    %346 = vector.load %arg3[%c0_176, %c256_177] : memref<128x512xf32, #tpu.memory_space<vmem>>, vector<128x128xf32>
    %cst_178 = arith.constant dense<0.000000e+00> : vector<8x128xf32>
    %347 = tpu.matmul %319, %346, %cst_178 {dimension_numbers = #tpu.dot_dimension_numbers<[1], [0], [0], [1], [0, 0, 1, 1], [], []>} : vector<8x128xf32>, vector<128x128xf32>, vector<8x128xf32> -> vector<8x128xf32>
    %348 = arith.addf %345, %347 : vector<8x128xf32>
    %349 = math.tanh %348 : vector<8x128xf32>
    %350 = arith.mulf %342, %349 : vector<8x128xf32>
    %351 = arith.addf %331, %350 : vector<8x128xf32>
    %352 = arith.index_cast %c7_i32 : i32 to index
    %c0_179 = arith.constant 0 : index
    %c384_180 = arith.constant 384 : index
    %353 = vector.load %arg2[%352, %c0_179, %c384_180] : memref<8x8x512xf32, #tpu.memory_space<vmem>>, vector<1x8x128xf32>
    %354 = vector.shape_cast %353 : vector<1x8x128xf32> to vector<8x128xf32>
    %c0_181 = arith.constant 0 : index
    %c384_182 = arith.constant 384 : index
    %355 = vector.load %arg3[%c0_181, %c384_182] : memref<128x512xf32, #tpu.memory_space<vmem>>, vector<128x128xf32>
    %cst_183 = arith.constant dense<0.000000e+00> : vector<8x128xf32>
    %356 = tpu.matmul %319, %355, %cst_183 {dimension_numbers = #tpu.dot_dimension_numbers<[1], [0], [0], [1], [0, 0, 1, 1], [], []>} : vector<8x128xf32>, vector<128x128xf32>, vector<8x128xf32> -> vector<8x128xf32>
    %357 = arith.addf %354, %356 : vector<8x128xf32>
    %358 = arith.negf %357 : vector<8x128xf32>
    %359 = math.exp %358 : vector<8x128xf32>
    %cst_184 = arith.constant 1.000000e+00 : f32
    %360 = vector.broadcast %cst_184 : f32 to vector<8x128xf32>
    %361 = arith.addf %360, %359 : vector<8x128xf32>
    %362 = arith.divf %360, %361 : vector<8x128xf32>
    %363 = math.tanh %351 : vector<8x128xf32>
    %364 = arith.mulf %362, %363 : vector<8x128xf32>
    %c8_i32 = arith.constant 8 : i32
    %c0_185 = arith.constant 0 : index
    %c0_186 = arith.constant 0 : index
    %365 = vector.load %arg7[%c0_185, %c0_186] : memref<8x128xf32, #tpu.memory_space<vmem>>, vector<8x128xf32>
    tpu.vector_store %arg7[%c0_185, %c0_186], %364 {strides = array<i32>} : memref<8x128xf32, #tpu.memory_space<vmem>>, vector<8x128xf32>,
    %c0_187 = arith.constant 0 : index
    %c0_188 = arith.constant 0 : index
    %366 = vector.load %arg8[%c0_187, %c0_188] : memref<8x128xf32, #tpu.memory_space<vmem>>, vector<8x128xf32>
    tpu.vector_store %arg8[%c0_187, %c0_188], %351 {strides = array<i32>} : memref<8x128xf32, #tpu.memory_space<vmem>>, vector<8x128xf32>,
    %c0_i32_189 = arith.constant 0 : i32
    %367 = arith.cmpi eq, %arg1, %c0_i32_189 : i32
    %368 = arith.extui %367 : i1 to i32
    %c0_i32_190 = arith.constant 0 : i32
    %369 = arith.cmpi ne, %368, %c0_i32_190 : i32
    scf.if %369 {
      %c0_191 = arith.constant 0 : index
      %c0_192 = arith.constant 0 : index
      %370 = vector.load %arg4[%c0_191, %c0_192] : memref<128x128xf32, #tpu.memory_space<vmem>>, vector<128x128xf32>
      %cst_193 = arith.constant dense<0.000000e+00> : vector<8x128xf32>
      %371 = tpu.matmul %364, %370, %cst_193 {dimension_numbers = #tpu.dot_dimension_numbers<[1], [0], [0], [1], [0, 0, 1, 1], [], []>} : vector<8x128xf32>, vector<128x128xf32>, vector<8x128xf32> -> vector<8x128xf32>
      %c0_194 = arith.constant 0 : index
      %c0_195 = arith.constant 0 : index
      %372 = vector.load %arg5[%c0_194, %c0_195] : memref<1x128xf32, #tpu.memory_space<vmem>>, vector<1x128xf32>
      %373 = vector.broadcast %372 : vector<1x128xf32> to vector<8x128xf32>
      %374 = arith.addf %371, %373 : vector<8x128xf32>
      %c0_196 = arith.constant 0 : index
      %c0_197 = arith.constant 0 : index
      %375 = vector.load %arg6[%c0_196, %c0_197] : memref<8x128xf32, #tpu.memory_space<vmem>>, vector<8x128xf32>
      tpu.vector_store %arg6[%c0_196, %c0_197], %374 {strides = array<i32>} : memref<8x128xf32, #tpu.memory_space<vmem>>, vector<8x128xf32>,
    } else {
    }
    return
  }
  func.func @transform_0(%arg0: i32, %arg1: i32) -> (i32, i32, i32) {
    %c0_i32 = arith.constant 0 : i32
    %c0_i32_0 = arith.constant 0 : i32
    return %arg1, %arg0, %c0_i32 : i32, i32, i32
  }
  func.func @transform_1(%arg0: i32, %arg1: i32) -> (i32, i32) {
    %c0_i32 = arith.constant 0 : i32
    %c0_i32_0 = arith.constant 0 : i32
    %c0_i32_1 = arith.constant 0 : i32
    return %c0_i32, %c0_i32_0 : i32, i32
  }
  func.func @transform_2(%arg0: i32, %arg1: i32) -> (i32, i32) {
    %c0_i32 = arith.constant 0 : i32
    %c0_i32_0 = arith.constant 0 : i32
    %c0_i32_1 = arith.constant 0 : i32
    return %c0_i32, %c0_i32_0 : i32, i32
  }
  func.func @transform_3(%arg0: i32, %arg1: i32) -> (i32, i32) {
    %c0_i32 = arith.constant 0 : i32
    %c0_i32_0 = arith.constant 0 : i32
    %c0_i32_1 = arith.constant 0 : i32
    return %c0_i32, %c0_i32_0 : i32, i32
  }
  func.func @transform_4(%arg0: i32, %arg1: i32) -> (i32, i32) {
    %c0_i32 = arith.constant 0 : i32
    %c0_i32_0 = arith.constant 0 : i32
    return %arg0, %c0_i32 : i32, i32
  }
}

</mosaic_0001>

<bundles_post_ra>
// kernel: tpu_custom_call.1
= control target key start
LH: loop header
LB: loop body
LE: loop exit
PB: predicated region body
PF: predicated region fallthrough
CT: control target
= control target key end

     0   :  { %9 = vsyncpa [#allocation5], 0  ;;  %s2589_s0 = inlined_call_operand.hbm [shape: f32[8,8,512], index: 0, kind: input, shape index: {}]   ;;  %s2590_s1 = inlined_call_operand.hbm [shape: f32[128,512], index: 1, kind: input, shape index: {}]   ;;  %s2591_s2 = inlined_call_operand.hbm [shape: f32[128,128], index: 2, kind: input, shape index: {}]   ;;  %s2592_s3 = inlined_call_operand.vmem [shape: f32[1,128], index: 3, kind: input, shape index: {}]   ;;  %s2593_s4 = inlined_call_operand.hbm [shape: f32[8,128], index: 4, kind: output, shape index: {}]  }
   0x1   :  { %10 = vsyncpa [#allocation8], 0 }
   0x2   :  { %11 = vsyncpa [#allocation6], 0  ;;  %s29_s17 = sshll.u32 %s2590_s1, 4  ;;  %s1744_s18 = smov [#allocation7]   ;;  %s30_s17 = int_to_ptr.hbm [resolvable:$true] %s29_s17 }
   0x3   :  { %s31_s19 = sshll.u32 %s1744_s18, 4  ;;  %s16_s22 = sshll.u32 %s2589_s0, 4  ;;  %s32_s19 = int_to_ptr.vmem [resolvable:$true] %s31_s19  ;;  %s17_s22 = int_to_ptr.hbm [resolvable:$true] %s16_s22 }
   0x4   :  { %s1745_s23 = smov 512   ;;  %s1746_s24 = smov 32  }
   0x5   :  { %37 = dma.hbm_to_vmem [thread:$0]  %s30_s17, 8192, %s32_s19, [#allocation8], %s1745_s23, %s1745_s23, %s1746_s24  }
   0x6   :  { %s1747_s25 = smov [#allocation4]   ;;  %s42_s29 = sshll.u32 %s2591_s2, 4  ;;  %s43_s29 = int_to_ptr.hbm [resolvable:$true] %s42_s29 }
   0x7   :  { %s18_s26 = sshll.u32 %s1747_s25, 4  ;;  %s1748_s1 = smov [#allocation9]   ;;  %s19_s26 = int_to_ptr.vmem [resolvable:$true] %s18_s26 }
   0x8   :  { %24 = dma.hbm_to_vmem [thread:$0]  %s17_s22, 4096, %s19_s26, [#allocation5], %s1745_s23, %s1745_s23, %s1746_s24  }
   0x9   :  { %s44_s30 = sshll.u32 %s1748_s1, 4  ;;  %s1749_s5 = smov 128   ;;  %s45_s30 = int_to_ptr.vmem [resolvable:$true] %s44_s30 }
   0xa   :  { %s1750_s6 = smov 8  }
   0xb   :  { %50 = dma.hbm_to_vmem [thread:$0]  %s43_s29, 2048, %s45_s30, [#allocation8], %s1749_s5, %s1749_s5, %s1750_s6  }
   0xc   :  { %1738 = dma.done.wait [#allocation5], 4096  }
   0xd   :  { %1739 = vsyncadd [#allocation5], 4294963200 }
   0xe   :  { %1740 = dma.done.wait [#allocation8], 10240  }
   0xf   :  { %1741 = vsyncadd [#allocation8], 4294957056  ;;  %v1787_v0 = vld [vmem:[#allocation7 + $0x1e8] sm:$0xff]  ;;  %v1789_v1 = vld [vmem:[#allocation7 + $0x1e0] sm:$0xff]  ;;  %v1751_v60 = vmov 0.0   ;;  %s1752_s7 = smov [#allocation10]  }
  0x10   :  { %2700 = vst [vmem:[#allocation14_spill] sm:$0xff] %v1787_v0  ;;  %v1791_v2 = vld [vmem:[#allocation7 + $0x1f8] sm:$0xff]  ;;  %90 = vmatpush.msra.mxu0 %v1787_v0  ;;  %148 = vmatpush.msra.mxu1 %v1789_v1  ;;  %v1795_v3 = vld [vmem:[#allocation7 + $0x1c8] sm:$0xff]  ;;  %v1797_v4 = vld [vmem:[#allocation7 + $0x1c0] sm:$0xff]  ;;  %s1403_s8 = sshll.u32 %s1752_s7, 4  ;;  %s1405_s11 = sshll.u32 %s2593_s4, 4  ;;  %s1404_s8 = int_to_ptr.vmem [resolvable:$true] %s1403_s8  ;;  %s1406_s11 = int_to_ptr.hbm [resolvable:$true] %s1405_s11 }
  0x11   :  { %v1799_v5 = vld [vmem:[#allocation7 + $0x1d8] sm:$0xff]  ;;  %246 = vmatpush.msra.mxu3 %v1791_v2  ;;  %v1802_v6 = vld [vmem:[#allocation7 + $0x1a8] sm:$0xff]  ;;  %v1804_v7 = vld [vmem:[#allocation7 + $0x1a0] sm:$0xff] }
  0x12   :  { %91 = vmatpush.msra.mxu0 %v1795_v3  ;;  %149 = vmatpush.msra.mxu1 %v1797_v4  ;;  %v1808_v8 = vld [vmem:[#allocation7 + $0x1b8] sm:$0xff]  ;;  %v1811_v9 = vld [vmem:[#allocation7 + $0x188] sm:$0xff]  ;;  %v1813_v10 = vld [vmem:[#allocation7 + $0x180] sm:$0xff] }
  0x13   :  { %247 = vmatpush.msra.mxu3 %v1799_v5  ;;  %v1817_v11 = vld [vmem:[#allocation7 + $0x198] sm:$0xff]  ;;  %v1820_v12 = vld [vmem:[#allocation7 + $0x168] sm:$0xff]  ;;  %v1822_v13 = vld [vmem:[#allocation7 + $0x160] sm:$0xff] }
  0x14   :  { %92 = vmatpush.msra.mxu0 %v1802_v6  ;;  %150 = vmatpush.msra.mxu1 %v1804_v7  ;;  %v1826_v14 = vld [vmem:[#allocation7 + $0x178] sm:$0xff]  ;;  %v1829_v15 = vld [vmem:[#allocation7 + $0x148] sm:$0xff]  ;;  %v1831_v16 = vld [vmem:[#allocation7 + $0x140] sm:$0xff] }
  0x15   :  { %248 = vmatpush.msra.mxu3 %v1808_v8  ;;  %v1833_v17 = vld [vmem:[#allocation7 + $0x1f0] sm:$0xff]  ;;  %v1837_v18 = vld [vmem:[#allocation7 + $0x158] sm:$0xff]  ;;  %v1842_v20 = vld [vmem:[#allocation7 + $0x128] sm:$0xff] }
  0x16   :  { %93 = vmatpush.msra.mxu0 %v1811_v9  ;;  %151 = vmatpush.msra.mxu1 %v1813_v10  ;;  %v1839_v19 = vld [vmem:[#allocation7 + $0x1d0] sm:$0xff]  ;;  %v1844_v21 = vld [vmem:[#allocation7 + $0x120] sm:$0xff]  ;;  %v1849_v22 = vld [vmem:[#allocation7 + $0x138] sm:$0xff] }
  0x17   :  { %249 = vmatpush.msra.mxu3 %v1817_v11  ;;  %205 = vmatpush.msra.mxu2 %v1833_v17  ;;  %v1851_v23 = vld [vmem:[#allocation7 + $0x1b0] sm:$0xff]  ;;  %v1854_v24 = vld [vmem:[#allocation7 + $0x108] sm:$0xff]  ;;  %v1856_v25 = vld [vmem:[#allocation7 + $0x100] sm:$0xff] }
  0x18   :  { %94 = vmatpush.msra.mxu0 %v1820_v12  ;;  %152 = vmatpush.msra.mxu1 %v1822_v13  ;;  %v1861_v26 = vld [vmem:[#allocation7 + $0x118] sm:$0xff]  ;;  %v1863_v27 = vld [vmem:[#allocation7 + $0x190] sm:$0xff]  ;;  %v1866_v28 = vld [vmem:[#allocation7 + $0xe8] sm:$0xff] }
  0x19   :  { %250 = vmatpush.msra.mxu3 %v1826_v14  ;;  %206 = vmatpush.msra.mxu2 %v1839_v19  ;;  %v1868_v29 = vld [vmem:[#allocation7 + $0xe0] sm:$0xff]  ;;  %v1873_v30 = vld [vmem:[#allocation7 + $0xf8] sm:$0xff]  ;;  %v1875_v31 = vld [vmem:[#allocation7 + $0x170] sm:$0xff] }
  0x1a   :  { %95 = vmatpush.msra.mxu0 %v1829_v15  ;;  %153 = vmatpush.msra.mxu1 %v1831_v16  ;;  %v1878_v32 = vld [vmem:[#allocation7 + $0xc8] sm:$0xff]  ;;  %v1880_v33 = vld [vmem:[#allocation7 + $0xc0] sm:$0xff]  ;;  %v1885_v34 = vld [vmem:[#allocation7 + $0xd8] sm:$0xff] }
  0x1b   :  { %251 = vmatpush.msra.mxu3 %v1837_v18  ;;  %207 = vmatpush.msra.mxu2 %v1851_v23  ;;  %2701 = vst [vmem:[#allocation15_spill] sm:$0xff] %v1885_v34  ;;  %v1887_v35 = vld [vmem:[#allocation7 + $0x150] sm:$0xff]  ;;  %v1890_v36 = vld [vmem:[#allocation7 + $0xa8] sm:$0xff]  ;;  %v1892_v37 = vld [vmem:[#allocation7 + $0xa0] sm:$0xff] }
  0x1c   :  { %96 = vmatpush.msra.mxu0 %v1842_v20  ;;  %154 = vmatpush.msra.mxu1 %v1844_v21  ;;  %2702 = vst [vmem:[#allocation16_spill] sm:$0xff] %v1890_v36  ;;  %v1897_v38 = vld [vmem:[#allocation7 + $0xb8] sm:$0xff]  ;;  %v1899_v39 = vld [vmem:[#allocation7 + $0x130] sm:$0xff]  ;;  %v1902_v40 = vld [vmem:[#allocation7 + $0x88] sm:$0xff] }
  0x1d   :  { %252 = vmatpush.msra.mxu3 %v1849_v22  ;;  %208 = vmatpush.msra.mxu2 %v1863_v27  ;;  %2703 = vst [vmem:[#allocation17_spill] sm:$0xff] %v1892_v37  ;;  %v1904_v41 = vld [vmem:[#allocation7 + $0x80] sm:$0xff]  ;;  %v1909_v42 = vld [vmem:[#allocation7 + $0x98] sm:$0xff]  ;;  %v1911_v43 = vld [vmem:[#allocation7 + $0x110] sm:$0xff] }
  0x1e   :  { %97 = vmatpush.msra.mxu0 %v1854_v24  ;;  %155 = vmatpush.msra.mxu1 %v1856_v25  ;;  %2704 = vst [vmem:[#allocation18_spill] sm:$0xff] %v1897_v38  ;;  %v1914_v44 = vld [vmem:[#allocation7 + $0x68] sm:$0xff]  ;;  %v1916_v45 = vld [vmem:[#allocation7 + $0x60] sm:$0xff]  ;;  %v1921_v46 = vld [vmem:[#allocation7 + $0x78] sm:$0xff] }
  0x1f   :  { %253 = vmatpush.msra.mxu3 %v1861_v26  ;;  %209 = vmatpush.msra.mxu2 %v1875_v31  ;;  %2705 = vst [vmem:[#allocation19_spill] sm:$0xff] %v1902_v40  ;;  %v1923_v47 = vld [vmem:[#allocation7 + $0xf0] sm:$0xff]  ;;  %v1926_v48 = vld [vmem:[#allocation7 + $0x48] sm:$0xff]  ;;  %v1928_v49 = vld [vmem:[#allocation7 + $0x40] sm:$0xff] }
  0x20   :  { %98 = vmatpush.msra.mxu0 %v1866_v28  ;;  %156 = vmatpush.msra.mxu1 %v1868_v29  ;;  %2706 = vst [vmem:[#allocation20_spill] sm:$0xff] %v1904_v41  ;;  %v1933_v50 = vld [vmem:[#allocation7 + $0x58] sm:$0xff]  ;;  %v1935_v51 = vld [vmem:[#allocation7 + $0xd0] sm:$0xff]  ;;  %v1938_v52 = vld [vmem:[#allocation7 + $0x28] sm:$0xff] }
  0x21   :  { %254 = vmatpush.msra.mxu3 %v1873_v30  ;;  %210 = vmatpush.msra.mxu2 %v1887_v35  ;;  %2707 = vst [vmem:[#allocation21_spill] sm:$0xff] %v1909_v42  ;;  %v1940_v53 = vld [vmem:[#allocation7 + $0x20] sm:$0xff]  ;;  %v1945_v54 = vld [vmem:[#allocation7 + $0x38] sm:$0xff]  ;;  %v1947_v55 = vld [vmem:[#allocation7 + $0xb0] sm:$0xff] }
  0x22   :  { %99 = vmatpush.msra.mxu0 %v1878_v32  ;;  %157 = vmatpush.msra.mxu1 %v1880_v33  ;;  %2708 = vst [vmem:[#allocation22_spill] sm:$0xff] %v1914_v44  ;;  %v1950_v56 = vld [vmem:[#allocation7 + $0x8] sm:$0xff]  ;;  %v1952_v57 = vld [vmem:[#allocation7] sm:$0xff]  ;;  %v1957_v58 = vld [vmem:[#allocation7 + $0x18] sm:$0xff] }
  0x23   :  { %255 = vmatpush.msra.mxu3 %v1885_v34  ;;  %2709 = vst [vmem:[#allocation23_spill] sm:$0xff] %v1916_v45  ;;  %211 = vmatpush.msra.mxu2 %v1899_v39  ;;  %v1963_v59 = vld [vmem:[#allocation7 + $0x90] sm:$0xff] }
  0x24   :  { %100 = vmatpush.msra.mxu0 %v1890_v36  ;;  %158 = vmatpush.msra.mxu1 %v1892_v37  ;;  %2710 = vst [vmem:[#allocation24_spill] sm:$0xff] %v1921_v46  ;;  %v1966_v61 = vld [vmem:[#allocation7 + $0x70] sm:$0xff] }
  0x25   :  { %256 = vmatpush.msra.mxu3 %v1897_v38  ;;  %2711 = vst [vmem:[#allocation25_spill] sm:$0xff] %v1926_v48  ;;  %212 = vmatpush.msra.mxu2 %v1911_v43  ;;  %v1970_v62 = vld [vmem:[#allocation7 + $0x50] sm:$0xff] }
  0x26   :  { %101 = vmatpush.msra.mxu0 %v1902_v40  ;;  %159 = vmatpush.msra.mxu1 %v1904_v41  ;;  %2712 = vst [vmem:[#allocation26_spill] sm:$0xff] %v1928_v49  ;;  %v1976_v63 = vld [vmem:[#allocation7 + $0x30] sm:$0xff] }
  0x27   :  { %257 = vmatpush.msra.mxu3 %v1909_v42  ;;  %2713 = vst [vmem:[#allocation27_spill] sm:$0xff] %v1933_v50  ;;  %213 = vmatpush.msra.mxu2 %v1923_v47 }
  0x28   :  { %102 = vmatpush.msra.mxu0 %v1914_v44  ;;  %160 = vmatpush.msra.mxu1 %v1916_v45  ;;  %2714 = vst [vmem:[#allocation28_spill] sm:$0xff] %v1935_v51 }
  0x29   :  { %258 = vmatpush.msra.mxu3 %v1921_v46  ;;  %2715 = vst [vmem:[#allocation29_spill] sm:$0xff] %v1938_v52  ;;  %214 = vmatpush.msra.mxu2 %v1935_v51 }
  0x2a   :  { %2716 = vst [vmem:[#allocation30_spill] sm:$0xff] %v1940_v53  ;;  %103 = vmatpush.msra.mxu0 %v1926_v48  ;;  %161 = vmatpush.msra.mxu1 %v1928_v49 }
  0x2b   :  { %2717 = vst [vmem:[#allocation31_spill] sm:$0xff] %v1945_v54  ;;  %259 = vmatpush.msra.mxu3 %v1933_v50  ;;  %215 = vmatpush.msra.mxu2 %v1947_v55 }
  0x2c   :  { %2718 = vst [vmem:[#allocation32_spill] sm:$0xff] %v1947_v55  ;;  %104 = vmatpush.msra.mxu0 %v1938_v52  ;;  %162 = vmatpush.msra.mxu1 %v1940_v53 }
  0x2d   :  { %2719 = vst [vmem:[#allocation33_spill] sm:$0xff] %v1950_v56  ;;  %260 = vmatpush.msra.mxu3 %v1945_v54  ;;  %216 = vmatpush.msra.mxu2 %v1963_v59 }
  0x2e   :  { %2720 = vst [vmem:[#allocation34_spill] sm:$0xff] %v1952_v57  ;;  %105 = vmatpush.msra.mxu0 %v1950_v56  ;;  %163 = vmatpush.msra.mxu1 %v1952_v57 }
  0x2f   :  { %2721 = vst [vmem:[#allocation35_spill] sm:$0xff] %v1957_v58  ;;  %261 = vmatpush.msra.mxu3 %v1957_v58  ;;  %106 = vmatmul.f32.vlgmr.msra.gmra.mxu0 %v1751_v60 }
  0x30   :  { %2722 = vst [vmem:[#allocation36_spill] sm:$0xff] %v1963_v59  ;;  %164 = vmatmul.f32.vlgmr.msra.gmra.mxu1 %v1751_v60  ;;  %262 = vmatmul.f32.vlgmr.msra.gmra.mxu3 %v1751_v60 }
  0x31   :  { %2723 = vst [vmem:[#allocation37_spill] sm:$0xff] %v1966_v61  ;;  %290 = vmatpush.msrb.mxu0 %v1787_v0  ;;  %332 = vmatpush.msrb.mxu1 %v1789_v1  ;;  %v1982_v0 = vld [vmem:[#allocation7 + $0x10] sm:$0xff] }
  0x32   :  { %2724 = vst [vmem:[#allocation38_spill] sm:$0xff] %v1970_v62  ;;  %398 = vmatpush.msrb.mxu3 %v1791_v2  ;;  %217 = vmatpush.msra.mxu2 %v1966_v61 }
  0x33   :  { %291 = vmatpush.msrb.mxu0 %v1795_v3  ;;  %2725 = vst [vmem:[#allocation39_spill] sm:$0xff] %v1976_v63  ;;  %333 = vmatpush.msrb.mxu1 %v1797_v4 }
  0x34   :  { %399 = vmatpush.msrb.mxu3 %v1799_v5  ;;  %218 = vmatpush.msra.mxu2 %v1970_v62  ;;  %2726 = vst [vmem:[#allocation40_spill] sm:$0xff] %v1982_v0 }
  0x35   :  { %292 = vmatpush.msrb.mxu0 %v1802_v6  ;;  %334 = vmatpush.msrb.mxu1 %v1804_v7 }
  0x36   :  { %400 = vmatpush.msrb.mxu3 %v1808_v8  ;;  %219 = vmatpush.msra.mxu2 %v1976_v63 }
  0x37   :  { %293 = vmatpush.msrb.mxu0 %v1811_v9  ;;  %335 = vmatpush.msrb.mxu1 %v1813_v10 }
  0x38   :  { %401 = vmatpush.msrb.mxu3 %v1817_v11  ;;  %220 = vmatpush.msra.mxu2 %v1982_v0 }
  0x39   :  { %294 = vmatpush.msrb.mxu0 %v1820_v12  ;;  %221 = vmatmul.f32.vlgmr.msra.gmra.mxu2 %v1751_v60  ;;  %v2727_v60 = vld [vmem:[#allocation14_spill] sm:$0xff] }
  0x3a   :  { %336 = vmatpush.msrb.mxu1 %v1822_v13  ;;  %373 = vmatpush.msrb.mxu2 %v1833_v17 }
  0x3b   :  { %402 = vmatpush.msrb.mxu3 %v1826_v14  ;;  %295 = vmatpush.msrb.mxu0 %v1829_v15 }
  0x3c   :  { %337 = vmatpush.msrb.mxu1 %v1831_v16  ;;  %374 = vmatpush.msrb.mxu2 %v1839_v19 }
  0x3d   :  { %403 = vmatpush.msrb.mxu3 %v1837_v18  ;;  %296 = vmatpush.msrb.mxu0 %v1842_v20 }
  0x3e   :  { %338 = vmatpush.msrb.mxu1 %v1844_v21  ;;  %375 = vmatpush.msrb.mxu2 %v1851_v23 }
  0x3f   :  { %404 = vmatpush.msrb.mxu3 %v1849_v22  ;;  %297 = vmatpush.msrb.mxu0 %v1854_v24 }
  0x40   :  { %339 = vmatpush.msrb.mxu1 %v1856_v25  ;;  %376 = vmatpush.msrb.mxu2 %v1863_v27 }
  0x41   :  { %405 = vmatpush.msrb.mxu3 %v1861_v26  ;;  %298 = vmatpush.msrb.mxu0 %v1866_v28 }
  0x42   :  { %340 = vmatpush.msrb.mxu1 %v1868_v29  ;;  %377 = vmatpush.msrb.mxu2 %v1875_v31 }
  0x43   :  { %406 = vmatpush.msrb.mxu3 %v1873_v30  ;;  %299 = vmatpush.msrb.mxu0 %v1878_v32 }
  0x44   :  { %341 = vmatpush.msrb.mxu1 %v1880_v33  ;;  %378 = vmatpush.msrb.mxu2 %v1887_v35 }
  0x45   :  { %407 = vmatpush.msrb.mxu3 %v1885_v34  ;;  %300 = vmatpush.msrb.mxu0 %v1890_v36 }
  0x46   :  { %342 = vmatpush.msrb.mxu1 %v1892_v37  ;;  %379 = vmatpush.msrb.mxu2 %v1899_v39 }
  0x47   :  { %408 = vmatpush.msrb.mxu3 %v1897_v38  ;;  %301 = vmatpush.msrb.mxu0 %v1902_v40 }
  0x48   :  { %343 = vmatpush.msrb.mxu1 %v1904_v41  ;;  %380 = vmatpush.msrb.mxu2 %v1911_v43 }
  0x49   :  { %409 = vmatpush.msrb.mxu3 %v1909_v42  ;;  %302 = vmatpush.msrb.mxu0 %v1914_v44 }
  0x4a   :  { %344 = vmatpush.msrb.mxu1 %v1916_v45  ;;  %381 = vmatpush.msrb.mxu2 %v1923_v47 }
  0x4b   :  { %410 = vmatpush.msrb.mxu3 %v1921_v46  ;;  %303 = vmatpush.msrb.mxu0 %v1926_v48 }
  0x4c   :  { %345 = vmatpush.msrb.mxu1 %v1928_v49  ;;  %382 = vmatpush.msrb.mxu2 %v1935_v51 }
  0x4d   :  { %411 = vmatpush.msrb.mxu3 %v1933_v50  ;;  %304 = vmatpush.msrb.mxu0 %v1938_v52 }
  0x4e   :  { %346 = vmatpush.msrb.mxu1 %v1940_v53  ;;  %383 = vmatpush.msrb.mxu2 %v1947_v55 }
  0x4f   :  { %412 = vmatpush.msrb.mxu3 %v1945_v54  ;;  %305 = vmatpush.msrb.mxu0 %v1950_v56 }
  0x50   :  { %347 = vmatpush.msrb.mxu1 %v1952_v57  ;;  %384 = vmatpush.msrb.mxu2 %v1963_v59 }
  0x51   :  { %413 = vmatpush.msrb.mxu3 %v1957_v58  ;;  %442 = vmatpush.msra.mxu0 %v2727_v60 }
  0x52   :  { %484 = vmatpush.msra.mxu1 %v1789_v1  ;;  %385 = vmatpush.msrb.mxu2 %v1966_v61 }
  0x53   :  { %550 = vmatpush.msra.mxu3 %v1791_v2  ;;  %443 = vmatpush.msra.mxu0 %v1795_v3 }
  0x54   :  { %485 = vmatpush.msra.mxu1 %v1797_v4  ;;  %386 = vmatpush.msrb.mxu2 %v1970_v62 }
  0x55   :  { %551 = vmatpush.msra.mxu3 %v1799_v5  ;;  %444 = vmatpush.msra.mxu0 %v1802_v6 }
  0x56   :  { %486 = vmatpush.msra.mxu1 %v1804_v7  ;;  %387 = vmatpush.msrb.mxu2 %v1976_v63 }
  0x57   :  { %552 = vmatpush.msra.mxu3 %v1808_v8  ;;  %445 = vmatpush.msra.mxu0 %v1811_v9 }
  0x58   :  { %487 = vmatpush.msra.mxu1 %v1813_v10  ;;  %388 = vmatpush.msrb.mxu2 %v1982_v0 }
  0x59   :  { %553 = vmatpush.msra.mxu3 %v1817_v11  ;;  %446 = vmatpush.msra.mxu0 %v1820_v12 }
  0x5a   :  { %525 = vmatpush.msra.mxu2 %v1833_v17  ;;  %488 = vmatpush.msra.mxu1 %v1822_v13 }
  0x5b   :  { %554 = vmatpush.msra.mxu3 %v1826_v14  ;;  %447 = vmatpush.msra.mxu0 %v1829_v15 }
  0x5c   :  { %526 = vmatpush.msra.mxu2 %v1839_v19  ;;  %489 = vmatpush.msra.mxu1 %v1831_v16 }
  0x5d   :  { %555 = vmatpush.msra.mxu3 %v1837_v18  ;;  %448 = vmatpush.msra.mxu0 %v1842_v20 }
  0x5e   :  { %527 = vmatpush.msra.mxu2 %v1851_v23  ;;  %490 = vmatpush.msra.mxu1 %v1844_v21 }
  0x5f   :  { %556 = vmatpush.msra.mxu3 %v1849_v22  ;;  %449 = vmatpush.msra.mxu0 %v1854_v24 }
  0x60   :  { %528 = vmatpush.msra.mxu2 %v1863_v27  ;;  %491 = vmatpush.msra.mxu1 %v1856_v25 }
  0x61   :  { %557 = vmatpush.msra.mxu3 %v1861_v26  ;;  %450 = vmatpush.msra.mxu0 %v1866_v28 }
  0x62   :  { %529 = vmatpush.msra.mxu2 %v1875_v31  ;;  %492 = vmatpush.msra.mxu1 %v1868_v29 }
  0x63   :  { %558 = vmatpush.msra.mxu3 %v1873_v30  ;;  %451 = vmatpush.msra.mxu0 %v1878_v32 }
  0x64   :  { %530 = vmatpush.msra.mxu2 %v1887_v35  ;;  %493 = vmatpush.msra.mxu1 %v1880_v33 }
  0x65   :  { %559 = vmatpush.msra.mxu3 %v1885_v34  ;;  %452 = vmatpush.msra.mxu0 %v1890_v36 }
  0x66   :  { %531 = vmatpush.msra.mxu2 %v1899_v39  ;;  %494 = vmatpush.msra.mxu1 %v1892_v37 }
  0x67   :  { %560 = vmatpush.msra.mxu3 %v1897_v38  ;;  %453 = vmatpush.msra.mxu0 %v1902_v40 }
  0x68   :  { %532 = vmatpush.msra.mxu2 %v1911_v43  ;;  %495 = vmatpush.msra.mxu1 %v1904_v41 }
  0x69   :  { %561 = vmatpush.msra.mxu3 %v1909_v42  ;;  %454 = vmatpush.msra.mxu0 %v1914_v44 }
  0x6a   :  { %533 = vmatpush.msra.mxu2 %v1923_v47  ;;  %496 = vmatpush.msra.mxu1 %v1916_v45 }
  0x6b   :  { %562 = vmatpush.msra.mxu3 %v1921_v46  ;;  %455 = vmatpush.msra.mxu0 %v1926_v48 }
  0x6c   :  { %534 = vmatpush.msra.mxu2 %v1935_v51  ;;  %497 = vmatpush.msra.mxu1 %v1928_v49 }
  0x6d   :  { %563 = vmatpush.msra.mxu3 %v1933_v50  ;;  %456 = vmatpush.msra.mxu0 %v1938_v52  ;;  %v73_v52 = vld [vmem:[#allocation4 + $0x8] sm:$0xff] }
  0x6e   :  { %535 = vmatpush.msra.mxu2 %v1947_v55  ;;  %498 = vmatpush.msra.mxu1 %v1940_v53  ;;  %v131_v53 = vld [vmem:[#allocation4] sm:$0xff] }
  0x6f   :  { %564 = vmatpush.msra.mxu3 %v1945_v54  ;;  %457 = vmatpush.msra.mxu0 %v1950_v56 }
  0x70   :  { %536 = vmatpush.msra.mxu2 %v1963_v59  ;;  %499 = vmatpush.msra.mxu1 %v1952_v57  ;;  %v229_v57 = vld [vmem:[#allocation4 + $0x18] sm:$0xff] }
  0x71   :  { %565 = vmatpush.msra.mxu3 %v1957_v58 }
  0x72   :  { %537 = vmatpush.msra.mxu2 %v1966_v61 }
  0x74   :  { %538 = vmatpush.msra.mxu2 %v1970_v62 }
  0x76   :  { %539 = vmatpush.msra.mxu2 %v1976_v63 }
  0x78   :  { %540 = vmatpush.msra.mxu2 %v1982_v0  ;;  %v188_v0 = vld [vmem:[#allocation4 + $0x10] sm:$0xff] }
  0xac   :  { %v107_v50 = vpop.f32.mrf.mxu0 }
  0xad   :  { %v110_v54 = vadd.f32 %v107_v50, %v73_v52  ;;  %v165_v49 = vpop.f32.mrf.mxu1 }
  0xae   :  { %v168_v48 = vadd.f32 %v165_v49, %v131_v53 }
  0xaf   :  { %v1416_v46 = vmul.f32 -1.442695, %v110_v54 }
  0xb0   :  { %v1417_v56 = vmul.f32 -1.442695, %v168_v48 }
  0xb1   :  { %1450 = vpow2.f32 %v1416_v46 }
  0xb2   :  { %1452 = vpow2.f32 %v1417_v56 }
  0xb3   :  { %v263_v58 = vpop.f32.mrf.mxu3 }
  0xb4   :  { %v266_v45 = vadd.f32 %v263_v58, %v229_v57 }
  0xb6   :  { %v1418_v61 = vmul.f32 -1.442695, %v266_v45 }
  0xb7   :  { %v1451_v44 = vpop.eup %1450 }
  0xb8   :  { %v1453_v62 = vpop.eup %1452  ;;  %v114_v42 = vadd.f32 1.0, %v1451_v44  ;;  %1454 = vpow2.f32 %v1418_v61 }
  0xb9   :  { %v172_v63 = vadd.f32 1.0, %v1453_v62 }
  0xba   :  { %1456 = vrcp.f32 %v114_v42  ;;  %v126_v45 = vand.u32 2147483648, %v114_v42  ;;  %v124_v44 = vand.u32 2147483647, %v114_v42  ;;  %vm120_vm2 = vweird.f32 %v114_v42 }
  0xbb   :  { %1458 = vrcp.f32 %v172_v63  ;;  %v184_v61 = vand.u32 2147483648, %v172_v63  ;;  %v182_v41 = vand.u32 2147483647, %v172_v63  ;;  %vm178_vm4 = vweird.f32 %v172_v63 }
  0xbc   :  { %v222_v59 = vpop.f32.mrf.mxu2  ;;  %vm125_vm5 = vcmp.eq.f32.partialorder %v124_v44, 8.507059e+37 }
  0xbd   :  { %v225_v49 = vadd.f32 %v222_v59, %v188_v0  ;;  %v127_v0 = vor.u32 1.1754944e-38, %v126_v45  ;;  %vm183_vm7 = vcmp.eq.f32.partialorder %v182_v41, 8.507059e+37 }
  0xbe   :  { %v1455_v50 = vpop.eup %1454 }
  0xbf   :  { %v270_v52 = vadd.f32 1.0, %v1455_v50 }
  0xc0   :  { %v1457_v53 = vpop.eup %1456 }
  0xc1   :  { %v1459_v48 = vpop.eup %1458  ;;  %v116_v46 = vmul.f32 %v1457_v53, %v114_v42  ;;  %1460 = vrcp.f32 %v270_v52  ;;  %vm121_vm0 = vweird.f32 %v1457_v53  ;;  %vm276_vm9 = vweird.f32 %v270_v52 }
  0xc2   :  { %v174_v54 = vmul.f32 %v1459_v48, %v172_v63  ;;  %1462 = vtanh.f32 %v225_v49  ;;  %vm179_vm1 = vweird.f32 %v1459_v48  ;;  %vm122_vm3 = vmor %vm120_vm2, %vm121_vm0  ;;  %v185_v49 = vor.u32 1.1754944e-38, %v184_v61 }
  0xc3   :  { %v117_v56 = vsub.f32 1.0, %v116_v46  ;;  %vm180_vm6 = vmor %vm178_vm4, %vm179_vm1  ;;  %v282_v63 = vand.u32 2147483648, %v270_v52 }
  0xc4   :  { %v175_v57 = vsub.f32 1.0, %v174_v54 }
  0xc5   :  { %v118_v58 = vmul.f32 %v1457_v53, %v117_v56  ;;  %v283_v44 = vor.u32 1.1754944e-38, %v282_v63  ;;  %v2746_v63 = vld [vmem:[#allocation29_spill] sm:$0xff] }
  0xc6   :  { %v176_v62 = vmul.f32 %v1459_v48, %v175_v57 }
  0xc7   :  { %v1461_v40 = vpop.eup %1460  ;;  %v119_v50 = vadd.f32 %v1457_v53, %v118_v58 }
  0xc8   :  { %v272_v59 = vmul.f32 %v1461_v40, %v270_v52  ;;  %v177_v38 = vadd.f32 %v1459_v48, %v176_v62  ;;  %v1463_v55 = vpop.eup %1462  ;;  %vm277_vm8 = vweird.f32 %v1461_v40  ;;  %v2736_v62 = vld [vmem:[#allocation36_spill] sm:$0xff] }
  0xc9   :  { %v123_v46 = vsel %vm122_vm3, %v1457_v53, %v119_v50  ;;  %v280_v53 = vand.u32 2147483647, %v270_v52  ;;  %vm278_vm10 = vmor %vm276_vm9, %vm277_vm8  ;;  %v2734_v52 = vld [vmem:[#allocation19_spill] sm:$0xff]  ;;  %v2737_v50 = vld [vmem:[#allocation21_spill] sm:$0xff] }
  0xca   :  { %v273_v54 = vsub.f32 1.0, %v272_v59  ;;  %v128_v56 = vsel %vm125_vm5, %v127_v0, %v123_v46  ;;  %v181_v37 = vsel %vm180_vm6, %v1459_v48, %v177_v38  ;;  %v2735_v48 = vld [vmem:[#allocation20_spill] sm:$0xff]  ;;  %v2738_v0 = vld [vmem:[#allocation22_spill] sm:$0xff]  ;;  %v2739_v59 = vld [vmem:[#allocation23_spill] sm:$0xff] }
  0xcb   :  { %v130_v57 = vmul.f32 0.0, %v128_v56  ;;  %v186_v36 = vsel %vm183_vm7, %v185_v49, %v181_v37  ;;  %vm281_vm11 = vcmp.eq.f32.partialorder %v280_v53, 8.507059e+37  ;;  %v2730_v37 = vld [vmem:[#allocation16_spill] sm:$0xff]  ;;  %v2740_v46 = vld [vmem:[#allocation37_spill] sm:$0xff]  ;;  %v2743_v56 = vld [vmem:[#allocation26_spill] sm:$0xff] }
  0xcc   :  { %v227_v34 = vmul.f32 %v1463_v55, %v186_v36  ;;  %v274_v51 = vmul.f32 %v1461_v40, %v273_v54  ;;  %v2729_v36 = vld [vmem:[#allocation15_spill] sm:$0xff]  ;;  %v2733_v55 = vld [vmem:[#allocation18_spill] sm:$0xff]  ;;  %v2741_v49 = vld [vmem:[#allocation24_spill] sm:$0xff] }
  0xcd   :  { %v2742_v54 = vld [vmem:[#allocation25_spill] sm:$0xff]  ;;  %v2747_v53 = vld [vmem:[#allocation30_spill] sm:$0xff] }
  0xce   :  { %v2107_v42 = vadd.f32 %v227_v34, %v130_v57  ;;  %v275_v45 = vadd.f32 %v1461_v40, %v274_v51  ;;  %v2728_v34 = vld [vmem:[#allocation28_spill] sm:$0xff]  ;;  %v2744_v57 = vld [vmem:[#allocation38_spill] sm:$0xff] }
  0xcf   :  { %v2732_v51 = vld [vmem:[#allocation32_spill] sm:$0xff] }
  0xd0   :  { %1464 = vtanh.f32 %v2107_v42  ;;  %v279_v58 = vsel %vm278_vm10, %v1461_v40, %v275_v45  ;;  %v2731_v40 = vld [vmem:[#allocation17_spill] sm:$0xff]  ;;  %v2745_v45 = vld [vmem:[#allocation27_spill] sm:$0xff] }
  0xd1   :  { %v284_v38 = vsel %vm281_vm11, %v283_v44, %v279_v58  ;;  %v2748_v58 = vld [vmem:[#allocation39_spill] sm:$0xff] }
  0xd2   :  { %v2749_v44 = vld [vmem:[#allocation31_spill] sm:$0xff] }
  0xd6   :  { %v1465_v61 = vpop.eup %1464 }
  0xd7   :  { %v287_v41 = vmul.f32 %v1465_v61, %v284_v38  ;;  %v2750_v61 = vld [vmem:[#allocation33_spill] sm:$0xff]  ;;  %v2751_v38 = vld [vmem:[#allocation34_spill] sm:$0xff] }
  0xd9   :  { %306 = vmatmul.f32.vlgmr.msrb.gmra.mxu0 %v287_v41  ;;  %348 = vmatmul.f32.vlgmr.msrb.gmra.mxu1 %v287_v41 }
  0xda   :  { %389 = vmatmul.f32.vlgmr.msrb.gmra.mxu2 %v287_v41  ;;  %414 = vmatmul.f32.vlgmr.msrb.gmra.mxu3 %v287_v41  ;;  %v2752_v41 = vld [vmem:[#allocation40_spill] sm:$0xff] }
  0xdb   :  { %594 = vmatpush.msrb.mxu0 %v2727_v60  ;;  %636 = vmatpush.msrb.mxu1 %v1789_v1 }
  0xdc   :  { %677 = vmatpush.msrb.mxu2 %v1833_v17  ;;  %702 = vmatpush.msrb.mxu3 %v1791_v2 }
  0xdd   :  { %595 = vmatpush.msrb.mxu0 %v1795_v3  ;;  %637 = vmatpush.msrb.mxu1 %v1797_v4 }
  0xde   :  { %678 = vmatpush.msrb.mxu2 %v1839_v19  ;;  %703 = vmatpush.msrb.mxu3 %v1799_v5 }
  0xdf   :  { %596 = vmatpush.msrb.mxu0 %v1802_v6  ;;  %638 = vmatpush.msrb.mxu1 %v1804_v7 }
  0xe0   :  { %679 = vmatpush.msrb.mxu2 %v1851_v23  ;;  %704 = vmatpush.msrb.mxu3 %v1808_v8 }
  0xe1   :  { %597 = vmatpush.msrb.mxu0 %v1811_v9  ;;  %639 = vmatpush.msrb.mxu1 %v1813_v10 }
  0xe2   :  { %680 = vmatpush.msrb.mxu2 %v1863_v27  ;;  %705 = vmatpush.msrb.mxu3 %v1817_v11 }
  0xe3   :  { %598 = vmatpush.msrb.mxu0 %v1820_v12  ;;  %640 = vmatpush.msrb.mxu1 %v1822_v13 }
  0xe4   :  { %681 = vmatpush.msrb.mxu2 %v1875_v31  ;;  %706 = vmatpush.msrb.mxu3 %v1826_v14 }
  0xe5   :  { %599 = vmatpush.msrb.mxu0 %v1829_v15  ;;  %641 = vmatpush.msrb.mxu1 %v1831_v16 }
  0xe6   :  { %682 = vmatpush.msrb.mxu2 %v1887_v35  ;;  %707 = vmatpush.msrb.mxu3 %v1837_v18 }
  0xe7   :  { %600 = vmatpush.msrb.mxu0 %v1842_v20  ;;  %642 = vmatpush.msrb.mxu1 %v1844_v21 }
  0xe8   :  { %683 = vmatpush.msrb.mxu2 %v1899_v39  ;;  %708 = vmatpush.msrb.mxu3 %v1849_v22 }
  0xe9   :  { %601 = vmatpush.msrb.mxu0 %v1854_v24  ;;  %643 = vmatpush.msrb.mxu1 %v1856_v25 }
  0xea   :  { %684 = vmatpush.msrb.mxu2 %v1911_v43  ;;  %709 = vmatpush.msrb.mxu3 %v1861_v26 }
  0xeb   :  { %602 = vmatpush.msrb.mxu0 %v1866_v28  ;;  %644 = vmatpush.msrb.mxu1 %v1868_v29 }
  0xec   :  { %685 = vmatpush.msrb.mxu2 %v1923_v47  ;;  %710 = vmatpush.msrb.mxu3 %v1873_v30 }
  0xed   :  { %603 = vmatpush.msrb.mxu0 %v1878_v32  ;;  %645 = vmatpush.msrb.mxu1 %v1880_v33 }
  0xee   :  { %686 = vmatpush.msrb.mxu2 %v2728_v34  ;;  %711 = vmatpush.msrb.mxu3 %v2729_v36 }
  0xef   :  { %604 = vmatpush.msrb.mxu0 %v2730_v37  ;;  %646 = vmatpush.msrb.mxu1 %v2731_v40 }
  0xf0   :  { %687 = vmatpush.msrb.mxu2 %v2732_v51  ;;  %712 = vmatpush.msrb.mxu3 %v2733_v55 }
  0xf1   :  { %605 = vmatpush.msrb.mxu0 %v2734_v52  ;;  %647 = vmatpush.msrb.mxu1 %v2735_v48 }
  0xf2   :  { %688 = vmatpush.msrb.mxu2 %v2736_v62  ;;  %713 = vmatpush.msrb.mxu3 %v2737_v50 }
  0xf3   :  { %606 = vmatpush.msrb.mxu0 %v2738_v0  ;;  %648 = vmatpush.msrb.mxu1 %v2739_v59 }
  0xf4   :  { %689 = vmatpush.msrb.mxu2 %v2740_v46  ;;  %714 = vmatpush.msrb.mxu3 %v2741_v49 }
  0xf5   :  { %607 = vmatpush.msrb.mxu0 %v2742_v54  ;;  %649 = vmatpush.msrb.mxu1 %v2743_v56  ;;  %v2753_v54 = vld [vmem:[#allocation35_spill] sm:$0xff]  ;;  %v289_v56 = vld [vmem:[#allocation4 + $0x28] sm:$0xff] }
  0xf6   :  { %690 = vmatpush.msrb.mxu2 %v2744_v57  ;;  %715 = vmatpush.msrb.mxu3 %v2745_v45  ;;  %v331_v57 = vld [vmem:[#allocation4 + $0x20] sm:$0xff] }
  0xf7   :  { %608 = vmatpush.msrb.mxu0 %v2746_v63  ;;  %650 = vmatpush.msrb.mxu1 %v2747_v53 }
  0xf8   :  { %691 = vmatpush.msrb.mxu2 %v2748_v58  ;;  %716 = vmatpush.msrb.mxu3 %v2749_v44  ;;  %v397_v58 = vld [vmem:[#allocation4 + $0x38] sm:$0xff] }
  0xf9   :  { %609 = vmatpush.msrb.mxu0 %v2750_v61  ;;  %651 = vmatpush.msrb.mxu1 %v2751_v38 }
  0xfa   :  { %692 = vmatpush.msrb.mxu2 %v2752_v41  ;;  %717 = vmatpush.msrb.mxu3 %v2753_v54  ;;  %v372_v54 = vld [vmem:[#allocation4 + $0x30] sm:$0xff] }
 0x156   :  { %v307_v49 = vpop.f32.mrf.mxu0  ;;  %v349_v45 = vpop.f32.mrf.mxu1 }
 0x157   :  { %v310_v46 = vadd.f32 %v307_v49, %v289_v56  ;;  %v352_v63 = vadd.f32 %v349_v45, %v331_v57 }
 0x159   :  { %v1419_v59 = vmul.f32 -1.442695, %v310_v46  ;;  %v1420_v53 = vmul.f32 -1.442695, %v352_v63 }
 0x15b   :  { %1466 = vpow2.f32 %v1419_v59 }
 0x15c   :  { %1468 = vpow2.f32 %v1420_v53 }
 0x15d   :  { %v415_v44 = vpop.f32.mrf.mxu3  ;;  %v390_v48 = vpop.f32.mrf.mxu2 }
 0x15e   :  { %v418_v0 = vadd.f32 %v415_v44, %v397_v58  ;;  %v393_v46 = vadd.f32 %v390_v48, %v372_v54 }
 0x160   :  { %v1421_v61 = vmul.f32 -1.442695, %v418_v0 }
 0x161   :  { %v1467_v50 = vpop.eup %1466 }
 0x162   :  { %v1469_v38 = vpop.eup %1468  ;;  %v314_v62 = vadd.f32 1.0, %v1467_v50  ;;  %1470 = vpow2.f32 %v1421_v61 }
 0x163   :  { %v356_v41 = vadd.f32 1.0, %v1469_v38 }
 0x164   :  { %1472 = vrcp.f32 %v314_v62  ;;  %v326_v53 = vand.u32 2147483648, %v314_v62  ;;  %v324_v50 = vand.u32 2147483647, %v314_v62  ;;  %vm320_vm14 = vweird.f32 %v314_v62 }
 0x165   :  { %1474 = vrcp.f32 %v356_v41  ;;  %v368_v44 = vand.u32 2147483648, %v356_v41  ;;  %v366_v38 = vand.u32 2147483647, %v356_v41  ;;  %vm362_vm0 = vweird.f32 %v356_v41 }
 0x166   :  { %v327_v48 = vor.u32 1.1754944e-38, %v326_v53  ;;  %vm325_vm1 = vcmp.eq.f32.partialorder %v324_v50, 8.507059e+37 }
 0x167   :  { %vm367_vm3 = vcmp.eq.f32.partialorder %v366_v38, 8.507059e+37 }
 0x168   :  { %v1471_v52 = vpop.eup %1470 }
 0x169   :  { %v422_v49 = vadd.f32 1.0, %v1471_v52 }
 0x16a   :  { %v1473_v56 = vpop.eup %1472 }
 0x16b   :  { %v1475_v57 = vpop.eup %1474  ;;  %v316_v59 = vmul.f32 %v1473_v56, %v314_v62  ;;  %1476 = vrcp.f32 %v422_v49  ;;  %vm321_vm12 = vweird.f32 %v1473_v56  ;;  %vm428_vm5 = vweird.f32 %v422_v49 }
 0x16c   :  { %v358_v45 = vmul.f32 %v1475_v57, %v356_v41  ;;  %1478 = vtanh.f32 %v393_v46  ;;  %vm363_vm13 = vweird.f32 %v1475_v57  ;;  %vm322_vm15 = vmor %vm320_vm14, %vm321_vm12  ;;  %v434_v41 = vand.u32 2147483648, %v422_v49 }
 0x16d   :  { %v317_v63 = vsub.f32 1.0, %v316_v59  ;;  %vm364_vm2 = vmor %vm362_vm0, %vm363_vm13  ;;  %v369_v59 = vor.u32 1.1754944e-38, %v368_v44 }
 0x16e   :  { %v359_v0 = vsub.f32 1.0, %v358_v45 }
 0x16f   :  { %v318_v58 = vmul.f32 %v1473_v56, %v317_v63 }
 0x170   :  { %v360_v61 = vmul.f32 %v1475_v57, %v359_v0 }
 0x171   :  { %v1477_v55 = vpop.eup %1476  ;;  %v319_v52 = vadd.f32 %v1473_v56, %v318_v58 }
 0x172   :  { %v361_v54 = vadd.f32 %v1475_v57, %v360_v61  ;;  %v424_v51 = vmul.f32 %v1477_v55, %v422_v49  ;;  %v1479_v46 = vpop.eup %1478  ;;  %vm429_vm4 = vweird.f32 %v1477_v55 }
 0x173   :  { %v323_v40 = vsel %vm322_vm15, %v1473_v56, %v319_v52  ;;  %v432_v56 = vand.u32 2147483647, %v422_v49  ;;  %vm430_vm6 = vmor %vm428_vm5, %vm429_vm4 }
 0x174   :  { %v328_v45 = vsel %vm325_vm1, %v327_v48, %v323_v40  ;;  %v365_v63 = vsel %vm364_vm2, %v1475_v57, %v361_v54  ;;  %v425_v37 = vsub.f32 1.0, %v424_v51  ;;  %v435_v40 = vor.u32 1.1754944e-38, %v434_v41 }
 0x175   :  { %v330_v0 = vmul.f32 %v328_v45, %v2107_v42  ;;  %v370_v36 = vsel %vm367_vm3, %v369_v59, %v365_v63  ;;  %vm433_vm7 = vcmp.eq.f32.partialorder %v432_v56, 8.507059e+37 }
 0x176   :  { %v395_v34 = vmul.f32 %v1479_v46, %v370_v36  ;;  %v426_v62 = vmul.f32 %v1477_v55, %v425_v37 }
 0x178   :  { %v2175_v58 = vadd.f32 %v395_v34, %v330_v0  ;;  %v427_v53 = vadd.f32 %v1477_v55, %v426_v62 }
 0x17a   :  { %1480 = vtanh.f32 %v2175_v58  ;;  %v431_v50 = vsel %vm430_vm6, %v1477_v55, %v427_v53  ;;  %v524_v55 = vld [vmem:[#allocation4 + $0x50] sm:$0xff] }
 0x17b   :  { %v436_v51 = vsel %vm433_vm7, %v435_v40, %v431_v50 }
 0x180   :  { %v1481_v57 = vpop.eup %1480 }
 0x181   :  { %v439_v44 = vmul.f32 %v1481_v57, %v436_v51 }
 0x183   :  { %458 = vmatmul.f32.vlgmr.msra.gmra.mxu0 %v439_v44  ;;  %500 = vmatmul.f32.vlgmr.msra.gmra.mxu1 %v439_v44 }
 0x184   :  { %541 = vmatmul.f32.vlgmr.msra.gmra.mxu2 %v439_v44  ;;  %566 = vmatmul.f32.vlgmr.msra.gmra.mxu3 %v439_v44 }
 0x185   :  { %746 = vmatpush.msra.mxu0 %v2727_v60  ;;  %788 = vmatpush.msra.mxu1 %v1789_v1  ;;  %v2754_v1 = vld [vmem:[#allocation28_spill] sm:$0xff] }
 0x186   :  { %829 = vmatpush.msra.mxu2 %v1833_v17  ;;  %854 = vmatpush.msra.mxu3 %v1791_v2  ;;  %v2755_v2 = vld [vmem:[#allocation15_spill] sm:$0xff]  ;;  %v2770_v17 = vld [vmem:[#allocation38_spill] sm:$0xff] }
 0x187   :  { %747 = vmatpush.msra.mxu0 %v1795_v3  ;;  %789 = vmatpush.msra.mxu1 %v1797_v4  ;;  %v2756_v3 = vld [vmem:[#allocation16_spill] sm:$0xff]  ;;  %v2757_v4 = vld [vmem:[#allocation17_spill] sm:$0xff] }
 0x188   :  { %830 = vmatpush.msra.mxu2 %v1839_v19  ;;  %855 = vmatpush.msra.mxu3 %v1799_v5  ;;  %v2758_v5 = vld [vmem:[#allocation32_spill] sm:$0xff]  ;;  %v2772_v19 = vld [vmem:[#allocation29_spill] sm:$0xff] }
 0x189   :  { %748 = vmatpush.msra.mxu0 %v1802_v6  ;;  %790 = vmatpush.msra.mxu1 %v1804_v7  ;;  %v2759_v6 = vld [vmem:[#allocation18_spill] sm:$0xff]  ;;  %v2760_v7 = vld [vmem:[#allocation19_spill] sm:$0xff] }
 0x18a   :  { %831 = vmatpush.msra.mxu2 %v1851_v23  ;;  %856 = vmatpush.msra.mxu3 %v1808_v8  ;;  %v2761_v8 = vld [vmem:[#allocation20_spill] sm:$0xff]  ;;  %v2776_v23 = vld [vmem:[#allocation33_spill] sm:$0xff] }
 0x18b   :  { %749 = vmatpush.msra.mxu0 %v1811_v9  ;;  %791 = vmatpush.msra.mxu1 %v1813_v10  ;;  %v2762_v9 = vld [vmem:[#allocation36_spill] sm:$0xff]  ;;  %v2763_v10 = vld [vmem:[#allocation21_spill] sm:$0xff] }
 0x18c   :  { %832 = vmatpush.msra.mxu2 %v1863_v27  ;;  %857 = vmatpush.msra.mxu3 %v1817_v11  ;;  %v2764_v11 = vld [vmem:[#allocation22_spill] sm:$0xff] }
 0x18d   :  { %750 = vmatpush.msra.mxu0 %v1820_v12  ;;  %792 = vmatpush.msra.mxu1 %v1822_v13  ;;  %v2765_v12 = vld [vmem:[#allocation23_spill] sm:$0xff]  ;;  %v2766_v13 = vld [vmem:[#allocation37_spill] sm:$0xff]  ;;  %v441_v27 = vld [vmem:[#allocation4 + $0x48] sm:$0xff] }
 0x18e   :  { %833 = vmatpush.msra.mxu2 %v1875_v31  ;;  %858 = vmatpush.msra.mxu3 %v1826_v14  ;;  %v2767_v14 = vld [vmem:[#allocation24_spill] sm:$0xff] }
 0x18f   :  { %751 = vmatpush.msra.mxu0 %v1829_v15  ;;  %793 = vmatpush.msra.mxu1 %v1831_v16  ;;  %v2768_v15 = vld [vmem:[#allocation25_spill] sm:$0xff]  ;;  %v2769_v16 = vld [vmem:[#allocation26_spill] sm:$0xff] }
 0x190   :  { %834 = vmatpush.msra.mxu2 %v1887_v35  ;;  %859 = vmatpush.msra.mxu3 %v1837_v18  ;;  %v2771_v18 = vld [vmem:[#allocation27_spill] sm:$0xff] }
 0x191   :  { %752 = vmatpush.msra.mxu0 %v1842_v20  ;;  %794 = vmatpush.msra.mxu1 %v1844_v21  ;;  %v2773_v20 = vld [vmem:[#allocation30_spill] sm:$0xff]  ;;  %v2774_v21 = vld [vmem:[#allocation39_spill] sm:$0xff] }
 0x192   :  { %835 = vmatpush.msra.mxu2 %v1899_v39  ;;  %860 = vmatpush.msra.mxu3 %v1849_v22  ;;  %v2775_v22 = vld [vmem:[#allocation31_spill] sm:$0xff]  ;;  %v549_v39 = vld [vmem:[#allocation4 + $0x58] sm:$0xff] }
 0x193   :  { %753 = vmatpush.msra.mxu0 %v1854_v24  ;;  %795 = vmatpush.msra.mxu1 %v1856_v25  ;;  %v2777_v24 = vld [vmem:[#allocation34_spill] sm:$0xff]  ;;  %v2778_v25 = vld [vmem:[#allocation40_spill] sm:$0xff] }
 0x194   :  { %836 = vmatpush.msra.mxu2 %v1911_v43  ;;  %861 = vmatpush.msra.mxu3 %v1861_v26  ;;  %v2779_v26 = vld [vmem:[#allocation35_spill] sm:$0xff] }
 0x195   :  { %754 = vmatpush.msra.mxu0 %v1866_v28  ;;  %796 = vmatpush.msra.mxu1 %v1868_v29  ;;  %v483_v28 = vld [vmem:[#allocation4 + $0x40] sm:$0xff] }
 0x196   :  { %837 = vmatpush.msra.mxu2 %v1923_v47  ;;  %862 = vmatpush.msra.mxu3 %v1873_v30 }
 0x197   :  { %755 = vmatpush.msra.mxu0 %v1878_v32  ;;  %797 = vmatpush.msra.mxu1 %v1880_v33 }
 0x198   :  { %838 = vmatpush.msra.mxu2 %v2754_v1  ;;  %863 = vmatpush.msra.mxu3 %v2755_v2 }
 0x199   :  { %756 = vmatpush.msra.mxu0 %v2756_v3  ;;  %798 = vmatpush.msra.mxu1 %v2757_v4 }
 0x19a   :  { %839 = vmatpush.msra.mxu2 %v2758_v5  ;;  %864 = vmatpush.msra.mxu3 %v2759_v6 }
 0x19b   :  { %757 = vmatpush.msra.mxu0 %v2760_v7  ;;  %799 = vmatpush.msra.mxu1 %v2761_v8 }
 0x19c   :  { %840 = vmatpush.msra.mxu2 %v2762_v9  ;;  %865 = vmatpush.msra.mxu3 %v2763_v10 }
 0x19d   :  { %758 = vmatpush.msra.mxu0 %v2764_v11  ;;  %800 = vmatpush.msra.mxu1 %v2765_v12 }
 0x19e   :  { %841 = vmatpush.msra.mxu2 %v2766_v13  ;;  %866 = vmatpush.msra.mxu3 %v2767_v14 }
 0x19f   :  { %759 = vmatpush.msra.mxu0 %v2768_v15  ;;  %801 = vmatpush.msra.mxu1 %v2769_v16 }
 0x1a0   :  { %842 = vmatpush.msra.mxu2 %v2770_v17  ;;  %867 = vmatpush.msra.mxu3 %v2771_v18 }
 0x1a1   :  { %760 = vmatpush.msra.mxu0 %v2772_v19  ;;  %802 = vmatpush.msra.mxu1 %v2773_v20 }
 0x1a2   :  { %843 = vmatpush.msra.mxu2 %v2774_v21  ;;  %868 = vmatpush.msra.mxu3 %v2775_v22  ;;  %v2249_v21 = vld [vmem:[#allocation7 + $0x1e0] sm:$0xff]  ;;  %v2252_v22 = vld [vmem:[#allocation7 + $0x1f0] sm:$0xff] }
 0x1a3   :  { %761 = vmatpush.msra.mxu0 %v2776_v23  ;;  %803 = vmatpush.msra.mxu1 %v2777_v24  ;;  %v2255_v23 = vld [vmem:[#allocation7 + $0x1f8] sm:$0xff]  ;;  %v2258_v24 = vld [vmem:[#allocation7 + $0x1c8] sm:$0xff] }
 0x1a4   :  { %844 = vmatpush.msra.mxu2 %v2778_v25  ;;  %869 = vmatpush.msra.mxu3 %v2779_v26  ;;  %v2261_v25 = vld [vmem:[#allocation7 + $0x1c0] sm:$0xff]  ;;  %v2264_v26 = vld [vmem:[#allocation7 + $0x1d0] sm:$0xff] }
 0x200   :  { %v459_v29 = vpop.f32.mrf.mxu0  ;;  %v501_v30 = vpop.f32.mrf.mxu1 }
 0x201   :  { %v462_v31 = vadd.f32 %v459_v29, %v441_v27  ;;  %v504_v32 = vadd.f32 %v501_v30, %v483_v28  ;;  %v2267_v27 = vld [vmem:[#allocation7 + $0x1d8] sm:$0xff]  ;;  %v2270_v28 = vld [vmem:[#allocation7 + $0x1a8] sm:$0xff]  ;;  %v2273_v29 = vld [vmem:[#allocation7 + $0x1a0] sm:$0xff] }
 0x202   :  { %v2276_v30 = vld [vmem:[#allocation7 + $0x1b0] sm:$0xff] }
 0x203   :  { %v1422_v33 = vmul.f32 -1.442695, %v462_v31  ;;  %v1423_v35 = vmul.f32 -1.442695, %v504_v32  ;;  %v2279_v31 = vld [vmem:[#allocation7 + $0x1b8] sm:$0xff]  ;;  %v2282_v32 = vld [vmem:[#allocation7 + $0x188] sm:$0xff] }
 0x205   :  { %1482 = vpow2.f32 %v1422_v33  ;;  %v2285_v33 = vld [vmem:[#allocation7 + $0x180] sm:$0xff] }
 0x206   :  { %1484 = vpow2.f32 %v1423_v35  ;;  %v2288_v35 = vld [vmem:[#allocation7 + $0x190] sm:$0xff] }
 0x207   :  { %v567_v43 = vpop.f32.mrf.mxu3  ;;  %v542_v49 = vpop.f32.mrf.mxu2 }
 0x208   :  { %v570_v47 = vadd.f32 %v567_v43, %v549_v39  ;;  %v545_v48 = vadd.f32 %v542_v49, %v524_v55  ;;  %v2291_v39 = vld [vmem:[#allocation7 + $0x198] sm:$0xff]  ;;  %v2294_v43 = vld [vmem:[#allocation7 + $0x168] sm:$0xff] }
 0x209   :  { %v2315_v55 = vld [vmem:[#allocation7 + $0x158] sm:$0xff]  ;;  %v2318_v49 = vld [vmem:[#allocation7 + $0x128] sm:$0xff] }
 0x20a   :  { %v1424_v60 = vmul.f32 -1.442695, %v570_v47  ;;  %v2297_v47 = vld [vmem:[#allocation7 + $0x160] sm:$0xff] }
 0x20b   :  { %v1483_v42 = vpop.eup %1482 }
 0x20c   :  { %v1485_v34 = vpop.eup %1484  ;;  %v466_v36 = vadd.f32 1.0, %v1483_v42  ;;  %1486 = vpow2.f32 %v1424_v60  ;;  %v2300_v60 = vld [vmem:[#allocation7 + $0x170] sm:$0xff]  ;;  %v2303_v42 = vld [vmem:[#allocation7 + $0x178] sm:$0xff] }
 0x20d   :  { %v508_v37 = vadd.f32 1.0, %v1485_v34  ;;  %v2306_v34 = vld [vmem:[#allocation7 + $0x148] sm:$0xff] }
 0x20e   :  { %1488 = vrcp.f32 %v466_v36  ;;  %v478_v63 = vand.u32 2147483648, %v466_v36  ;;  %v476_v53 = vand.u32 2147483647, %v466_v36  ;;  %vm472_vm10 = vweird.f32 %v466_v36 }
 0x20f   :  { %1490 = vrcp.f32 %v508_v37  ;;  %v520_v41 = vand.u32 2147483648, %v508_v37  ;;  %v518_v50 = vand.u32 2147483647, %v508_v37  ;;  %vm514_vm12 = vweird.f32 %v508_v37 }
 0x210   :  { %v479_v51 = vor.u32 1.1754944e-38, %v478_v63  ;;  %vm477_vm13 = vcmp.eq.f32.partialorder %v476_v53, 8.507059e+37  ;;  %v2345_v63 = vld [vmem:[#allocation7 + $0xe0] sm:$0xff]  ;;  %v2354_v53 = vld [vmem:[#allocation7 + $0xc8] sm:$0xff] }
 0x211   :  { %v521_v3 = vor.u32 1.1754944e-38, %v520_v41  ;;  %vm519_vm15 = vcmp.eq.f32.partialorder %v518_v50, 8.507059e+37  ;;  %v2357_v41 = vld [vmem:[#allocation7 + $0xc0] sm:$0xff]  ;;  %v2363_v50 = vld [vmem:[#allocation7 + $0xd8] sm:$0xff] }
 0x212   :  { %v1487_v61 = vpop.eup %1486  ;;  %2781 = vst [vmem:[#allocation28_spill] sm:$0xff] %v2363_v50 }
 0x213   :  { %v574_v38 = vadd.f32 1.0, %v1487_v61  ;;  %v2321_v61 = vld [vmem:[#allocation7 + $0x120] sm:$0xff] }
 0x214   :  { %v1489_v52 = vpop.eup %1488 }
 0x215   :  { %v1491_v54 = vpop.eup %1490  ;;  %v468_v59 = vmul.f32 %v1489_v52, %v466_v36  ;;  %1492 = vrcp.f32 %v574_v38  ;;  %vm473_vm8 = vweird.f32 %v1489_v52  ;;  %v586_v14 = vand.u32 2147483648, %v574_v38  ;;  %v2309_v36 = vld [vmem:[#allocation7 + $0x140] sm:$0xff] }
 0x216   :  { %v510_v46 = vmul.f32 %v1491_v54, %v508_v37  ;;  %1494 = vtanh.f32 %v545_v48  ;;  %vm515_vm9 = vweird.f32 %v1491_v54  ;;  %vm474_vm11 = vmor %vm472_vm10, %vm473_vm8  ;;  %vm580_vm1 = vweird.f32 %v574_v38  ;;  %v2312_v37 = vld [vmem:[#allocation7 + $0x150] sm:$0xff]  ;;  %v2330_v48 = vld [vmem:[#allocation7 + $0x108] sm:$0xff] }
 0x217   :  { %v469_v45 = vsub.f32 1.0, %v468_v59  ;;  %vm516_vm14 = vmor %vm514_vm12, %vm515_vm9  ;;  %v584_v15 = vand.u32 2147483647, %v574_v38  ;;  %v587_v17 = vor.u32 1.1754944e-38, %v586_v14  ;;  %v2336_v59 = vld [vmem:[#allocation7 + $0x110] sm:$0xff]  ;;  %v2414_v14 = vld [vmem:[#allocation7 + $0x28] sm:$0xff] }
 0x218   :  { %v511_v0 = vsub.f32 1.0, %v510_v46  ;;  %v2339_v46 = vld [vmem:[#allocation7 + $0x118] sm:$0xff]  ;;  %2798 = vst [vmem:[#allocation27_spill] sm:$0xff] %v2414_v14 }
 0x219   :  { %v470_v62 = vmul.f32 %v1489_v52, %v469_v45  ;;  %vm585_vm3 = vcmp.eq.f32.partialorder %v584_v15, 8.507059e+37  ;;  %v2342_v45 = vld [vmem:[#allocation7 + $0xe8] sm:$0xff]  ;;  %v2417_v15 = vld [vmem:[#allocation7 + $0x20] sm:$0xff] }
 0x21a   :  { %v512_v56 = vmul.f32 %v1491_v54, %v511_v0  ;;  %v2348_v0 = vld [vmem:[#allocation7 + $0xf0] sm:$0xff]  ;;  %2799 = vst [vmem:[#allocation29_spill] sm:$0xff] %v2417_v15 }
 0x21b   :  { %v1493_v40 = vpop.eup %1492  ;;  %v471_v57 = vadd.f32 %v1489_v52, %v470_v62  ;;  %v2351_v62 = vld [vmem:[#allocation7 + $0xf8] sm:$0xff] }
 0x21c   :  { %v513_v44 = vadd.f32 %v1491_v54, %v512_v56  ;;  %v576_v1 = vmul.f32 %v1493_v40, %v574_v38  ;;  %v1495_v4 = vpop.eup %1494  ;;  %vm581_vm0 = vweird.f32 %v1493_v40  ;;  %v2324_v38 = vld [vmem:[#allocation7 + $0x130] sm:$0xff] }
 0x21d   :  { %v475_v2 = vsel %vm474_vm11, %v1489_v52, %v471_v57  ;;  %vm582_vm2 = vmor %vm580_vm1, %vm581_vm0  ;;  %v2327_v52 = vld [vmem:[#allocation7 + $0x138] sm:$0xff]  ;;  %v2360_v56 = vld [vmem:[#allocation7 + $0xd0] sm:$0xff] }
 0x21e   :  { %v480_v5 = vsel %vm477_vm13, %v479_v51, %v475_v2  ;;  %v517_v6 = vsel %vm516_vm14, %v1491_v54, %v513_v44  ;;  %v577_v7 = vsub.f32 1.0, %v576_v1  ;;  %v2333_v54 = vld [vmem:[#allocation7 + $0x100] sm:$0xff]  ;;  %2780 = vst [vmem:[#allocation14_spill] sm:$0xff] %v2360_v56  ;;  %v2372_v51 = vld [vmem:[#allocation7 + $0xb0] sm:$0xff]  ;;  %v2375_v44 = vld [vmem:[#allocation7 + $0xb8] sm:$0xff] }
 0x21f   :  { %v482_v8 = vmul.f32 %v480_v5, %v2175_v58  ;;  %v522_v9 = vsel %vm519_vm15, %v521_v3, %v517_v6  ;;  %v2246_v58 = vld [vmem:[#allocation7 + $0x1e8] sm:$0xff]  ;;  %v2369_v57 = vld [vmem:[#allocation7 + $0xa0] sm:$0xff]  ;;  %2784 = vst [vmem:[#allocation17_spill] sm:$0xff] %v2372_v51  ;;  %v2384_v3 = vld [vmem:[#allocation7 + $0x90] sm:$0xff] }
 0x220   :  { %v547_v10 = vmul.f32 %v1495_v4, %v522_v9  ;;  %v578_v11 = vmul.f32 %v1493_v40, %v577_v7  ;;  %2783 = vst [vmem:[#allocation16_spill] sm:$0xff] %v2369_v57  ;;  %v2378_v1 = vld [vmem:[#allocation7 + $0x88] sm:$0xff]  ;;  %v2381_v2 = vld [vmem:[#allocation7 + $0x80] sm:$0xff]  ;;  %v2387_v4 = vld [vmem:[#allocation7 + $0x98] sm:$0xff] }
 0x221   :  { %2785 = vst [vmem:[#allocation32_spill] sm:$0xff] %v2375_v44  ;;  %v2390_v5 = vld [vmem:[#allocation7 + $0x68] sm:$0xff]  ;;  %v2393_v6 = vld [vmem:[#allocation7 + $0x60] sm:$0xff]  ;;  %v2396_v7 = vld [vmem:[#allocation7 + $0x70] sm:$0xff] }
 0x222   :  { %v2243_v12 = vadd.f32 %v547_v10, %v482_v8  ;;  %v579_v13 = vadd.f32 %v1493_v40, %v578_v11  ;;  %2786 = vst [vmem:[#allocation18_spill] sm:$0xff] %v2378_v1  ;;  %v2399_v8 = vld [vmem:[#allocation7 + $0x78] sm:$0xff]  ;;  %v2402_v9 = vld [vmem:[#allocation7 + $0x48] sm:$0xff]  ;;  %v2405_v10 = vld [vmem:[#allocation7 + $0x40] sm:$0xff] }
 0x223   :  { %2787 = vst [vmem:[#allocation19_spill] sm:$0xff] %v2381_v2  ;;  %v2408_v11 = vld [vmem:[#allocation7 + $0x50] sm:$0xff] }
 0x224   :  { %1496 = vtanh.f32 %v2243_v12  ;;  %v583_v16 = vsel %vm582_vm2, %v1493_v40, %v579_v13  ;;  %v2366_v40 = vld [vmem:[#allocation7 + $0xa8] sm:$0xff]  ;;  %2788 = vst [vmem:[#allocation20_spill] sm:$0xff] %v2384_v3  ;;  %v2411_v13 = vld [vmem:[#allocation7 + $0x58] sm:$0xff] }
 0x225   :  { %v588_v19 = vsel %vm585_vm3, %v587_v17, %v583_v16  ;;  %2782 = vst [vmem:[#allocation15_spill] sm:$0xff] %v2366_v40  ;;  %v2420_v16 = vld [vmem:[#allocation7 + $0x30] sm:$0xff]  ;;  %v2423_v17 = vld [vmem:[#allocation7 + $0x38] sm:$0xff] }
 0x226   :  { %2789 = vst [vmem:[#allocation36_spill] sm:$0xff] %v2387_v4 }
 0x227   :  { %2790 = vst [vmem:[#allocation21_spill] sm:$0xff] %v2390_v5 }
 0x228   :  { %2791 = vst [vmem:[#allocation22_spill] sm:$0xff] %v2393_v6 }
 0x229   :  { %2792 = vst [vmem:[#allocation23_spill] sm:$0xff] %v2396_v7 }
 0x22a   :  { %v1497_v18 = vpop.eup %1496  ;;  %2793 = vst [vmem:[#allocation37_spill] sm:$0xff] %v2399_v8 }
 0x22b   :  { %v591_v20 = vmul.f32 %v1497_v18, %v588_v19  ;;  %2794 = vst [vmem:[#allocation24_spill] sm:$0xff] %v2402_v9  ;;  %v2426_v18 = vld [vmem:[#allocation7 + $0x8] sm:$0xff]  ;;  %v2429_v19 = vld [vmem:[#allocation7] sm:$0xff] }
 0x22c   :  { %2795 = vst [vmem:[#allocation25_spill] sm:$0xff] %v2405_v10 }
 0x22d   :  { %610 = vmatmul.f32.vlgmr.msrb.gmra.mxu0 %v591_v20  ;;  %652 = vmatmul.f32.vlgmr.msrb.gmra.mxu1 %v591_v20  ;;  %2796 = vst [vmem:[#allocation26_spill] sm:$0xff] %v2408_v11 }
 0x22e   :  { %693 = vmatmul.f32.vlgmr.msrb.gmra.mxu2 %v591_v20  ;;  %718 = vmatmul.f32.vlgmr.msrb.gmra.mxu3 %v591_v20  ;;  %2797 = vst [vmem:[#allocation38_spill] sm:$0xff] %v2411_v13  ;;  %v2432_v20 = vld [vmem:[#allocation7 + $0x10] sm:$0xff] }
 0x22f   :  { %898 = vmatpush.msrb.mxu0 %v2246_v58  ;;  %940 = vmatpush.msrb.mxu1 %v2249_v21  ;;  %2800 = vst [vmem:[#allocation30_spill] sm:$0xff] %v2420_v16 }
 0x230   :  { %981 = vmatpush.msrb.mxu2 %v2252_v22  ;;  %1006 = vmatpush.msrb.mxu3 %v2255_v23  ;;  %2801 = vst [vmem:[#allocation39_spill] sm:$0xff] %v2423_v17 }
 0x231   :  { %899 = vmatpush.msrb.mxu0 %v2258_v24  ;;  %941 = vmatpush.msrb.mxu1 %v2261_v25  ;;  %2802 = vst [vmem:[#allocation31_spill] sm:$0xff] %v2426_v18 }
 0x232   :  { %982 = vmatpush.msrb.mxu2 %v2264_v26  ;;  %1007 = vmatpush.msrb.mxu3 %v2267_v27  ;;  %2803 = vst [vmem:[#allocation33_spill] sm:$0xff] %v2429_v19 }
 0x233   :  { %900 = vmatpush.msrb.mxu0 %v2270_v28  ;;  %942 = vmatpush.msrb.mxu1 %v2273_v29  ;;  %2804 = vst [vmem:[#allocation34_spill] sm:$0xff] %v2432_v20 }
 0x234   :  { %983 = vmatpush.msrb.mxu2 %v2276_v30  ;;  %1008 = vmatpush.msrb.mxu3 %v2279_v31 }
 0x235   :  { %901 = vmatpush.msrb.mxu0 %v2282_v32  ;;  %943 = vmatpush.msrb.mxu1 %v2285_v33 }
 0x236   :  { %984 = vmatpush.msrb.mxu2 %v2288_v35  ;;  %1009 = vmatpush.msrb.mxu3 %v2291_v39 }
 0x237   :  { %902 = vmatpush.msrb.mxu0 %v2294_v43  ;;  %944 = vmatpush.msrb.mxu1 %v2297_v47 }
 0x238   :  { %985 = vmatpush.msrb.mxu2 %v2300_v60  ;;  %1010 = vmatpush.msrb.mxu3 %v2303_v42 }
 0x239   :  { %903 = vmatpush.msrb.mxu0 %v2306_v34  ;;  %945 = vmatpush.msrb.mxu1 %v2309_v36 }
 0x23a   :  { %986 = vmatpush.msrb.mxu2 %v2312_v37  ;;  %1011 = vmatpush.msrb.mxu3 %v2315_v55 }
 0x23b   :  { %904 = vmatpush.msrb.mxu0 %v2318_v49  ;;  %946 = vmatpush.msrb.mxu1 %v2321_v61 }
 0x23c   :  { %987 = vmatpush.msrb.mxu2 %v2324_v38  ;;  %1012 = vmatpush.msrb.mxu3 %v2327_v52 }
 0x23d   :  { %905 = vmatpush.msrb.mxu0 %v2330_v48  ;;  %947 = vmatpush.msrb.mxu1 %v2333_v54 }
 0x23e   :  { %988 = vmatpush.msrb.mxu2 %v2336_v59  ;;  %1013 = vmatpush.msrb.mxu3 %v2339_v46 }
 0x23f   :  { %906 = vmatpush.msrb.mxu0 %v2342_v45  ;;  %948 = vmatpush.msrb.mxu1 %v2345_v63 }
 0x240   :  { %989 = vmatpush.msrb.mxu2 %v2348_v0  ;;  %1014 = vmatpush.msrb.mxu3 %v2351_v62 }
 0x241   :  { %907 = vmatpush.msrb.mxu0 %v2354_v53  ;;  %949 = vmatpush.msrb.mxu1 %v2357_v41 }
 0x242   :  { %990 = vmatpush.msrb.mxu2 %v2360_v56  ;;  %1015 = vmatpush.msrb.mxu3 %v2363_v50 }
 0x243   :  { %908 = vmatpush.msrb.mxu0 %v2366_v40  ;;  %950 = vmatpush.msrb.mxu1 %v2369_v57 }
 0x244   :  { %991 = vmatpush.msrb.mxu2 %v2372_v51  ;;  %1016 = vmatpush.msrb.mxu3 %v2375_v44 }
 0x245   :  { %909 = vmatpush.msrb.mxu0 %v2378_v1  ;;  %951 = vmatpush.msrb.mxu1 %v2381_v2 }
 0x246   :  { %992 = vmatpush.msrb.mxu2 %v2384_v3  ;;  %1017 = vmatpush.msrb.mxu3 %v2387_v4 }
 0x247   :  { %910 = vmatpush.msrb.mxu0 %v2390_v5  ;;  %952 = vmatpush.msrb.mxu1 %v2393_v6 }
 0x248   :  { %993 = vmatpush.msrb.mxu2 %v2396_v7  ;;  %1018 = vmatpush.msrb.mxu3 %v2399_v8  ;;  %v701_v8 = vld [vmem:[#allocation4 + $0x78] sm:$0xff] }
 0x249   :  { %911 = vmatpush.msrb.mxu0 %v2402_v9  ;;  %953 = vmatpush.msrb.mxu1 %v2405_v10 }
 0x24a   :  { %994 = vmatpush.msrb.mxu2 %v2408_v11  ;;  %1019 = vmatpush.msrb.mxu3 %v2411_v13 }
 0x24b   :  { %912 = vmatpush.msrb.mxu0 %v2414_v14  ;;  %954 = vmatpush.msrb.mxu1 %v2417_v15  ;;  %v2435_v15 = vld [vmem:[#allocation7 + $0x18] sm:$0xff]  ;;  %v635_v14 = vld [vmem:[#allocation4 + $0x60] sm:$0xff] }
 0x24c   :  { %995 = vmatpush.msrb.mxu2 %v2420_v16  ;;  %1020 = vmatpush.msrb.mxu3 %v2423_v17  ;;  %2805 = vst [vmem:[#allocation40_spill] sm:$0xff] %v2435_v15  ;;  %v593_v16 = vld [vmem:[#allocation4 + $0x68] sm:$0xff] }
 0x24d   :  { %913 = vmatpush.msrb.mxu0 %v2426_v18  ;;  %955 = vmatpush.msrb.mxu1 %v2429_v19 }
 0x24e   :  { %996 = vmatpush.msrb.mxu2 %v2432_v20  ;;  %1021 = vmatpush.msrb.mxu3 %v2435_v15  ;;  %v676_v15 = vld [vmem:[#allocation4 + $0x70] sm:$0xff] }
 0x2aa   :  { %v611_v13 = vpop.f32.mrf.mxu0  ;;  %v653_v17 = vpop.f32.mrf.mxu1 }
 0x2ab   :  { %v614_v11 = vadd.f32 %v611_v13, %v593_v16  ;;  %v656_v10 = vadd.f32 %v653_v17, %v635_v14 }
 0x2ad   :  { %v1425_v9 = vmul.f32 -1.442695, %v614_v11  ;;  %v1426_v18 = vmul.f32 -1.442695, %v656_v10 }
 0x2af   :  { %1498 = vpow2.f32 %v1425_v9 }
 0x2b0   :  { %1500 = vpow2.f32 %v1426_v18 }
 0x2b1   :  { %v719_v19 = vpop.f32.mrf.mxu3  ;;  %v694_v2 = vpop.f32.mrf.mxu2 }
 0x2b2   :  { %v722_v7 = vadd.f32 %v719_v19, %v701_v8  ;;  %v697_v11 = vadd.f32 %v694_v2, %v676_v15 }
 0x2b4   :  { %v1427_v6 = vmul.f32 -1.442695, %v722_v7 }
 0x2b5   :  { %v1499_v5 = vpop.eup %1498 }
 0x2b6   :  { %v1501_v20 = vpop.eup %1500  ;;  %v618_v4 = vadd.f32 1.0, %v1499_v5  ;;  %1502 = vpow2.f32 %v1427_v6 }
 0x2b7   :  { %v660_v3 = vadd.f32 1.0, %v1501_v20 }
 0x2b8   :  { %1504 = vrcp.f32 %v618_v4  ;;  %v630_v8 = vand.u32 2147483648, %v618_v4  ;;  %v628_v5 = vand.u32 2147483647, %v618_v4  ;;  %vm624_vm6 = vweird.f32 %v618_v4 }
 0x2b9   :  { %1506 = vrcp.f32 %v660_v3  ;;  %v672_v6 = vand.u32 2147483648, %v660_v3  ;;  %v670_v20 = vand.u32 2147483647, %v660_v3  ;;  %vm666_vm8 = vweird.f32 %v660_v3 }
 0x2ba   :  { %v631_v2 = vor.u32 1.1754944e-38, %v630_v8  ;;  %vm629_vm9 = vcmp.eq.f32.partialorder %v628_v5, 8.507059e+37 }
 0x2bb   :  { %vm671_vm11 = vcmp.eq.f32.partialorder %v670_v20, 8.507059e+37  ;;  %v2813_v20 = vld [vmem:[#allocation19_spill] sm:$0xff] }
 0x2bc   :  { %v1503_v1 = vpop.eup %1502 }
 0x2bd   :  { %v726_v13 = vadd.f32 1.0, %v1503_v1 }
 0x2be   :  { %v1505_v14 = vpop.eup %1504 }
 0x2bf   :  { %v1507_v10 = vpop.eup %1506  ;;  %v620_v9 = vmul.f32 %v1505_v14, %v618_v4  ;;  %1508 = vrcp.f32 %v726_v13  ;;  %vm625_vm4 = vweird.f32 %v1505_v14  ;;  %vm732_vm13 = vweird.f32 %v726_v13 }
 0x2c0   :  { %v662_v16 = vmul.f32 %v1507_v10, %v660_v3  ;;  %1510 = vtanh.f32 %v697_v11  ;;  %vm667_vm5 = vweird.f32 %v1507_v10  ;;  %vm626_vm7 = vmor %vm624_vm6, %vm625_vm4  ;;  %v738_v3 = vand.u32 2147483648, %v726_v13 }
 0x2c1   :  { %v621_v17 = vsub.f32 1.0, %v620_v9  ;;  %vm668_vm10 = vmor %vm666_vm8, %vm667_vm5  ;;  %v673_v9 = vor.u32 1.1754944e-38, %v672_v6 }
 0x2c2   :  { %v663_v7 = vsub.f32 1.0, %v662_v16 }
 0x2c3   :  { %v622_v18 = vmul.f32 %v1505_v14, %v621_v17 }
 0x2c4   :  { %v664_v19 = vmul.f32 %v1507_v10, %v663_v7 }
 0x2c5   :  { %v1509_v44 = vpop.eup %1508  ;;  %v623_v1 = vadd.f32 %v1505_v14, %v622_v18 }
 0x2c6   :  { %v665_v15 = vadd.f32 %v1507_v10, %v664_v19  ;;  %v728_v51 = vmul.f32 %v1509_v44, %v726_v13  ;;  %v1511_v11 = vpop.eup %1510  ;;  %vm733_vm12 = vweird.f32 %v1509_v44  ;;  %v2812_v19 = vld [vmem:[#allocation18_spill] sm:$0xff] }
 0x2c7   :  { %v627_v57 = vsel %vm626_vm7, %v1505_v14, %v623_v1  ;;  %v736_v14 = vand.u32 2147483647, %v726_v13  ;;  %vm734_vm14 = vmor %vm732_vm13, %vm733_vm12  ;;  %v2811_v13 = vld [vmem:[#allocation32_spill] sm:$0xff] }
 0x2c8   :  { %v632_v16 = vsel %vm629_vm9, %v631_v2, %v627_v57  ;;  %v669_v17 = vsel %vm668_vm10, %v1507_v10, %v665_v15  ;;  %v729_v40 = vsub.f32 1.0, %v728_v51  ;;  %v739_v57 = vor.u32 1.1754944e-38, %v738_v3  ;;  %v2814_v1 = vld [vmem:[#allocation20_spill] sm:$0xff]  ;;  %v2816_v15 = vld [vmem:[#allocation21_spill] sm:$0xff]  ;;  %v2824_v3 = vld [vmem:[#allocation27_spill] sm:$0xff] }
 0x2c9   :  { %v634_v7 = vmul.f32 %v632_v16, %v2243_v12  ;;  %v674_v50 = vsel %vm671_vm11, %v673_v9, %v669_v17  ;;  %vm737_vm15 = vcmp.eq.f32.partialorder %v736_v14, 8.507059e+37  ;;  %v2806_v12 = vld [vmem:[#allocation14_spill] sm:$0xff]  ;;  %v2815_v2 = vld [vmem:[#allocation36_spill] sm:$0xff]  ;;  %v2819_v16 = vld [vmem:[#allocation37_spill] sm:$0xff] }
 0x2ca   :  { %v699_v56 = vmul.f32 %v1511_v11, %v674_v50  ;;  %v730_v4 = vmul.f32 %v1509_v44, %v729_v40  ;;  %v2808_v50 = vld [vmem:[#allocation15_spill] sm:$0xff]  ;;  %v2809_v40 = vld [vmem:[#allocation16_spill] sm:$0xff]  ;;  %v2817_v9 = vld [vmem:[#allocation22_spill] sm:$0xff] }
 0x2cb   :  { %v2818_v11 = vld [vmem:[#allocation23_spill] sm:$0xff]  ;;  %v2820_v17 = vld [vmem:[#allocation24_spill] sm:$0xff]  ;;  %v2825_v14 = vld [vmem:[#allocation29_spill] sm:$0xff] }
 0x2cc   :  { %v2439_v18 = vadd.f32 %v699_v56, %v634_v7  ;;  %v731_v8 = vadd.f32 %v1509_v44, %v730_v4  ;;  %v2807_v56 = vld [vmem:[#allocation28_spill] sm:$0xff]  ;;  %v2821_v7 = vld [vmem:[#allocation25_spill] sm:$0xff]  ;;  %v2822_v4 = vld [vmem:[#allocation26_spill] sm:$0xff] }
 0x2ce   :  { %1512 = vtanh.f32 %v2439_v18  ;;  %v735_v5 = vsel %vm734_vm14, %v1509_v44, %v731_v8  ;;  %v2810_v44 = vld [vmem:[#allocation17_spill] sm:$0xff]  ;;  %v2823_v8 = vld [vmem:[#allocation38_spill] sm:$0xff] }
 0x2cf   :  { %v740_v51 = vsel %vm737_vm15, %v739_v57, %v735_v5  ;;  %v2826_v5 = vld [vmem:[#allocation30_spill] sm:$0xff]  ;;  %v2827_v57 = vld [vmem:[#allocation39_spill] sm:$0xff] }
 0x2d4   :  { %v1513_v10 = vpop.eup %1512 }
 0x2d5   :  { %v743_v6 = vmul.f32 %v1513_v10, %v740_v51  ;;  %v2828_v10 = vld [vmem:[#allocation31_spill] sm:$0xff]  ;;  %v2829_v51 = vld [vmem:[#allocation33_spill] sm:$0xff] }
 0x2d7   :  { %762 = vmatmul.f32.vlgmr.msra.gmra.mxu0 %v743_v6  ;;  %804 = vmatmul.f32.vlgmr.msra.gmra.mxu1 %v743_v6 }
 0x2d8   :  { %845 = vmatmul.f32.vlgmr.msra.gmra.mxu2 %v743_v6  ;;  %870 = vmatmul.f32.vlgmr.msra.gmra.mxu3 %v743_v6  ;;  %v2830_v6 = vld [vmem:[#allocation34_spill] sm:$0xff] }
 0x2d9   :  { %1050 = vmatpush.msra.mxu0 %v2246_v58  ;;  %1092 = vmatpush.msra.mxu1 %v2249_v21 }
 0x2da   :  { %1133 = vmatpush.msra.mxu2 %v2252_v22  ;;  %1158 = vmatpush.msra.mxu3 %v2255_v23 }
 0x2db   :  { %1051 = vmatpush.msra.mxu0 %v2258_v24  ;;  %1093 = vmatpush.msra.mxu1 %v2261_v25 }
 0x2dc   :  { %1134 = vmatpush.msra.mxu2 %v2264_v26  ;;  %1159 = vmatpush.msra.mxu3 %v2267_v27 }
 0x2dd   :  { %1052 = vmatpush.msra.mxu0 %v2270_v28  ;;  %1094 = vmatpush.msra.mxu1 %v2273_v29 }
 0x2de   :  { %1135 = vmatpush.msra.mxu2 %v2276_v30  ;;  %1160 = vmatpush.msra.mxu3 %v2279_v31 }
 0x2df   :  { %1053 = vmatpush.msra.mxu0 %v2282_v32  ;;  %1095 = vmatpush.msra.mxu1 %v2285_v33 }
 0x2e0   :  { %1136 = vmatpush.msra.mxu2 %v2288_v35  ;;  %1161 = vmatpush.msra.mxu3 %v2291_v39 }
 0x2e1   :  { %1054 = vmatpush.msra.mxu0 %v2294_v43  ;;  %1096 = vmatpush.msra.mxu1 %v2297_v47 }
 0x2e2   :  { %1137 = vmatpush.msra.mxu2 %v2300_v60  ;;  %1162 = vmatpush.msra.mxu3 %v2303_v42 }
 0x2e3   :  { %1055 = vmatpush.msra.mxu0 %v2306_v34  ;;  %1097 = vmatpush.msra.mxu1 %v2309_v36 }
 0x2e4   :  { %1138 = vmatpush.msra.mxu2 %v2312_v37  ;;  %1163 = vmatpush.msra.mxu3 %v2315_v55 }
 0x2e5   :  { %1056 = vmatpush.msra.mxu0 %v2318_v49  ;;  %1098 = vmatpush.msra.mxu1 %v2321_v61 }
 0x2e6   :  { %1139 = vmatpush.msra.mxu2 %v2324_v38  ;;  %1164 = vmatpush.msra.mxu3 %v2327_v52 }
 0x2e7   :  { %1057 = vmatpush.msra.mxu0 %v2330_v48  ;;  %1099 = vmatpush.msra.mxu1 %v2333_v54 }
 0x2e8   :  { %1140 = vmatpush.msra.mxu2 %v2336_v59  ;;  %1165 = vmatpush.msra.mxu3 %v2339_v46 }
 0x2e9   :  { %1058 = vmatpush.msra.mxu0 %v2342_v45  ;;  %1100 = vmatpush.msra.mxu1 %v2345_v63 }
 0x2ea   :  { %1141 = vmatpush.msra.mxu2 %v2348_v0  ;;  %1166 = vmatpush.msra.mxu3 %v2351_v62 }
 0x2eb   :  { %1059 = vmatpush.msra.mxu0 %v2354_v53  ;;  %1101 = vmatpush.msra.mxu1 %v2357_v41 }
 0x2ec   :  { %1142 = vmatpush.msra.mxu2 %v2806_v12  ;;  %1167 = vmatpush.msra.mxu3 %v2807_v56 }
 0x2ed   :  { %1060 = vmatpush.msra.mxu0 %v2808_v50  ;;  %1102 = vmatpush.msra.mxu1 %v2809_v40 }
 0x2ee   :  { %1143 = vmatpush.msra.mxu2 %v2810_v44  ;;  %1168 = vmatpush.msra.mxu3 %v2811_v13 }
 0x2ef   :  { %1061 = vmatpush.msra.mxu0 %v2812_v19  ;;  %1103 = vmatpush.msra.mxu1 %v2813_v20 }
 0x2f0   :  { %1144 = vmatpush.msra.mxu2 %v2814_v1  ;;  %1169 = vmatpush.msra.mxu3 %v2815_v2 }
 0x2f1   :  { %1062 = vmatpush.msra.mxu0 %v2816_v15  ;;  %1104 = vmatpush.msra.mxu1 %v2817_v9 }
 0x2f2   :  { %1145 = vmatpush.msra.mxu2 %v2818_v11  ;;  %1170 = vmatpush.msra.mxu3 %v2819_v16 }
 0x2f3   :  { %1063 = vmatpush.msra.mxu0 %v2820_v17  ;;  %1105 = vmatpush.msra.mxu1 %v2821_v7  ;;  %v2831_v17 = vld [vmem:[#allocation40_spill] sm:$0xff]  ;;  %v745_v7 = vld [vmem:[#allocation4 + $0x88] sm:$0xff] }
 0x2f4   :  { %1146 = vmatpush.msra.mxu2 %v2822_v4  ;;  %1171 = vmatpush.msra.mxu3 %v2823_v8  ;;  %v787_v4 = vld [vmem:[#allocation4 + $0x80] sm:$0xff] }
 0x2f5   :  { %1064 = vmatpush.msra.mxu0 %v2824_v3  ;;  %1106 = vmatpush.msra.mxu1 %v2825_v14 }
 0x2f6   :  { %1147 = vmatpush.msra.mxu2 %v2826_v5  ;;  %1172 = vmatpush.msra.mxu3 %v2827_v57  ;;  %v853_v5 = vld [vmem:[#allocation4 + $0x98] sm:$0xff] }
 0x2f7   :  { %1065 = vmatpush.msra.mxu0 %v2828_v10  ;;  %1107 = vmatpush.msra.mxu1 %v2829_v51 }
 0x2f8   :  { %1148 = vmatpush.msra.mxu2 %v2830_v6  ;;  %1173 = vmatpush.msra.mxu3 %v2831_v17  ;;  %v828_v17 = vld [vmem:[#allocation4 + $0x90] sm:$0xff] }
 0x354   :  { %v763_v16 = vpop.f32.mrf.mxu0  ;;  %v805_v8 = vpop.f32.mrf.mxu1 }
 0x355   :  { %v766_v11 = vadd.f32 %v763_v16, %v745_v7  ;;  %v808_v3 = vadd.f32 %v805_v8, %v787_v4 }
 0x357   :  { %v1428_v9 = vmul.f32 -1.442695, %v766_v11  ;;  %v1429_v14 = vmul.f32 -1.442695, %v808_v3 }
 0x359   :  { %1514 = vpow2.f32 %v1428_v9 }
 0x35a   :  { %1516 = vpow2.f32 %v1429_v14 }
 0x35b   :  { %v871_v57 = vpop.f32.mrf.mxu3  ;;  %v846_v20 = vpop.f32.mrf.mxu2 }
 0x35c   :  { %v874_v15 = vadd.f32 %v871_v57, %v853_v5  ;;  %v849_v11 = vadd.f32 %v846_v20, %v828_v17 }
 0x35e   :  { %v1430_v10 = vmul.f32 -1.442695, %v874_v15 }
 0x35f   :  { %v1515_v2 = vpop.eup %1514 }
 0x360   :  { %v1517_v51 = vpop.eup %1516  ;;  %v770_v1 = vadd.f32 1.0, %v1515_v2  ;;  %1518 = vpow2.f32 %v1430_v10 }
 0x361   :  { %v812_v6 = vadd.f32 1.0, %v1517_v51 }
 0x362   :  { %1520 = vrcp.f32 %v770_v1  ;;  %v782_v14 = vand.u32 2147483648, %v770_v1  ;;  %v780_v2 = vand.u32 2147483647, %v770_v1  ;;  %vm776_vm2 = vweird.f32 %v770_v1 }
 0x363   :  { %1522 = vrcp.f32 %v812_v6  ;;  %v824_v57 = vand.u32 2147483648, %v812_v6  ;;  %v822_v51 = vand.u32 2147483647, %v812_v6  ;;  %vm818_vm4 = vweird.f32 %v812_v6 }
 0x364   :  { %v783_v20 = vor.u32 1.1754944e-38, %v782_v14  ;;  %vm781_vm5 = vcmp.eq.f32.partialorder %v780_v2, 8.507059e+37 }
 0x365   :  { %vm823_vm7 = vcmp.eq.f32.partialorder %v822_v51, 8.507059e+37 }
 0x366   :  { %v1519_v19 = vpop.eup %1518 }
 0x367   :  { %v878_v16 = vadd.f32 1.0, %v1519_v19 }
 0x368   :  { %v1521_v7 = vpop.eup %1520 }
 0x369   :  { %v1523_v4 = vpop.eup %1522  ;;  %v772_v9 = vmul.f32 %v1521_v7, %v770_v1  ;;  %1524 = vrcp.f32 %v878_v16  ;;  %vm777_vm0 = vweird.f32 %v1521_v7  ;;  %vm884_vm9 = vweird.f32 %v878_v16 }
 0x36a   :  { %v814_v8 = vmul.f32 %v1523_v4, %v812_v6  ;;  %1526 = vtanh.f32 %v849_v11  ;;  %vm819_vm1 = vweird.f32 %v1523_v4  ;;  %vm778_vm3 = vmor %vm776_vm2, %vm777_vm0  ;;  %v890_v6 = vand.u32 2147483648, %v878_v16 }
 0x36b   :  { %v773_v3 = vsub.f32 1.0, %v772_v9  ;;  %vm820_vm6 = vmor %vm818_vm4, %vm819_vm1  ;;  %v825_v9 = vor.u32 1.1754944e-38, %v824_v57 }
 0x36c   :  { %v815_v15 = vsub.f32 1.0, %v814_v8 }
 0x36d   :  { %v774_v5 = vmul.f32 %v1521_v7, %v773_v3 }
 0x36e   :  { %v816_v10 = vmul.f32 %v1523_v4, %v815_v15 }
 0x36f   :  { %v1525_v13 = vpop.eup %1524  ;;  %v775_v19 = vadd.f32 %v1521_v7, %v774_v5 }
 0x370   :  { %v817_v17 = vadd.f32 %v1523_v4, %v816_v10  ;;  %v880_v44 = vmul.f32 %v1525_v13, %v878_v16  ;;  %v1527_v11 = vpop.eup %1526  ;;  %vm885_vm8 = vweird.f32 %v1525_v13 }
 0x371   :  { %v779_v40 = vsel %vm778_vm3, %v1521_v7, %v775_v19  ;;  %v888_v7 = vand.u32 2147483647, %v878_v16  ;;  %vm886_vm10 = vmor %vm884_vm9, %vm885_vm8 }
 0x372   :  { %v784_v8 = vsel %vm781_vm5, %v783_v20, %v779_v40  ;;  %v821_v3 = vsel %vm820_vm6, %v1523_v4, %v817_v17  ;;  %v881_v50 = vsub.f32 1.0, %v880_v44  ;;  %v891_v40 = vor.u32 1.1754944e-38, %v890_v6 }
 0x373   :  { %v786_v15 = vmul.f32 %v784_v8, %v2439_v18  ;;  %v826_v56 = vsel %vm823_vm7, %v825_v9, %v821_v3  ;;  %vm889_vm11 = vcmp.eq.f32.partialorder %v888_v7, 8.507059e+37 }
 0x374   :  { %v851_v12 = vmul.f32 %v1527_v11, %v826_v56  ;;  %v882_v1 = vmul.f32 %v1525_v13, %v881_v50 }
 0x376   :  { %v2507_v5 = vadd.f32 %v851_v12, %v786_v15  ;;  %v883_v14 = vadd.f32 %v1525_v13, %v882_v1 }
 0x378   :  { %1528 = vtanh.f32 %v2507_v5  ;;  %v887_v2 = vsel %vm886_vm10, %v1525_v13, %v883_v14  ;;  %v980_v13 = vld [vmem:[#allocation4 + $0xb0] sm:$0xff] }
 0x379   :  { %v892_v44 = vsel %vm889_vm11, %v891_v40, %v887_v2 }
 0x37e   :  { %v1529_v4 = vpop.eup %1528 }
 0x37f   :  { %v895_v57 = vmul.f32 %v1529_v4, %v892_v44 }
 0x381   :  { %914 = vmatmul.f32.vlgmr.msrb.gmra.mxu0 %v895_v57  ;;  %956 = vmatmul.f32.vlgmr.msrb.gmra.mxu1 %v895_v57 }
 0x382   :  { %997 = vmatmul.f32.vlgmr.msrb.gmra.mxu2 %v895_v57  ;;  %1022 = vmatmul.f32.vlgmr.msrb.gmra.mxu3 %v895_v57 }
 0x383   :  { %1202 = vmatpush.msrb.mxu0 %v2246_v58  ;;  %1244 = vmatpush.msrb.mxu1 %v2249_v21  ;;  %v2832_v58 = vld [vmem:[#allocation14_spill] sm:$0xff]  ;;  %v2833_v21 = vld [vmem:[#allocation28_spill] sm:$0xff] }
 0x384   :  { %1285 = vmatpush.msrb.mxu2 %v2252_v22  ;;  %1310 = vmatpush.msrb.mxu3 %v2255_v23  ;;  %v2834_v22 = vld [vmem:[#allocation15_spill] sm:$0xff]  ;;  %v2835_v23 = vld [vmem:[#allocation16_spill] sm:$0xff] }
 0x385   :  { %1203 = vmatpush.msrb.mxu0 %v2258_v24  ;;  %1245 = vmatpush.msrb.mxu1 %v2261_v25  ;;  %v2836_v24 = vld [vmem:[#allocation17_spill] sm:$0xff]  ;;  %v2837_v25 = vld [vmem:[#allocation32_spill] sm:$0xff] }
 0x386   :  { %1286 = vmatpush.msrb.mxu2 %v2264_v26  ;;  %1311 = vmatpush.msrb.mxu3 %v2267_v27  ;;  %v2838_v26 = vld [vmem:[#allocation18_spill] sm:$0xff]  ;;  %v2839_v27 = vld [vmem:[#allocation19_spill] sm:$0xff] }
 0x387   :  { %1204 = vmatpush.msrb.mxu0 %v2270_v28  ;;  %1246 = vmatpush.msrb.mxu1 %v2273_v29  ;;  %v2840_v28 = vld [vmem:[#allocation20_spill] sm:$0xff] }
 0x388   :  { %1287 = vmatpush.msrb.mxu2 %v2276_v30  ;;  %1312 = vmatpush.msrb.mxu3 %v2279_v31  ;;  %v2841_v29 = vld [vmem:[#allocation36_spill] sm:$0xff]  ;;  %v2842_v30 = vld [vmem:[#allocation21_spill] sm:$0xff]  ;;  %v2843_v31 = vld [vmem:[#allocation22_spill] sm:$0xff] }
 0x389   :  { %1205 = vmatpush.msrb.mxu0 %v2282_v32  ;;  %1247 = vmatpush.msrb.mxu1 %v2285_v33  ;;  %v2844_v32 = vld [vmem:[#allocation23_spill] sm:$0xff]  ;;  %v2845_v33 = vld [vmem:[#allocation37_spill] sm:$0xff] }
 0x38a   :  { %1288 = vmatpush.msrb.mxu2 %v2288_v35  ;;  %1313 = vmatpush.msrb.mxu3 %v2291_v39  ;;  %v2846_v35 = vld [vmem:[#allocation24_spill] sm:$0xff]  ;;  %v2847_v39 = vld [vmem:[#allocation25_spill] sm:$0xff] }
 0x38b   :  { %1206 = vmatpush.msrb.mxu0 %v2294_v43  ;;  %1248 = vmatpush.msrb.mxu1 %v2297_v47  ;;  %v2848_v43 = vld [vmem:[#allocation26_spill] sm:$0xff] }
 0x38c   :  { %1289 = vmatpush.msrb.mxu2 %v2300_v60  ;;  %1314 = vmatpush.msrb.mxu3 %v2303_v42  ;;  %v2849_v47 = vld [vmem:[#allocation38_spill] sm:$0xff]  ;;  %v2850_v60 = vld [vmem:[#allocation27_spill] sm:$0xff]  ;;  %v2851_v42 = vld [vmem:[#allocation29_spill] sm:$0xff] }
 0x38d   :  { %1207 = vmatpush.msrb.mxu0 %v2306_v34  ;;  %1249 = vmatpush.msrb.mxu1 %v2309_v36  ;;  %v2852_v34 = vld [vmem:[#allocation30_spill] sm:$0xff]  ;;  %v2853_v36 = vld [vmem:[#allocation39_spill] sm:$0xff] }
 0x38e   :  { %1290 = vmatpush.msrb.mxu2 %v2312_v37  ;;  %1315 = vmatpush.msrb.mxu3 %v2315_v55  ;;  %v2854_v37 = vld [vmem:[#allocation31_spill] sm:$0xff]  ;;  %v2855_v55 = vld [vmem:[#allocation33_spill] sm:$0xff] }
 0x38f   :  { %1208 = vmatpush.msrb.mxu0 %v2318_v49  ;;  %1250 = vmatpush.msrb.mxu1 %v2321_v61  ;;  %v2856_v49 = vld [vmem:[#allocation34_spill] sm:$0xff]  ;;  %v2857_v61 = vld [vmem:[#allocation40_spill] sm:$0xff] }
 0x390   :  { %1291 = vmatpush.msrb.mxu2 %v2324_v38  ;;  %1316 = vmatpush.msrb.mxu3 %v2327_v52  ;;  %v897_v38 = vld [vmem:[#allocation4 + $0xa8] sm:$0xff]  ;;  %v939_v52 = vld [vmem:[#allocation4 + $0xa0] sm:$0xff] }
 0x391   :  { %1209 = vmatpush.msrb.mxu0 %v2330_v48  ;;  %1251 = vmatpush.msrb.mxu1 %v2333_v54 }
 0x392   :  { %1292 = vmatpush.msrb.mxu2 %v2336_v59  ;;  %1317 = vmatpush.msrb.mxu3 %v2339_v46 }
 0x393   :  { %1210 = vmatpush.msrb.mxu0 %v2342_v45  ;;  %1252 = vmatpush.msrb.mxu1 %v2345_v63 }
 0x394   :  { %1293 = vmatpush.msrb.mxu2 %v2348_v0  ;;  %1318 = vmatpush.msrb.mxu3 %v2351_v62  ;;  %v1005_v0 = vld [vmem:[#allocation4 + $0xb8] sm:$0xff] }
 0x395   :  { %1211 = vmatpush.msrb.mxu0 %v2354_v53  ;;  %1253 = vmatpush.msrb.mxu1 %v2357_v41 }
 0x396   :  { %1294 = vmatpush.msrb.mxu2 %v2832_v58  ;;  %1319 = vmatpush.msrb.mxu3 %v2833_v21 }
 0x397   :  { %1212 = vmatpush.msrb.mxu0 %v2834_v22  ;;  %1254 = vmatpush.msrb.mxu1 %v2835_v23 }
 0x398   :  { %1295 = vmatpush.msrb.mxu2 %v2836_v24  ;;  %1320 = vmatpush.msrb.mxu3 %v2837_v25 }
 0x399   :  { %1213 = vmatpush.msrb.mxu0 %v2838_v26  ;;  %1255 = vmatpush.msrb.mxu1 %v2839_v27 }
 0x39a   :  { %1296 = vmatpush.msrb.mxu2 %v2840_v28  ;;  %1321 = vmatpush.msrb.mxu3 %v2841_v29 }
 0x39b   :  { %1214 = vmatpush.msrb.mxu0 %v2842_v30  ;;  %1256 = vmatpush.msrb.mxu1 %v2843_v31 }
 0x39c   :  { %1297 = vmatpush.msrb.mxu2 %v2844_v32  ;;  %1322 = vmatpush.msrb.mxu3 %v2845_v33 }
 0x39d   :  { %1215 = vmatpush.msrb.mxu0 %v2846_v35  ;;  %1257 = vmatpush.msrb.mxu1 %v2847_v39 }
 0x39e   :  { %1298 = vmatpush.msrb.mxu2 %v2848_v43  ;;  %1323 = vmatpush.msrb.mxu3 %v2849_v47 }
 0x39f   :  { %1216 = vmatpush.msrb.mxu0 %v2850_v60  ;;  %1258 = vmatpush.msrb.mxu1 %v2851_v42 }
 0x3a0   :  { %1299 = vmatpush.msrb.mxu2 %v2852_v34  ;;  %1324 = vmatpush.msrb.mxu3 %v2853_v36  ;;  %v1091_v34 = vld [vmem:[#allocation4 + $0xc0] sm:$0xff] }
 0x3a1   :  { %1217 = vmatpush.msrb.mxu0 %v2854_v37  ;;  %1259 = vmatpush.msrb.mxu1 %v2855_v55 }
 0x3a2   :  { %1300 = vmatpush.msrb.mxu2 %v2856_v49  ;;  %1325 = vmatpush.msrb.mxu3 %v2857_v61 }
 0x3fe   :  { %v915_v48 = vpop.f32.mrf.mxu0  ;;  %v957_v54 = vpop.f32.mrf.mxu1 }
 0x3ff   :  { %v918_v59 = vadd.f32 %v915_v48, %v897_v38  ;;  %v960_v46 = vadd.f32 %v957_v54, %v939_v52  ;;  %v1157_v52 = vld [vmem:[#allocation4 + $0xd8] sm:$0xff] }
 0x401   :  { %v1431_v45 = vmul.f32 -1.442695, %v918_v59  ;;  %v1432_v63 = vmul.f32 -1.442695, %v960_v46 }
 0x403   :  { %1530 = vpow2.f32 %v1431_v45 }
 0x404   :  { %1532 = vpow2.f32 %v1432_v63 }
 0x405   :  { %v1023_v62 = vpop.f32.mrf.mxu3  ;;  %v998_v16 = vpop.f32.mrf.mxu2 }
 0x406   :  { %v1026_v53 = vadd.f32 %v1023_v62, %v1005_v0  ;;  %v1001_v20 = vadd.f32 %v998_v16, %v980_v13  ;;  %v1132_v62 = vld [vmem:[#allocation4 + $0xd0] sm:$0xff] }
 0x408   :  { %v1433_v41 = vmul.f32 -1.442695, %v1026_v53 }
 0x409   :  { %v1531_v18 = vpop.eup %1530 }
 0x40a   :  { %v1533_v12 = vpop.eup %1532  ;;  %v922_v56 = vadd.f32 1.0, %v1531_v18  ;;  %1534 = vpow2.f32 %v1433_v41 }
 0x40b   :  { %v964_v50 = vadd.f32 1.0, %v1533_v12 }
 0x40c   :  { %1536 = vrcp.f32 %v922_v56  ;;  %v934_v3 = vand.u32 2147483648, %v922_v56  ;;  %v932_v14 = vand.u32 2147483647, %v922_v56  ;;  %vm928_vm14 = vweird.f32 %v922_v56 }
 0x40d   :  { %1538 = vrcp.f32 %v964_v50  ;;  %v976_v6 = vand.u32 2147483648, %v964_v50  ;;  %v974_v2 = vand.u32 2147483647, %v964_v50  ;;  %vm970_vm0 = vweird.f32 %v964_v50 }
 0x40e   :  { %v935_v44 = vor.u32 1.1754944e-38, %v934_v3  ;;  %vm933_vm1 = vcmp.eq.f32.partialorder %v932_v14, 8.507059e+37 }
 0x40f   :  { %v977_v22 = vor.u32 1.1754944e-38, %v976_v6  ;;  %vm975_vm3 = vcmp.eq.f32.partialorder %v974_v2, 8.507059e+37 }
 0x410   :  { %v1535_v10 = vpop.eup %1534 }
 0x411   :  { %v1030_v51 = vadd.f32 1.0, %v1535_v10 }
 0x412   :  { %v1537_v19 = vpop.eup %1536 }
 0x413   :  { %v1539_v17 = vpop.eup %1538  ;;  %v924_v9 = vmul.f32 %v1537_v19, %v922_v56  ;;  %1540 = vrcp.f32 %v1030_v51  ;;  %vm929_vm12 = vweird.f32 %v1537_v19  ;;  %v1042_v33 = vand.u32 2147483648, %v1030_v51 }
 0x414   :  { %v966_v11 = vmul.f32 %v1539_v17, %v964_v50  ;;  %1542 = vtanh.f32 %v1001_v20  ;;  %vm971_vm13 = vweird.f32 %v1539_v17  ;;  %vm930_vm15 = vmor %vm928_vm14, %vm929_vm12  ;;  %vm1036_vm5 = vweird.f32 %v1030_v51 }
 0x415   :  { %v925_v8 = vsub.f32 1.0, %v924_v9  ;;  %vm972_vm2 = vmor %vm970_vm0, %vm971_vm13  ;;  %v1040_v35 = vand.u32 2147483647, %v1030_v51  ;;  %v1043_v43 = vor.u32 1.1754944e-38, %v1042_v33 }
 0x416   :  { %v967_v15 = vsub.f32 1.0, %v966_v11 }
 0x417   :  { %v926_v1 = vmul.f32 %v1537_v19, %v925_v8  ;;  %vm1041_vm7 = vcmp.eq.f32.partialorder %v1040_v35, 8.507059e+37  ;;  %v1371_v35 = vld [vmem:[#allocation9 + $0x70] sm:$0xff] }
 0x418   :  { %v968_v7 = vmul.f32 %v1539_v17, %v967_v15 }
 0x419   :  { %v1541_v40 = vpop.eup %1540  ;;  %v927_v4 = vadd.f32 %v1537_v19, %v926_v1 }
 0x41a   :  { %v969_v57 = vadd.f32 %v1539_v17, %v968_v7  ;;  %v1032_v58 = vmul.f32 %v1541_v40, %v1030_v51  ;;  %v1543_v23 = vpop.eup %1542  ;;  %vm1037_vm4 = vweird.f32 %v1541_v40 }
 0x41b   :  { %v931_v21 = vsel %vm930_vm15, %v1537_v19, %v927_v4  ;;  %vm1038_vm6 = vmor %vm1036_vm5, %vm1037_vm4 }
 0x41c   :  { %v936_v24 = vsel %vm933_vm1, %v935_v44, %v931_v21  ;;  %v973_v25 = vsel %vm972_vm2, %v1539_v17, %v969_v57  ;;  %v1033_v26 = vsub.f32 1.0, %v1032_v58 }
 0x41d   :  { %v938_v27 = vmul.f32 %v936_v24, %v2507_v5  ;;  %v978_v28 = vsel %vm975_vm3, %v977_v22, %v973_v25  ;;  %v1049_v5 = vld [vmem:[#allocation4 + $0xc8] sm:$0xff] }
 0x41e   :  { %v1003_v29 = vmul.f32 %v1543_v23, %v978_v28  ;;  %v1034_v30 = vmul.f32 %v1541_v40, %v1033_v26 }
 0x420   :  { %v2575_v31 = vadd.f32 %v1003_v29, %v938_v27  ;;  %v1035_v32 = vadd.f32 %v1541_v40, %v1034_v30 }
 0x422   :  { %1544 = vtanh.f32 %v2575_v31  ;;  %v1039_v39 = vsel %vm1038_vm6, %v1541_v40, %v1035_v32 }
 0x423   :  { %v1044_v60 = vsel %vm1041_vm7, %v1043_v43, %v1039_v39  ;;  %v1370_v39 = vld [vmem:[#allocation9 + $0x68] sm:$0xff]  ;;  %v1369_v43 = vld [vmem:[#allocation9 + $0x60] sm:$0xff] }
 0x428   :  { %v1545_v47 = vpop.eup %1544 }
 0x429   :  { %v1047_v42 = vmul.f32 %v1545_v47, %v1044_v60  ;;  %v1368_v47 = vld [vmem:[#allocation9 + $0x58] sm:$0xff]  ;;  %v1367_v60 = vld [vmem:[#allocation9 + $0x50] sm:$0xff] }
 0x42b   :  { %1066 = vmatmul.f32.vlgmr.msra.gmra.mxu0 %v1047_v42  ;;  %1108 = vmatmul.f32.vlgmr.msra.gmra.mxu1 %v1047_v42 }
 0x42c   :  { %1149 = vmatmul.f32.vlgmr.msra.gmra.mxu2 %v1047_v42  ;;  %1174 = vmatmul.f32.vlgmr.msra.gmra.mxu3 %v1047_v42  ;;  %v1366_v42 = vld [vmem:[#allocation9 + $0x48] sm:$0xff] }
 0x4a8   :  { %v1067_v36 = vpop.f32.mrf.mxu0  ;;  %v1109_v37 = vpop.f32.mrf.mxu1 }
 0x4a9   :  { %v1070_v55 = vadd.f32 %v1067_v36, %v1049_v5  ;;  %v1112_v49 = vadd.f32 %v1109_v37, %v1091_v34  ;;  %v1365_v5 = vld [vmem:[#allocation9 + $0x40] sm:$0xff]  ;;  %v1364_v34 = vld [vmem:[#allocation9 + $0x38] sm:$0xff]  ;;  %v1201_v36 = vld [vmem:[#allocation4 + $0xe8] sm:$0xff] }
 0x4aa   :  { %v1243_v37 = vld [vmem:[#allocation4 + $0xe0] sm:$0xff] }
 0x4ab   :  { %v1434_v61 = vmul.f32 -1.442695, %v1070_v55  ;;  %v1435_v38 = vmul.f32 -1.442695, %v1112_v49  ;;  %v1363_v55 = vld [vmem:[#allocation9 + $0x30] sm:$0xff] }
 0x4ad   :  { %1546 = vpow2.f32 %v1434_v61 }
 0x4ae   :  { %1548 = vpow2.f32 %v1435_v38 }
 0x4af   :  { %v1175_v48 = vpop.f32.mrf.mxu3  ;;  %v1150_v53 = vpop.f32.mrf.mxu2 }
 0x4b0   :  { %v1178_v54 = vadd.f32 %v1175_v48, %v1157_v52  ;;  %v1153_v56 = vadd.f32 %v1150_v53, %v1132_v62  ;;  %v1362_v48 = vld [vmem:[#allocation9 + $0x28] sm:$0xff] }
 0x4b1   :  { %v1358_v53 = vld [vmem:[#allocation9 + $0x8] sm:$0xff] }
 0x4b2   :  { %v1436_v59 = vmul.f32 -1.442695, %v1178_v54 }
 0x4b3   :  { %v1547_v46 = vpop.eup %1546 }
 0x4b4   :  { %v1549_v45 = vpop.eup %1548  ;;  %v1074_v63 = vadd.f32 1.0, %v1547_v46  ;;  %1550 = vpow2.f32 %v1436_v59  ;;  %v1361_v46 = vld [vmem:[#allocation9 + $0x20] sm:$0xff] }
 0x4b5   :  { %v1116_v0 = vadd.f32 1.0, %v1549_v45  ;;  %v1360_v45 = vld [vmem:[#allocation9 + $0x18] sm:$0xff] }
 0x4b6   :  { %1552 = vrcp.f32 %v1074_v63  ;;  %v1086_v51 = vand.u32 2147483648, %v1074_v63  ;;  %v1084_v17 = vand.u32 2147483647, %v1074_v63  ;;  %vm1080_vm10 = vweird.f32 %v1074_v63 }
 0x4b7   :  { %1554 = vrcp.f32 %v1116_v0  ;;  %v1128_v9 = vand.u32 2147483648, %v1116_v0  ;;  %v1126_v8 = vand.u32 2147483647, %v1116_v0  ;;  %vm1122_vm12 = vweird.f32 %v1116_v0 }
 0x4b8   :  { %v1087_v1 = vor.u32 1.1754944e-38, %v1086_v51  ;;  %vm1085_vm13 = vcmp.eq.f32.partialorder %v1084_v17, 8.507059e+37 }
 0x4b9   :  { %v1129_v2 = vor.u32 1.1754944e-38, %v1128_v9  ;;  %vm1127_vm15 = vcmp.eq.f32.partialorder %v1126_v8, 8.507059e+37 }
 0x4ba   :  { %v1551_v41 = vpop.eup %1550 }
 0x4bb   :  { %v1182_v18 = vadd.f32 1.0, %v1551_v41 }
 0x4bc   :  { %v1553_v12 = vpop.eup %1552 }
 0x4bd   :  { %v1555_v50 = vpop.eup %1554  ;;  %v1076_v13 = vmul.f32 %v1553_v12, %v1074_v63  ;;  %1556 = vrcp.f32 %v1182_v18  ;;  %vm1081_vm8 = vweird.f32 %v1553_v12  ;;  %v1194_v26 = vand.u32 2147483648, %v1182_v18  ;;  %v1309_v63 = vld [vmem:[#allocation4 + $0xf8] sm:$0xff] }
 0x4be   :  { %v1118_v16 = vmul.f32 %v1555_v50, %v1116_v0  ;;  %1558 = vtanh.f32 %v1153_v56  ;;  %vm1123_vm9 = vweird.f32 %v1555_v50  ;;  %vm1082_vm11 = vmor %vm1080_vm10, %vm1081_vm8  ;;  %vm1188_vm1 = vweird.f32 %v1182_v18  ;;  %v1359_v0 = vld [vmem:[#allocation9 + $0x10] sm:$0xff] }
 0x4bf   :  { %v1077_v10 = vsub.f32 1.0, %v1076_v13  ;;  %vm1124_vm14 = vmor %vm1122_vm12, %vm1123_vm9  ;;  %v1192_v27 = vand.u32 2147483647, %v1182_v18  ;;  %v1195_v29 = vor.u32 1.1754944e-38, %v1194_v26 }
 0x4c0   :  { %v1119_v19 = vsub.f32 1.0, %v1118_v16 }
 0x4c1   :  { %v1078_v20 = vmul.f32 %v1553_v12, %v1077_v10  ;;  %vm1193_vm3 = vcmp.eq.f32.partialorder %v1192_v27, 8.507059e+37  ;;  %v1284_v10 = vld [vmem:[#allocation4 + $0xf0] sm:$0xff] }
 0x4c2   :  { %v1120_v11 = vmul.f32 %v1555_v50, %v1119_v19 }
 0x4c3   :  { %v1557_v3 = vpop.eup %1556  ;;  %v1079_v15 = vadd.f32 %v1553_v12, %v1078_v20 }
 0x4c4   :  { %v1121_v14 = vadd.f32 %v1555_v50, %v1120_v11  ;;  %v1184_v6 = vmul.f32 %v1557_v3, %v1182_v18  ;;  %v1559_v40 = vpop.eup %1558  ;;  %vm1189_vm0 = vweird.f32 %v1557_v3  ;;  %v1357_v18 = vld [vmem:[#allocation9] sm:$0xff] }
 0x4c5   :  { %v1083_v7 = vsel %vm1082_vm11, %v1553_v12, %v1079_v15  ;;  %vm1190_vm2 = vmor %vm1188_vm1, %vm1189_vm0 }
 0x4c6   :  { %v1088_v4 = vsel %vm1085_vm13, %v1087_v1, %v1083_v7  ;;  %v1125_v44 = vsel %vm1124_vm14, %v1555_v50, %v1121_v14  ;;  %v1185_v57 = vsub.f32 1.0, %v1184_v6 }
 0x4c7   :  { %v1090_v58 = vmul.f32 %v1088_v4, %v2575_v31  ;;  %v1130_v21 = vsel %vm1127_vm15, %v1129_v2, %v1125_v44  ;;  %v1372_v31 = vld [vmem:[#allocation9 + $0x78] sm:$0xff] }
 0x4c8   :  { %v1155_v22 = vmul.f32 %v1559_v40, %v1130_v21  ;;  %v1186_v23 = vmul.f32 %v1557_v3, %v1185_v57  ;;  %1377 = vmatpush.msra.mxu0 %v1372_v31 }
 0x4ca   :  { %v2579_v24 = vadd.f32 %v1155_v22, %v1090_v58  ;;  %v1187_v25 = vadd.f32 %v1557_v3, %v1186_v23  ;;  %1378 = vmatpush.msra.mxu0 %v1371_v35 }
 0x4cc   :  { %1560 = vtanh.f32 %v2579_v24  ;;  %v1191_v28 = vsel %vm1190_vm2, %v1557_v3, %v1187_v25  ;;  %1379 = vmatpush.msra.mxu0 %v1370_v39 }
 0x4cd   :  { %v1196_v32 = vsel %vm1193_vm3, %v1195_v29, %v1191_v28 }
 0x4ce   :  { %1380 = vmatpush.msra.mxu0 %v1369_v43 }
 0x4d0   :  { %1381 = vmatpush.msra.mxu0 %v1368_v47 }
 0x4d2   :  { %v1561_v30 = vpop.eup %1560  ;;  %1382 = vmatpush.msra.mxu0 %v1367_v60 }
 0x4d3   :  { %v1199_v33 = vmul.f32 %v1561_v30, %v1196_v32 }
 0x4d4   :  { %1383 = vmatpush.msra.mxu0 %v1366_v42 }
 0x4d5   :  { %1218 = vmatmul.f32.vlgmr.msrb.gmra.mxu0 %v1199_v33  ;;  %1260 = vmatmul.f32.vlgmr.msrb.gmra.mxu1 %v1199_v33 }
 0x4d6   :  { %1301 = vmatmul.f32.vlgmr.msrb.gmra.mxu2 %v1199_v33  ;;  %1326 = vmatmul.f32.vlgmr.msrb.gmra.mxu3 %v1199_v33 }
 0x4d7   :  { %1384 = vmatpush.msra.mxu0 %v1365_v5 }
 0x4d9   :  { %1385 = vmatpush.msra.mxu0 %v1364_v34 }
 0x4db   :  { %1386 = vmatpush.msra.mxu0 %v1363_v55 }
 0x4dd   :  { %1387 = vmatpush.msra.mxu0 %v1362_v48 }
 0x4df   :  { %1388 = vmatpush.msra.mxu0 %v1361_v46 }
 0x4e1   :  { %1389 = vmatpush.msra.mxu0 %v1360_v45 }
 0x4e3   :  { %1390 = vmatpush.msra.mxu0 %v1359_v0 }
 0x4e5   :  { %1391 = vmatpush.msra.mxu0 %v1358_v53 }
 0x4e7   :  { %1392 = vmatpush.msra.mxu0 %v1357_v18 }
 0x552   :  { %v1219_v49 = vpop.f32.mrf.mxu0  ;;  %v1261_v61 = vpop.f32.mrf.mxu1 }
 0x553   :  { %v1222_v38 = vadd.f32 %v1219_v49, %v1201_v36  ;;  %v1264_v52 = vadd.f32 %v1261_v61, %v1243_v37 }
 0x555   :  { %v1437_v54 = vmul.f32 -1.442695, %v1222_v38  ;;  %v1438_v59 = vmul.f32 -1.442695, %v1264_v52 }
 0x557   :  { %1562 = vpow2.f32 %v1437_v54 }
 0x558   :  { %1564 = vpow2.f32 %v1438_v59 }
 0x559   :  { %v1327_v62 = vpop.f32.mrf.mxu3  ;;  %v1302_v51 = vpop.f32.mrf.mxu2 }
 0x55a   :  { %v1330_v41 = vadd.f32 %v1327_v62, %v1309_v63  ;;  %v1305_v9 = vadd.f32 %v1302_v51, %v1284_v10 }
 0x55c   :  { %v1439_v12 = vmul.f32 -1.442695, %v1330_v41 }
 0x55d   :  { %v1563_v56 = vpop.eup %1562 }
 0x55e   :  { %v1565_v50 = vpop.eup %1564  ;;  %v1226_v13 = vadd.f32 1.0, %v1563_v56  ;;  %1566 = vpow2.f32 %v1439_v12 }
 0x55f   :  { %v1268_v16 = vadd.f32 1.0, %v1565_v50 }
 0x560   :  { %1568 = vrcp.f32 %v1226_v13  ;;  %v1238_v1 = vand.u32 2147483648, %v1226_v13  ;;  %v1236_v7 = vand.u32 2147483647, %v1226_v13  ;;  %vm1232_vm6 = vweird.f32 %v1226_v13 }
 0x561   :  { %1570 = vrcp.f32 %v1268_v16  ;;  %v1280_v2 = vand.u32 2147483648, %v1268_v16  ;;  %v1278_v4 = vand.u32 2147483647, %v1268_v16  ;;  %vm1274_vm8 = vweird.f32 %v1268_v16 }
 0x562   :  { %v1239_v58 = vor.u32 1.1754944e-38, %v1238_v1  ;;  %vm1237_vm9 = vcmp.eq.f32.partialorder %v1236_v7, 8.507059e+37 }
 0x563   :  { %v1281_v25 = vor.u32 1.1754944e-38, %v1280_v2  ;;  %vm1279_vm11 = vcmp.eq.f32.partialorder %v1278_v4, 8.507059e+37 }
 0x564   :  { %v1567_v19 = vpop.eup %1566 }
 0x565   :  { %v1334_v20 = vadd.f32 1.0, %v1567_v19 }
 0x566   :  { %v1569_v17 = vpop.eup %1568 }
 0x567   :  { %v1571_v11 = vpop.eup %1570  ;;  %v1228_v8 = vmul.f32 %v1569_v17, %v1226_v13  ;;  %1572 = vrcp.f32 %v1334_v20  ;;  %vm1233_vm4 = vweird.f32 %v1569_v17  ;;  %v1346_v43 = vand.u32 2147483648, %v1334_v20 }
 0x568   :  { %v1270_v3 = vmul.f32 %v1571_v11, %v1268_v16  ;;  %1574 = vtanh.f32 %v1305_v9  ;;  %vm1275_vm5 = vweird.f32 %v1571_v11  ;;  %vm1234_vm7 = vmor %vm1232_vm6, %vm1233_vm4  ;;  %vm1340_vm13 = vweird.f32 %v1334_v20 }
 0x569   :  { %v1229_v15 = vsub.f32 1.0, %v1228_v8  ;;  %vm1276_vm10 = vmor %vm1274_vm8, %vm1275_vm5  ;;  %v1344_v47 = vand.u32 2147483647, %v1334_v20  ;;  %v1347_v42 = vor.u32 1.1754944e-38, %v1346_v43 }
 0x56a   :  { %v1271_v14 = vsub.f32 1.0, %v1270_v3 }
 0x56b   :  { %v1230_v6 = vmul.f32 %v1569_v17, %v1229_v15  ;;  %vm1345_vm15 = vcmp.eq.f32.partialorder %v1344_v47, 8.507059e+37 }
 0x56c   :  { %v1272_v40 = vmul.f32 %v1571_v11, %v1271_v14 }
 0x56d   :  { %v1573_v44 = vpop.eup %1572  ;;  %v1231_v57 = vadd.f32 %v1569_v17, %v1230_v6 }
 0x56e   :  { %v1273_v21 = vadd.f32 %v1571_v11, %v1272_v40  ;;  %v1336_v22 = vmul.f32 %v1573_v44, %v1334_v20  ;;  %v1575_v26 = vpop.eup %1574  ;;  %vm1341_vm12 = vweird.f32 %v1573_v44 }
 0x56f   :  { %v1235_v23 = vsel %vm1234_vm7, %v1569_v17, %v1231_v57  ;;  %vm1342_vm14 = vmor %vm1340_vm13, %vm1341_vm12 }
 0x570   :  { %v1240_v27 = vsel %vm1237_vm9, %v1239_v58, %v1235_v23  ;;  %v1277_v28 = vsel %vm1276_vm10, %v1571_v11, %v1273_v21  ;;  %v1337_v29 = vsub.f32 1.0, %v1336_v22 }
 0x571   :  { %v1242_v30 = vmul.f32 %v1240_v27, %v2579_v24  ;;  %v1282_v32 = vsel %vm1279_vm11, %v1281_v25, %v1277_v28  ;;  %v1449_v24 = vld [vmem:[%s2592_s3] ss:$0 sm:$0xff] }
 0x572   :  { %v1307_v33 = vmul.f32 %v1575_v26, %v1282_v32  ;;  %v1338_v31 = vmul.f32 %v1573_v44, %v1337_v29 }
 0x574   :  { %v1308_v35 = vadd.f32 %v1307_v33, %v1242_v30  ;;  %v1339_v39 = vadd.f32 %v1573_v44, %v1338_v31 }
 0x576   :  { %1576 = vtanh.f32 %v1308_v35  ;;  %v1343_v60 = vsel %vm1342_vm14, %v1573_v44, %v1339_v39 }
 0x577   :  { %v1348_v34 = vsel %vm1345_vm15, %v1347_v42, %v1343_v60 }
 0x57c   :  { %v1577_v5 = vpop.eup %1576 }
 0x57d   :  { %v1351_v36 = vmul.f32 %v1577_v5, %v1348_v34 }
 0x57f   :  { %1393 = vmatmul.f32.vlgmr.msra.gmra.mxu0 %v1351_v36 }
 0x5fc   :  { %v1394_v37 = vpop.f32.mrf.mxu0 }
 0x5fd   :  { %v1395_v55 = vadd.f32 %v1449_v24, %v1394_v37 }
 0x5ff   :  { %1397 = vst [vmem:[#allocation10] sm:$0xff] %v1395_v55 }
 0x600   :  { %1408 = dma.vmem_to_hbm [thread:$0]  %s1404_s8, 128, %s1406_s11, [#allocation6]  }
 0x601   :  { %1742 = dma.done.wait [#allocation6], 128  }
 0x602   :  { %1743 = vsyncadd [#allocation6], 4294967168 }
 0x603   :  { %1413 = vsyncpa [#allocation5], 1 }
 0x604   :  { %1414 = vsyncpa [#allocation8], 1 }
 0x605   :  { %1415 = vsyncpa [#allocation6], 1 }

// kernel: tpu_custom_call.1
= control target key start
LH: loop header
LB: loop body
LE: loop exit
PB: predicated region body
PF: predicated region fallthrough
CT: control target
= control target key end

     0   :  { %9 = vsyncpa [#allocation5], 0  ;;  %s2589_s0 = inlined_call_operand.hbm [shape: f32[8,8,512], index: 0, kind: input, shape index: {}]   ;;  %s2590_s1 = inlined_call_operand.hbm [shape: f32[128,512], index: 1, kind: input, shape index: {}]   ;;  %s2591_s2 = inlined_call_operand.hbm [shape: f32[128,128], index: 2, kind: input, shape index: {}]   ;;  %s2592_s3 = inlined_call_operand.vmem [shape: f32[1,128], index: 3, kind: input, shape index: {}]   ;;  %s2593_s4 = inlined_call_operand.hbm [shape: f32[8,128], index: 4, kind: output, shape index: {}]  }
   0x1   :  { %10 = vsyncpa [#allocation8], 0 }
   0x2   :  { %11 = vsyncpa [#allocation6], 0  ;;  %s29_s17 = sshll.u32 %s2590_s1, 4  ;;  %s1744_s18 = smov [#allocation7]   ;;  %s30_s17 = int_to_ptr.hbm [resolvable:$true] %s29_s17 }
   0x3   :  { %s31_s19 = sshll.u32 %s1744_s18, 4  ;;  %s16_s22 = sshll.u32 %s2589_s0, 4  ;;  %s32_s19 = int_to_ptr.vmem [resolvable:$true] %s31_s19  ;;  %s17_s22 = int_to_ptr.hbm [resolvable:$true] %s16_s22 }
   0x4   :  { %s1745_s23 = smov 512   ;;  %s1746_s24 = smov 32  }
   0x5   :  { %37 = dma.hbm_to_vmem [thread:$0]  %s30_s17, 8192, %s32_s19, [#allocation8], %s1745_s23, %s1745_s23, %s1746_s24  }
   0x6   :  { %s1747_s25 = smov [#allocation4]   ;;  %s42_s29 = sshll.u32 %s2591_s2, 4  ;;  %s43_s29 = int_to_ptr.hbm [resolvable:$true] %s42_s29 }
   0x7   :  { %s18_s26 = sshll.u32 %s1747_s25, 4  ;;  %s1748_s1 = smov [#allocation9]   ;;  %s19_s26 = int_to_ptr.vmem [resolvable:$true] %s18_s26 }
   0x8   :  { %24 = dma.hbm_to_vmem [thread:$0]  %s17_s22, 4096, %s19_s26, [#allocation5], %s1745_s23, %s1745_s23, %s1746_s24  }
   0x9   :  { %s44_s30 = sshll.u32 %s1748_s1, 4  ;;  %s1749_s5 = smov 128   ;;  %s45_s30 = int_to_ptr.vmem [resolvable:$true] %s44_s30 }
   0xa   :  { %s1750_s6 = smov 8  }
   0xb   :  { %50 = dma.hbm_to_vmem [thread:$0]  %s43_s29, 2048, %s45_s30, [#allocation8], %s1749_s5, %s1749_s5, %s1750_s6  }
   0xc   :  { %1738 = dma.done.wait [#allocation5], 4096  }
   0xd   :  { %1739 = vsyncadd [#allocation5], 4294963200 }
   0xe   :  { %1740 = dma.done.wait [#allocation8], 10240  }
   0xf   :  { %1741 = vsyncadd [#allocation8], 4294957056  ;;  %v1787_v0 = vld [vmem:[#allocation7 + $0x1e8] sm:$0xff]  ;;  %v1789_v1 = vld [vmem:[#allocation7 + $0x1e0] sm:$0xff]  ;;  %v1751_v60 = vmov 0.0   ;;  %s1752_s7 = smov [#allocation10]  }
  0x10   :  { %2700 = vst [vmem:[#allocation14_spill] sm:$0xff] %v1787_v0  ;;  %v1791_v2 = vld [vmem:[#allocation7 + $0x1f8] sm:$0xff]  ;;  %90 = vmatpush.msra.mxu0 %v1787_v0  ;;  %148 = vmatpush.msra.mxu1 %v1789_v1  ;;  %v1795_v3 = vld [vmem:[#allocation7 + $0x1c8] sm:$0xff]  ;;  %v1797_v4 = vld [vmem:[#allocation7 + $0x1c0] sm:$0xff]  ;;  %s1403_s8 = sshll.u32 %s1752_s7, 4  ;;  %s1405_s11 = sshll.u32 %s2593_s4, 4  ;;  %s1404_s8 = int_to_ptr.vmem [resolvable:$true] %s1403_s8  ;;  %s1406_s11 = int_to_ptr.hbm [resolvable:$true] %s1405_s11 }
  0x11   :  { %v1799_v5 = vld [vmem:[#allocation7 + $0x1d8] sm:$0xff]  ;;  %246 = vmatpush.msra.mxu3 %v1791_v2  ;;  %v1802_v6 = vld [vmem:[#allocation7 + $0x1a8] sm:$0xff]  ;;  %v1804_v7 = vld [vmem:[#allocation7 + $0x1a0] sm:$0xff] }
  0x12   :  { %91 = vmatpush.msra.mxu0 %v1795_v3  ;;  %149 = vmatpush.msra.mxu1 %v1797_v4  ;;  %v1808_v8 = vld [vmem:[#allocation7 + $0x1b8] sm:$0xff]  ;;  %v1811_v9 = vld [vmem:[#allocation7 + $0x188] sm:$0xff]  ;;  %v1813_v10 = vld [vmem:[#allocation7 + $0x180] sm:$0xff] }
  0x13   :  { %247 = vmatpush.msra.mxu3 %v1799_v5  ;;  %v1817_v11 = vld [vmem:[#allocation7 + $0x198] sm:$0xff]  ;;  %v1820_v12 = vld [vmem:[#allocation7 + $0x168] sm:$0xff]  ;;  %v1822_v13 = vld [vmem:[#allocation7 + $0x160] sm:$0xff] }
  0x14   :  { %92 = vmatpush.msra.mxu0 %v1802_v6  ;;  %150 = vmatpush.msra.mxu1 %v1804_v7  ;;  %v1826_v14 = vld [vmem:[#allocation7 + $0x178] sm:$0xff]  ;;  %v1829_v15 = vld [vmem:[#allocation7 + $0x148] sm:$0xff]  ;;  %v1831_v16 = vld [vmem:[#allocation7 + $0x140] sm:$0xff] }
  0x15   :  { %248 = vmatpush.msra.mxu3 %v1808_v8  ;;  %v1833_v17 = vld [vmem:[#allocation7 + $0x1f0] sm:$0xff]  ;;  %v1837_v18 = vld [vmem:[#allocation7 + $0x158] sm:$0xff]  ;;  %v1842_v20 = vld [vmem:[#allocation7 + $0x128] sm:$0xff] }
  0x16   :  { %93 = vmatpush.msra.mxu0 %v1811_v9  ;;  %151 = vmatpush.msra.mxu1 %v1813_v10  ;;  %v1839_v19 = vld [vmem:[#allocation7 + $0x1d0] sm:$0xff]  ;;  %v1844_v21 = vld [vmem:[#allocation7 + $0x120] sm:$0xff]  ;;  %v1849_v22 = vld [vmem:[#allocation7 + $0x138] sm:$0xff] }
  0x17   :  { %249 = vmatpush.msra.mxu3 %v1817_v11  ;;  %205 = vmatpush.msra.mxu2 %v1833_v17  ;;  %v1851_v23 = vld [vmem:[#allocation7 + $0x1b0] sm:$0xff]  ;;  %v1854_v24 = vld [vmem:[#allocation7 + $0x108] sm:$0xff]  ;;  %v1856_v25 = vld [vmem:[#allocation7 + $0x100] sm:$0xff] }
  0x18   :  { %94 = vmatpush.msra.mxu0 %v1820_v12  ;;  %152 = vmatpush.msra.mxu1 %v1822_v13  ;;  %v1861_v26 = vld [vmem:[#allocation7 + $0x118] sm:$0xff]  ;;  %v1863_v27 = vld [vmem:[#allocation7 + $0x190] sm:$0xff]  ;;  %v1866_v28 = vld [vmem:[#allocation7 + $0xe8] sm:$0xff] }
  0x19   :  { %250 = vmatpush.msra.mxu3 %v1826_v14  ;;  %206 = vmatpush.msra.mxu2 %v1839_v19  ;;  %v1868_v29 = vld [vmem:[#allocation7 + $0xe0] sm:$0xff]  ;;  %v1873_v30 = vld [vmem:[#allocation7 + $0xf8] sm:$0xff]  ;;  %v1875_v31 = vld [vmem:[#allocation7 + $0x170] sm:$0xff] }
  0x1a   :  { %95 = vmatpush.msra.mxu0 %v1829_v15  ;;  %153 = vmatpush.msra.mxu1 %v1831_v16  ;;  %v1878_v32 = vld [vmem:[#allocation7 + $0xc8] sm:$0xff]  ;;  %v1880_v33 = vld [vmem:[#allocation7 + $0xc0] sm:$0xff]  ;;  %v1885_v34 = vld [vmem:[#allocation7 + $0xd8] sm:$0xff] }
  0x1b   :  { %251 = vmatpush.msra.mxu3 %v1837_v18  ;;  %207 = vmatpush.msra.mxu2 %v1851_v23  ;;  %2701 = vst [vmem:[#allocation15_spill] sm:$0xff] %v1885_v34  ;;  %v1887_v35 = vld [vmem:[#allocation7 + $0x150] sm:$0xff]  ;;  %v1890_v36 = vld [vmem:[#allocation7 + $0xa8] sm:$0xff]  ;;  %v1892_v37 = vld [vmem:[#allocation7 + $0xa0] sm:$0xff] }
  0x1c   :  { %96 = vmatpush.msra.mxu0 %v1842_v20  ;;  %154 = vmatpush.msra.mxu1 %v1844_v21  ;;  %2702 = vst [vmem:[#allocation16_spill] sm:$0xff] %v1890_v36  ;;  %v1897_v38 = vld [vmem:[#allocation7 + $0xb8] sm:$0xff]  ;;  %v1899_v39 = vld [vmem:[#allocation7 + $0x130] sm:$0xff]  ;;  %v1902_v40 = vld [vmem:[#allocation7 + $0x88] sm:$0xff] }
  0x1d   :  { %252 = vmatpush.msra.mxu3 %v1849_v22  ;;  %208 = vmatpush.msra.mxu2 %v1863_v27  ;;  %2703 = vst [vmem:[#allocation17_spill] sm:$0xff] %v1892_v37  ;;  %v1904_v41 = vld [vmem:[#allocation7 + $0x80] sm:$0xff]  ;;  %v1909_v42 = vld [vmem:[#allocation7 + $0x98] sm:$0xff]  ;;  %v1911_v43 = vld [vmem:[#allocation7 + $0x110] sm:$0xff] }
  0x1e   :  { %97 = vmatpush.msra.mxu0 %v1854_v24  ;;  %155 = vmatpush.msra.mxu1 %v1856_v25  ;;  %2704 = vst [vmem:[#allocation18_spill] sm:$0xff] %v1897_v38  ;;  %v1914_v44 = vld [vmem:[#allocation7 + $0x68] sm:$0xff]  ;;  %v1916_v45 = vld [vmem:[#allocation7 + $0x60] sm:$0xff]  ;;  %v1921_v46 = vld [vmem:[#allocation7 + $0x78] sm:$0xff] }
  0x1f   :  { %253 = vmatpush.msra.mxu3 %v1861_v26  ;;  %209 = vmatpush.msra.mxu2 %v1875_v31  ;;  %2705 = vst [vmem:[#allocation19_spill] sm:$0xff] %v1902_v40  ;;  %v1923_v47 = vld [vmem:[#allocation7 + $0xf0] sm:$0xff]  ;;  %v1926_v48 = vld [vmem:[#allocation7 + $0x48] sm:$0xff]  ;;  %v1928_v49 = vld [vmem:[#allocation7 + $0x40] sm:$0xff] }
  0x20   :  { %98 = vmatpush.msra.mxu0 %v1866_v28  ;;  %156 = vmatpush.msra.mxu1 %v1868_v29  ;;  %2706 = vst [vmem:[#allocation20_spill] sm:$0xff] %v1904_v41  ;;  %v1933_v50 = vld [vmem:[#allocation7 + $0x58] sm:$0xff]  ;;  %v1935_v51 = vld [vmem:[#allocation7 + $0xd0] sm:$0xff]  ;;  %v1938_v52 = vld [vmem:[#allocation7 + $0x28] sm:$0xff] }
  0x21   :  { %254 = vmatpush.msra.mxu3 %v1873_v30  ;;  %210 = vmatpush.msra.mxu2 %v1887_v35  ;;  %2707 = vst [vmem:[#allocation21_spill] sm:$0xff] %v1909_v42  ;;  %v1940_v53 = vld [vmem:[#allocation7 + $0x20] sm:$0xff]  ;;  %v1945_v54 = vld [vmem:[#allocation7 + $0x38] sm:$0xff]  ;;  %v1947_v55 = vld [vmem:[#allocation7 + $0xb0] sm:$0xff] }
  0x22   :  { %99 = vmatpush.msra.mxu0 %v1878_v32  ;;  %157 = vmatpush.msra.mxu1 %v1880_v33  ;;  %2708 = vst [vmem:[#allocation22_spill] sm:$0xff] %v1914_v44  ;;  %v1950_v56 = vld [vmem:[#allocation7 + $0x8] sm:$0xff]  ;;  %v1952_v57 = vld [vmem:[#allocation7] sm:$0xff]  ;;  %v1957_v58 = vld [vmem:[#allocation7 + $0x18] sm:$0xff] }
  0x23   :  { %255 = vmatpush.msra.mxu3 %v1885_v34  ;;  %2709 = vst [vmem:[#allocation23_spill] sm:$0xff] %v1916_v45  ;;  %211 = vmatpush.msra.mxu2 %v1899_v39  ;;  %v1963_v59 = vld [vmem:[#allocation7 + $0x90] sm:$0xff] }
  0x24   :  { %100 = vmatpush.msra.mxu0 %v1890_v36  ;;  %158 = vmatpush.msra.mxu1 %v1892_v37  ;;  %2710 = vst [vmem:[#allocation24_spill] sm:$0xff] %v1921_v46  ;;  %v1966_v61 = vld [vmem:[#allocation7 + $0x70] sm:$0xff] }
  0x25   :  { %256 = vmatpush.msra.mxu3 %v1897_v38  ;;  %2711 = vst [vmem:[#allocation25_spill] sm:$0xff] %v1926_v48  ;;  %212 = vmatpush.msra.mxu2 %v1911_v43  ;;  %v1970_v62 = vld [vmem:[#allocation7 + $0x50] sm:$0xff] }
  0x26   :  { %101 = vmatpush.msra.mxu0 %v1902_v40  ;;  %159 = vmatpush.msra.mxu1 %v1904_v41  ;;  %2712 = vst [vmem:[#allocation26_spill] sm:$0xff] %v1928_v49  ;;  %v1976_v63 = vld [vmem:[#allocation7 + $0x30] sm:$0xff] }
  0x27   :  { %257 = vmatpush.msra.mxu3 %v1909_v42  ;;  %2713 = vst [vmem:[#allocation27_spill] sm:$0xff] %v1933_v50  ;;  %213 = vmatpush.msra.mxu2 %v1923_v47 }
  0x28   :  { %102 = vmatpush.msra.mxu0 %v1914_v44  ;;  %160 = vmatpush.msra.mxu1 %v1916_v45  ;;  %2714 = vst [vmem:[#allocation28_spill] sm:$0xff] %v1935_v51 }
  0x29   :  { %258 = vmatpush.msra.mxu3 %v1921_v46  ;;  %2715 = vst [vmem:[#allocation29_spill] sm:$0xff] %v1938_v52  ;;  %214 = vmatpush.msra.mxu2 %v1935_v51 }
  0x2a   :  { %2716 = vst [vmem:[#allocation30_spill] sm:$0xff] %v1940_v53  ;;  %103 = vmatpush.msra.mxu0 %v1926_v48  ;;  %161 = vmatpush.msra.mxu1 %v1928_v49 }
  0x2b   :  { %2717 = vst [vmem:[#allocation31_spill] sm:$0xff] %v1945_v54  ;;  %259 = vmatpush.msra.mxu3 %v1933_v50  ;;  %215 = vmatpush.msra.mxu2 %v1947_v55 }
  0x2c   :  { %2718 = vst [vmem:[#allocation32_spill] sm:$0xff] %v1947_v55  ;;  %104 = vmatpush.msra.mxu0 %v1938_v52  ;;  %162 = vmatpush.msra.mxu1 %v1940_v53 }
  0x2d   :  { %2719 = vst [vmem:[#allocation33_spill] sm:$0xff] %v1950_v56  ;;  %260 = vmatpush.msra.mxu3 %v1945_v54  ;;  %216 = vmatpush.msra.mxu2 %v1963_v59 }
  0x2e   :  { %2720 = vst [vmem:[#allocation34_spill] sm:$0xff] %v1952_v57  ;;  %105 = vmatpush.msra.mxu0 %v1950_v56  ;;  %163 = vmatpush.msra.mxu1 %v1952_v57 }
  0x2f   :  { %2721 = vst [vmem:[#allocation35_spill] sm:$0xff] %v1957_v58  ;;  %261 = vmatpush.msra.mxu3 %v1957_v58  ;;  %106 = vmatmul.f32.vlgmr.msra.gmra.mxu0 %v1751_v60 }
  0x30   :  { %2722 = vst [vmem:[#allocation36_spill] sm:$0xff] %v1963_v59  ;;  %164 = vmatmul.f32.vlgmr.msra.gmra.mxu1 %v1751_v60  ;;  %262 = vmatmul.f32.vlgmr.msra.gmra.mxu3 %v1751_v60 }
  0x31   :  { %2723 = vst [vmem:[#allocation37_spill] sm:$0xff] %v1966_v61  ;;  %290 = vmatpush.msrb.mxu0 %v1787_v0  ;;  %332 = vmatpush.msrb.mxu1 %v1789_v1  ;;  %v1982_v0 = vld [vmem:[#allocation7 + $0x10] sm:$0xff] }
  0x32   :  { %2724 = vst [vmem:[#allocation38_spill] sm:$0xff] %v1970_v62  ;;  %398 = vmatpush.msrb.mxu3 %v1791_v2  ;;  %217 = vmatpush.msra.mxu2 %v1966_v61 }
  0x33   :  { %291 = vmatpush.msrb.mxu0 %v1795_v3  ;;  %2725 = vst [vmem:[#allocation39_spill] sm:$0xff] %v1976_v63  ;;  %333 = vmatpush.msrb.mxu1 %v1797_v4 }
  0x34   :  { %399 = vmatpush.msrb.mxu3 %v1799_v5  ;;  %218 = vmatpush.msra.mxu2 %v1970_v62  ;;  %2726 = vst [vmem:[#allocation40_spill] sm:$0xff] %v1982_v0 }
  0x35   :  { %292 = vmatpush.msrb.mxu0 %v1802_v6  ;;  %334 = vmatpush.msrb.mxu1 %v1804_v7 }
  0x36   :  { %400 = vmatpush.msrb.mxu3 %v1808_v8  ;;  %219 = vmatpush.msra.mxu2 %v1976_v63 }
  0x37   :  { %293 = vmatpush.msrb.mxu0 %v1811_v9  ;;  %335 = vmatpush.msrb.mxu1 %v1813_v10 }
  0x38   :  { %401 = vmatpush.msrb.mxu3 %v1817_v11  ;;  %220 = vmatpush.msra.mxu2 %v1982_v0 }
  0x39   :  { %294 = vmatpush.msrb.mxu0 %v1820_v12  ;;  %221 = vmatmul.f32.vlgmr.msra.gmra.mxu2 %v1751_v60  ;;  %v2727_v60 = vld [vmem:[#allocation14_spill] sm:$0xff] }
  0x3a   :  { %336 = vmatpush.msrb.mxu1 %v1822_v13  ;;  %373 = vmatpush.msrb.mxu2 %v1833_v17 }
  0x3b   :  { %402 = vmatpush.msrb.mxu3 %v1826_v14  ;;  %295 = vmatpush.msrb.mxu0 %v1829_v15 }
  0x3c   :  { %337 = vmatpush.msrb.mxu1 %v1831_v16  ;;  %374 = vmatpush.msrb.mxu2 %v1839_v19 }
  0x3d   :  { %403 = vmatpush.msrb.mxu3 %v1837_v18  ;;  %296 = vmatpush.msrb.mxu0 %v1842_v20 }
  0x3e   :  { %338 = vmatpush.msrb.mxu1 %v1844_v21  ;;  %375 = vmatpush.msrb.mxu2 %v1851_v23 }
  0x3f   :  { %404 = vmatpush.msrb.mxu3 %v1849_v22  ;;  %297 = vmatpush.msrb.mxu0 %v1854_v24 }
  0x40   :  { %339 = vmatpush.msrb.mxu1 %v1856_v25  ;;  %376 = vmatpush.msrb.mxu2 %v1863_v27 }
  0x41   :  { %405 = vmatpush.msrb.mxu3 %v1861_v26  ;;  %298 = vmatpush.msrb.mxu0 %v1866_v28 }
  0x42   :  { %340 = vmatpush.msrb.mxu1 %v1868_v29  ;;  %377 = vmatpush.msrb.mxu2 %v1875_v31 }
  0x43   :  { %406 = vmatpush.msrb.mxu3 %v1873_v30  ;;  %299 = vmatpush.msrb.mxu0 %v1878_v32 }
  0x44   :  { %341 = vmatpush.msrb.mxu1 %v1880_v33  ;;  %378 = vmatpush.msrb.mxu2 %v1887_v35 }
  0x45   :  { %407 = vmatpush.msrb.mxu3 %v1885_v34  ;;  %300 = vmatpush.msrb.mxu0 %v1890_v36 }
  0x46   :  { %342 = vmatpush.msrb.mxu1 %v1892_v37  ;;  %379 = vmatpush.msrb.mxu2 %v1899_v39 }
  0x47   :  { %408 = vmatpush.msrb.mxu3 %v1897_v38  ;;  %301 = vmatpush.msrb.mxu0 %v1902_v40 }
  0x48   :  { %343 = vmatpush.msrb.mxu1 %v1904_v41  ;;  %380 = vmatpush.msrb.mxu2 %v1911_v43 }
  0x49   :  { %409 = vmatpush.msrb.mxu3 %v1909_v42  ;;  %302 = vmatpush.msrb.mxu0 %v1914_v44 }
  0x4a   :  { %344 = vmatpush.msrb.mxu1 %v1916_v45  ;;  %381 = vmatpush.msrb.mxu2 %v1923_v47 }
  0x4b   :  { %410 = vmatpush.msrb.mxu3 %v1921_v46  ;;  %303 = vmatpush.msrb.mxu0 %v1926_v48 }
  0x4c   :  { %345 = vmatpush.msrb.mxu1 %v1928_v49  ;;  %382 = vmatpush.msrb.mxu2 %v1935_v51 }
  0x4d   :  { %411 = vmatpush.msrb.mxu3 %v1933_v50  ;;  %304 = vmatpush.msrb.mxu0 %v1938_v52 }
  0x4e   :  { %346 = vmatpush.msrb.mxu1 %v1940_v53  ;;  %383 = vmatpush.msrb.mxu2 %v1947_v55 }
  0x4f   :  { %412 = vmatpush.msrb.mxu3 %v1945_v54  ;;  %305 = vmatpush.msrb.mxu0 %v1950_v56 }
  0x50   :  { %347 = vmatpush.msrb.mxu1 %v1952_v57  ;;  %384 = vmatpush.msrb.mxu2 %v1963_v59 }
  0x51   :  { %413 = vmatpush.msrb.mxu3 %v1957_v58  ;;  %442 = vmatpush.msra.mxu0 %v2727_v60 }
  0x52   :  { %484 = vmatpush.msra.mxu1 %v1789_v1  ;;  %385 = vmatpush.msrb.mxu2 %v1966_v61 }
  0x53   :  { %550 = vmatpush.msra.mxu3 %v1791_v2  ;;  %443 = vmatpush.msra.mxu0 %v1795_v3 }
  0x54   :  { %485 = vmatpush.msra.mxu1 %v1797_v4  ;;  %386 = vmatpush.msrb.mxu2 %v1970_v62 }
  0x55   :  { %551 = vmatpush.msra.mxu3 %v1799_v5  ;;  %444 = vmatpush.msra.mxu0 %v1802_v6 }
  0x56   :  { %486 = vmatpush.msra.mxu1 %v1804_v7  ;;  %387 = vmatpush.msrb.mxu2 %v1976_v63 }
  0x57   :  { %552 = vmatpush.msra.mxu3 %v1808_v8  ;;  %445 = vmatpush.msra.mxu0 %v1811_v9 }
  0x58   :  { %487 = vmatpush.msra.mxu1 %v1813_v10  ;;  %388 = vmatpush.msrb.mxu2 %v1982_v0 }
  0x59   :  { %553 = vmatpush.msra.mxu3 %v1817_v11  ;;  %446 = vmatpush.msra.mxu0 %v1820_v12 }
  0x5a   :  { %525 = vmatpush.msra.mxu2 %v1833_v17  ;;  %488 = vmatpush.msra.mxu1 %v1822_v13 }
  0x5b   :  { %554 = vmatpush.msra.mxu3 %v1826_v14  ;;  %447 = vmatpush.msra.mxu0 %v1829_v15 }
  0x5c   :  { %526 = vmatpush.msra.mxu2 %v1839_v19  ;;  %489 = vmatpush.msra.mxu1 %v1831_v16 }
  0x5d   :  { %555 = vmatpush.msra.mxu3 %v1837_v18  ;;  %448 = vmatpush.msra.mxu0 %v1842_v20 }
  0x5e   :  { %527 = vmatpush.msra.mxu2 %v1851_v23  ;;  %490 = vmatpush.msra.mxu1 %v1844_v21 }
  0x5f   :  { %556 = vmatpush.msra.mxu3 %v1849_v22  ;;  %449 = vmatpush.msra.mxu0 %v1854_v24 }
  0x60   :  { %528 = vmatpush.msra.mxu2 %v1863_v27  ;;  %491 = vmatpush.msra.mxu1 %v1856_v25 }
  0x61   :  { %557 = vmatpush.msra.mxu3 %v1861_v26  ;;  %450 = vmatpush.msra.mxu0 %v1866_v28 }
  0x62   :  { %529 = vmatpush.msra.mxu2 %v1875_v31  ;;  %492 = vmatpush.msra.mxu1 %v1868_v29 }
  0x63   :  { %558 = vmatpush.msra.mxu3 %v1873_v30  ;;  %451 = vmatpush.msra.mxu0 %v1878_v32 }
  0x64   :  { %530 = vmatpush.msra.mxu2 %v1887_v35  ;;  %493 = vmatpush.msra.mxu1 %v1880_v33 }
  0x65   :  { %559 = vmatpush.msra.mxu3 %v1885_v34  ;;  %452 = vmatpush.msra.mxu0 %v1890_v36 }
  0x66   :  { %531 = vmatpush.msra.mxu2 %v1899_v39  ;;  %494 = vmatpush.msra.mxu1 %v1892_v37 }
  0x67   :  { %560 = vmatpush.msra.mxu3 %v1897_v38  ;;  %453 = vmatpush.msra.mxu0 %v1902_v40 }
  0x68   :  { %532 = vmatpush.msra.mxu2 %v1911_v43  ;;  %495 = vmatpush.msra.mxu1 %v1904_v41 }
  0x69   :  { %561 = vmatpush.msra.mxu3 %v1909_v42  ;;  %454 = vmatpush.msra.mxu0 %v1914_v44 }
  0x6a   :  { %533 = vmatpush.msra.mxu2 %v1923_v47  ;;  %496 = vmatpush.msra.mxu1 %v1916_v45 }
  0x6b   :  { %562 = vmatpush.msra.mxu3 %v1921_v46  ;;  %455 = vmatpush.msra.mxu0 %v1926_v48 }
  0x6c   :  { %534 = vmatpush.msra.mxu2 %v1935_v51  ;;  %497 = vmatpush.msra.mxu1 %v1928_v49 }
  0x6d   :  { %563 = vmatpush.msra.mxu3 %v1933_v50  ;;  %456 = vmatpush.msra.mxu0 %v1938_v52  ;;  %v73_v52 = vld [vmem:[#allocation4 + $0x8] sm:$0xff] }
  0x6e   :  { %535 = vmatpush.msra.mxu2 %v1947_v55  ;;  %498 = vmatpush.msra.mxu1 %v1940_v53  ;;  %v131_v53 = vld [vmem:[#allocation4] sm:$0xff] }
  0x6f   :  { %564 = vmatpush.msra.mxu3 %v1945_v54  ;;  %457 = vmatpush.msra.mxu0 %v1950_v56 }
  0x70   :  { %536 = vmatpush.msra.mxu2 %v1963_v59  ;;  %499 = vmatpush.msra.mxu1 %v1952_v57  ;;  %v229_v57 = vld [vmem:[#allocation4 + $0x18] sm:$0xff] }
  0x71   :  { %565 = vmatpush.msra.mxu3 %v1957_v58 }
  0x72   :  { %537 = vmatpush.msra.mxu2 %v1966_v61 }
  0x74   :  { %538 = vmatpush.msra.mxu2 %v1970_v62 }
  0x76   :  { %539 = vmatpush.msra.mxu2 %v1976_v63 }
  0x78   :  { %540 = vmatpush.msra.mxu2 %v1982_v0  ;;  %v188_v0 = vld [vmem:[#allocation4 + $0x10] sm:$0xff] }
  0xac   :  { %v107_v50 = vpop.f32.mrf.mxu0 }
  0xad   :  { %v110_v54 = vadd.f32 %v107_v50, %v73_v52  ;;  %v165_v49 = vpop.f32.mrf.mxu1 }
  0xae   :  { %v168_v48 = vadd.f32 %v165_v49, %v131_v53 }
  0xaf   :  { %v1416_v46 = vmul.f32 -1.442695, %v110_v54 }
  0xb0   :  { %v1417_v56 = vmul.f32 -1.442695, %v168_v48 }
  0xb1   :  { %1450 = vpow2.f32 %v1416_v46 }
  0xb2   :  { %1452 = vpow2.f32 %v1417_v56 }
  0xb3   :  { %v263_v58 = vpop.f32.mrf.mxu3 }
  0xb4   :  { %v266_v45 = vadd.f32 %v263_v58, %v229_v57 }
  0xb6   :  { %v1418_v61 = vmul.f32 -1.442695, %v266_v45 }
  0xb7   :  { %v1451_v44 = vpop.eup %1450 }
  0xb8   :  { %v1453_v62 = vpop.eup %1452  ;;  %v114_v42 = vadd.f32 1.0, %v1451_v44  ;;  %1454 = vpow2.f32 %v1418_v61 }
  0xb9   :  { %v172_v63 = vadd.f32 1.0, %v1453_v62 }
  0xba   :  { %1456 = vrcp.f32 %v114_v42  ;;  %v126_v45 = vand.u32 2147483648, %v114_v42  ;;  %v124_v44 = vand.u32 2147483647, %v114_v42  ;;  %vm120_vm2 = vweird.f32 %v114_v42 }
  0xbb   :  { %1458 = vrcp.f32 %v172_v63  ;;  %v184_v61 = vand.u32 2147483648, %v172_v63  ;;  %v182_v41 = vand.u32 2147483647, %v172_v63  ;;  %vm178_vm4 = vweird.f32 %v172_v63 }
  0xbc   :  { %v222_v59 = vpop.f32.mrf.mxu2  ;;  %vm125_vm5 = vcmp.eq.f32.partialorder %v124_v44, 8.507059e+37 }
  0xbd   :  { %v225_v49 = vadd.f32 %v222_v59, %v188_v0  ;;  %v127_v0 = vor.u32 1.1754944e-38, %v126_v45  ;;  %vm183_vm7 = vcmp.eq.f32.partialorder %v182_v41, 8.507059e+37 }
  0xbe   :  { %v1455_v50 = vpop.eup %1454 }
  0xbf   :  { %v270_v52 = vadd.f32 1.0, %v1455_v50 }
  0xc0   :  { %v1457_v53 = vpop.eup %1456 }
  0xc1   :  { %v1459_v48 = vpop.eup %1458  ;;  %v116_v46 = vmul.f32 %v1457_v53, %v114_v42  ;;  %1460 = vrcp.f32 %v270_v52  ;;  %vm121_vm0 = vweird.f32 %v1457_v53  ;;  %vm276_vm9 = vweird.f32 %v270_v52 }
  0xc2   :  { %v174_v54 = vmul.f32 %v1459_v48, %v172_v63  ;;  %1462 = vtanh.f32 %v225_v49  ;;  %vm179_vm1 = vweird.f32 %v1459_v48  ;;  %vm122_vm3 = vmor %vm120_vm2, %vm121_vm0  ;;  %v185_v49 = vor.u32 1.1754944e-38, %v184_v61 }
  0xc3   :  { %v117_v56 = vsub.f32 1.0, %v116_v46  ;;  %vm180_vm6 = vmor %vm178_vm4, %vm179_vm1  ;;  %v282_v63 = vand.u32 2147483648, %v270_v52 }
  0xc4   :  { %v175_v57 = vsub.f32 1.0, %v174_v54 }
  0xc5   :  { %v118_v58 = vmul.f32 %v1457_v53, %v117_v56  ;;  %v283_v44 = vor.u32 1.1754944e-38, %v282_v63  ;;  %v2746_v63 = vld [vmem:[#allocation29_spill] sm:$0xff] }
  0xc6   :  { %v176_v62 = vmul.f32 %v1459_v48, %v175_v57 }
  0xc7   :  { %v1461_v40 = vpop.eup %1460  ;;  %v119_v50 = vadd.f32 %v1457_v53, %v118_v58 }
  0xc8   :  { %v272_v59 = vmul.f32 %v1461_v40, %v270_v52  ;;  %v177_v38 = vadd.f32 %v1459_v48, %v176_v62  ;;  %v1463_v55 = vpop.eup %1462  ;;  %vm277_vm8 = vweird.f32 %v1461_v40  ;;  %v2736_v62 = vld [vmem:[#allocation36_spill] sm:$0xff] }
  0xc9   :  { %v123_v46 = vsel %vm122_vm3, %v1457_v53, %v119_v50  ;;  %v280_v53 = vand.u32 2147483647, %v270_v52  ;;  %vm278_vm10 = vmor %vm276_vm9, %vm277_vm8  ;;  %v2734_v52 = vld [vmem:[#allocation19_spill] sm:$0xff]  ;;  %v2737_v50 = vld [vmem:[#allocation21_spill] sm:$0xff] }
  0xca   :  { %v273_v54 = vsub.f32 1.0, %v272_v59  ;;  %v128_v56 = vsel %vm125_vm5, %v127_v0, %v123_v46  ;;  %v181_v37 = vsel %vm180_vm6, %v1459_v48, %v177_v38  ;;  %v2735_v48 = vld [vmem:[#allocation20_spill] sm:$0xff]  ;;  %v2738_v0 = vld [vmem:[#allocation22_spill] sm:$0xff]  ;;  %v2739_v59 = vld [vmem:[#allocation23_spill] sm:$0xff] }
  0xcb   :  { %v130_v57 = vmul.f32 0.0, %v128_v56  ;;  %v186_v36 = vsel %vm183_vm7, %v185_v49, %v181_v37  ;;  %vm281_vm11 = vcmp.eq.f32.partialorder %v280_v53, 8.507059e+37  ;;  %v2730_v37 = vld [vmem:[#allocation16_spill] sm:$0xff]  ;;  %v2740_v46 = vld [vmem:[#allocation37_spill] sm:$0xff]  ;;  %v2743_v56 = vld [vmem:[#allocation26_spill] sm:$0xff] }
  0xcc   :  { %v227_v34 = vmul.f32 %v1463_v55, %v186_v36  ;;  %v274_v51 = vmul.f32 %v1461_v40, %v273_v54  ;;  %v2729_v36 = vld [vmem:[#allocation15_spill] sm:$0xff]  ;;  %v2733_v55 = vld [vmem:[#allocation18_spill] sm:$0xff]  ;;  %v2741_v49 = vld [vmem:[#allocation24_spill] sm:$0xff] }
  0xcd   :  { %v2742_v54 = vld [vmem:[#allocation25_spill] sm:$0xff]  ;;  %v2747_v53 = vld [vmem:[#allocation30_spill] sm:$0xff] }
  0xce   :  { %v2107_v42 = vadd.f32 %v227_v34, %v130_v57  ;;  %v275_v45 = vadd.f32 %v1461_v40, %v274_v51  ;;  %v2728_v34 = vld [vmem:[#allocation28_spill] sm:$0xff]  ;;  %v2744_v57 = vld [vmem:[#allocation38_spill] sm:$0xff] }
  0xcf   :  { %v2732_v51 = vld [vmem:[#allocation32_spill] sm:$0xff] }
  0xd0   :  { %1464 = vtanh.f32 %v2107_v42  ;;  %v279_v58 = vsel %vm278_vm10, %v1461_v40, %v275_v45  ;;  %v2731_v40 = vld [vmem:[#allocation17_spill] sm:$0xff]  ;;  %v2745_v45 = vld [vmem:[#allocation27_spill] sm:$0xff] }
  0xd1   :  { %v284_v38 = vsel %vm281_vm11, %v283_v44, %v279_v58  ;;  %v2748_v58 = vld [vmem:[#allocation39_spill] sm:$0xff] }
  0xd2   :  { %v2749_v44 = vld [vmem:[#allocation31_spill] sm:$0xff] }
  0xd6   :  { %v1465_v61 = vpop.eup %1464 }
  0xd7   :  { %v287_v41 = vmul.f32 %v1465_v61, %v284_v38  ;;  %v2750_v61 = vld [vmem:[#allocation33_spill] sm:$0xff]  ;;  %v2751_v38 = vld [vmem:[#allocation34_spill] sm:$0xff] }
  0xd9   :  { %306 = vmatmul.f32.vlgmr.msrb.gmra.mxu0 %v287_v41  ;;  %348 = vmatmul.f32.vlgmr.msrb.gmra.mxu1 %v287_v41 }
  0xda   :  { %389 = vmatmul.f32.vlgmr.msrb.gmra.mxu2 %v287_v41  ;;  %414 = vmatmul.f32.vlgmr.msrb.gmra.mxu3 %v287_v41  ;;  %v2752_v41 = vld [vmem:[#allocation40_spill] sm:$0xff] }
  0xdb   :  { %594 = vmatpush.msrb.mxu0 %v2727_v60  ;;  %636 = vmatpush.msrb.mxu1 %v1789_v1 }
  0xdc   :  { %677 = vmatpush.msrb.mxu2 %v1833_v17  ;;  %702 = vmatpush.msrb.mxu3 %v1791_v2 }
  0xdd   :  { %595 = vmatpush.msrb.mxu0 %v1795_v3  ;;  %637 = vmatpush.msrb.mxu1 %v1797_v4 }
  0xde   :  { %678 = vmatpush.msrb.mxu2 %v1839_v19  ;;  %703 = vmatpush.msrb.mxu3 %v1799_v5 }
  0xdf   :  { %596 = vmatpush.msrb.mxu0 %v1802_v6  ;;  %638 = vmatpush.msrb.mxu1 %v1804_v7 }
  0xe0   :  { %679 = vmatpush.msrb.mxu2 %v1851_v23  ;;  %704 = vmatpush.msrb.mxu3 %v1808_v8 }
  0xe1   :  { %597 = vmatpush.msrb.mxu0 %v1811_v9  ;;  %639 = vmatpush.msrb.mxu1 %v1813_v10 }
  0xe2   :  { %680 = vmatpush.msrb.mxu2 %v1863_v27  ;;  %705 = vmatpush.msrb.mxu3 %v1817_v11 }
  0xe3   :  { %598 = vmatpush.msrb.mxu0 %v1820_v12  ;;  %640 = vmatpush.msrb.mxu1 %v1822_v13 }
  0xe4   :  { %681 = vmatpush.msrb.mxu2 %v1875_v31  ;;  %706 = vmatpush.msrb.mxu3 %v1826_v14 }
  0xe5   :  { %599 = vmatpush.msrb.mxu0 %v1829_v15  ;;  %641 = vmatpush.msrb.mxu1 %v1831_v16 }
  0xe6   :  { %682 = vmatpush.msrb.mxu2 %v1887_v35  ;;  %707 = vmatpush.msrb.mxu3 %v1837_v18 }
  0xe7   :  { %600 = vmatpush.msrb.mxu0 %v1842_v20  ;;  %642 = vmatpush.msrb.mxu1 %v1844_v21 }
  0xe8   :  { %683 = vmatpush.msrb.mxu2 %v1899_v39  ;;  %708 = vmatpush.msrb.mxu3 %v1849_v22 }
  0xe9   :  { %601 = vmatpush.msrb.mxu0 %v1854_v24  ;;  %643 = vmatpush.msrb.mxu1 %v1856_v25 }
  0xea   :  { %684 = vmatpush.msrb.mxu2 %v1911_v43  ;;  %709 = vmatpush.msrb.mxu3 %v1861_v26 }
  0xeb   :  { %602 = vmatpush.msrb.mxu0 %v1866_v28  ;;  %644 = vmatpush.msrb.mxu1 %v1868_v29 }
  0xec   :  { %685 = vmatpush.msrb.mxu2 %v1923_v47  ;;  %710 = vmatpush.msrb.mxu3 %v1873_v30 }
  0xed   :  { %603 = vmatpush.msrb.mxu0 %v1878_v32  ;;  %645 = vmatpush.msrb.mxu1 %v1880_v33 }
  0xee   :  { %686 = vmatpush.msrb.mxu2 %v2728_v34  ;;  %711 = vmatpush.msrb.mxu3 %v2729_v36 }
  0xef   :  { %604 = vmatpush.msrb.mxu0 %v2730_v37  ;;  %646 = vmatpush.msrb.mxu1 %v2731_v40 }
  0xf0   :  { %687 = vmatpush.msrb.mxu2 %v2732_v51  ;;  %712 = vmatpush.msrb.mxu3 %v2733_v55 }
  0xf1   :  { %605 = vmatpush.msrb.mxu0 %v2734_v52  ;;  %647 = vmatpush.msrb.mxu1 %v2735_v48 }
  0xf2   :  { %688 = vmatpush.msrb.mxu2 %v2736_v62  ;;  %713 = vmatpush.msrb.mxu3 %v2737_v50 }
  0xf3   :  { %606 = vmatpush.msrb.mxu0 %v2738_v0  ;;  %648 = vmatpush.msrb.mxu1 %v2739_v59 }
  0xf4   :  { %689 = vmatpush.msrb.mxu2 %v2740_v46  ;;  %714 = vmatpush.msrb.mxu3 %v2741_v49 }
  0xf5   :  { %607 = vmatpush.msrb.mxu0 %v2742_v54  ;;  %649 = vmatpush.msrb.mxu1 %v2743_v56  ;;  %v2753_v54 = vld [vmem:[#allocation35_spill] sm:$0xff]  ;;  %v289_v56 = vld [vmem:[#allocation4 + $0x28] sm:$0xff] }
  0xf6   :  { %690 = vmatpush.msrb.mxu2 %v2744_v57  ;;  %715 = vmatpush.msrb.mxu3 %v2745_v45  ;;  %v331_v57 = vld [vmem:[#allocation4 + $0x20] sm:$0xff] }
  0xf7   :  { %608 = vmatpush.msrb.mxu0 %v2746_v63  ;;  %650 = vmatpush.msrb.mxu1 %v2747_v53 }
  0xf8   :  { %691 = vmatpush.msrb.mxu2 %v2748_v58  ;;  %716 = vmatpush.msrb.mxu3 %v2749_v44  ;;  %v397_v58 = vld [vmem:[#allocation4 + $0x38] sm:$0xff] }
  0xf9   :  { %609 = vmatpush.msrb.mxu0 %v2750_v61  ;;  %651 = vmatpush.msrb.mxu1 %v2751_v38 }
  0xfa   :  { %692 = vmatpush.msrb.mxu2 %v2752_v41  ;;  %717 = vmatpush.msrb.mxu3 %v2753_v54  ;;  %v372_v54 = vld [vmem:[#allocation4 + $0x30] sm:$0xff] }
 0x156   :  { %v307_v49 = vpop.f32.mrf.mxu0  ;;  %v349_v45 = vpop.f32.mrf.mxu1 }
 0x157   :  { %v310_v46 = vadd.f32 %v307_v49, %v289_v56  ;;  %v352_v63 = vadd.f32 %v349_v45, %v331_v57 }
 0x159   :  { %v1419_v59 = vmul.f32 -1.442695, %v310_v46  ;;  %v1420_v53 = vmul.f32 -1.442695, %v352_v63 }
 0x15b   :  { %1466 = vpow2.f32 %v1419_v59 }
 0x15c   :  { %1468 = vpow2.f32 %v1420_v53 }
 0x15d   :  { %v415_v44 = vpop.f32.mrf.mxu3  ;;  %v390_v48 = vpop.f32.mrf.mxu2 }
 0x15e   :  { %v418_v0 = vadd.f32 %v415_v44, %v397_v58  ;;  %v393_v46 = vadd.f32 %v390_v48, %v372_v54 }
 0x160   :  { %v1421_v61 = vmul.f32 -1.442695, %v418_v0 }
 0x161   :  { %v1467_v50 = vpop.eup %1466 }
 0x162   :  { %v1469_v38 = vpop.eup %1468  ;;  %v314_v62 = vadd.f32 1.0, %v1467_v50  ;;  %1470 = vpow2.f32 %v1421_v61 }
 0x163   :  { %v356_v41 = vadd.f32 1.0, %v1469_v38 }
 0x164   :  { %1472 = vrcp.f32 %v314_v62  ;;  %v326_v53 = vand.u32 2147483648, %v314_v62  ;;  %v324_v50 = vand.u32 2147483647, %v314_v62  ;;  %vm320_vm14 = vweird.f32 %v314_v62 }
 0x165   :  { %1474 = vrcp.f32 %v356_v41  ;;  %v368_v44 = vand.u32 2147483648, %v356_v41  ;;  %v366_v38 = vand.u32 2147483647, %v356_v41  ;;  %vm362_vm0 = vweird.f32 %v356_v41 }
 0x166   :  { %v327_v48 = vor.u32 1.1754944e-38, %v326_v53  ;;  %vm325_vm1 = vcmp.eq.f32.partialorder %v324_v50, 8.507059e+37 }
 0x167   :  { %vm367_vm3 = vcmp.eq.f32.partialorder %v366_v38, 8.507059e+37 }
 0x168   :  { %v1471_v52 = vpop.eup %1470 }
 0x169   :  { %v422_v49 = vadd.f32 1.0, %v1471_v52 }
 0x16a   :  { %v1473_v56 = vpop.eup %1472 }
 0x16b   :  { %v1475_v57 = vpop.eup %1474  ;;  %v316_v59 = vmul.f32 %v1473_v56, %v314_v62  ;;  %1476 = vrcp.f32 %v422_v49  ;;  %vm321_vm12 = vweird.f32 %v1473_v56  ;;  %vm428_vm5 = vweird.f32 %v422_v49 }
 0x16c   :  { %v358_v45 = vmul.f32 %v1475_v57, %v356_v41  ;;  %1478 = vtanh.f32 %v393_v46  ;;  %vm363_vm13 = vweird.f32 %v1475_v57  ;;  %vm322_vm15 = vmor %vm320_vm14, %vm321_vm12  ;;  %v434_v41 = vand.u32 2147483648, %v422_v49 }
 0x16d   :  { %v317_v63 = vsub.f32 1.0, %v316_v59  ;;  %vm364_vm2 = vmor %vm362_vm0, %vm363_vm13  ;;  %v369_v59 = vor.u32 1.1754944e-38, %v368_v44 }
 0x16e   :  { %v359_v0 = vsub.f32 1.0, %v358_v45 }
 0x16f   :  { %v318_v58 = vmul.f32 %v1473_v56, %v317_v63 }
 0x170   :  { %v360_v61 = vmul.f32 %v1475_v57, %v359_v0 }
 0x171   :  { %v1477_v55 = vpop.eup %1476  ;;  %v319_v52 = vadd.f32 %v1473_v56, %v318_v58 }
 0x172   :  { %v361_v54 = vadd.f32 %v1475_v57, %v360_v61  ;;  %v424_v51 = vmul.f32 %v1477_v55, %v422_v49  ;;  %v1479_v46 = vpop.eup %1478  ;;  %vm429_vm4 = vweird.f32 %v1477_v55 }
 0x173   :  { %v323_v40 = vsel %vm322_vm15, %v1473_v56, %v319_v52  ;;  %v432_v56 = vand.u32 2147483647, %v422_v49  ;;  %vm430_vm6 = vmor %vm428_vm5, %vm429_vm4 }
 0x174   :  { %v328_v45 = vsel %vm325_vm1, %v327_v48, %v323_v40  ;;  %v365_v63 = vsel %vm364_vm2, %v1475_v57, %v361_v54  ;;  %v425_v37 = vsub.f32 1.0, %v424_v51  ;;  %v435_v40 = vor.u32 1.1754944e-38, %v434_v41 }
 0x175   :  { %v330_v0 = vmul.f32 %v328_v45, %v2107_v42  ;;  %v370_v36 = vsel %vm367_vm3, %v369_v59, %v365_v63  ;;  %vm433_vm7 = vcmp.eq.f32.partialorder %v432_v56, 8.507059e+37 }
 0x176   :  { %v395_v34 = vmul.f32 %v1479_v46, %v370_v36  ;;  %v426_v62 = vmul.f32 %v1477_v55, %v425_v37 }
 0x178   :  { %v2175_v58 = vadd.f32 %v395_v34, %v330_v0  ;;  %v427_v53 = vadd.f32 %v1477_v55, %v426_v62 }
 0x17a   :  { %1480 = vtanh.f32 %v2175_v58  ;;  %v431_v50 = vsel %vm430_vm6, %v1477_v55, %v427_v53  ;;  %v524_v55 = vld [vmem:[#allocation4 + $0x50] sm:$0xff] }
 0x17b   :  { %v436_v51 = vsel %vm433_vm7, %v435_v40, %v431_v50 }
 0x180   :  { %v1481_v57 = vpop.eup %1480 }
 0x181   :  { %v439_v44 = vmul.f32 %v1481_v57, %v436_v51 }
 0x183   :  { %458 = vmatmul.f32.vlgmr.msra.gmra.mxu0 %v439_v44  ;;  %500 = vmatmul.f32.vlgmr.msra.gmra.mxu1 %v439_v44 }
 0x184   :  { %541 = vmatmul.f32.vlgmr.msra.gmra.mxu2 %v439_v44  ;;  %566 = vmatmul.f32.vlgmr.msra.gmra.mxu3 %v439_v44 }
 0x185   :  { %746 = vmatpush.msra.mxu0 %v2727_v60  ;;  %788 = vmatpush.msra.mxu1 %v1789_v1  ;;  %v2754_v1 = vld [vmem:[#allocation28_spill] sm:$0xff] }
 0x186   :  { %829 = vmatpush.msra.mxu2 %v1833_v17  ;;  %854 = vmatpush.msra.mxu3 %v1791_v2  ;;  %v2755_v2 = vld [vmem:[#allocation15_spill] sm:$0xff]  ;;  %v2770_v17 = vld [vmem:[#allocation38_spill] sm:$0xff] }
 0x187   :  { %747 = vmatpush.msra.mxu0 %v1795_v3  ;;  %789 = vmatpush.msra.mxu1 %v1797_v4  ;;  %v2756_v3 = vld [vmem:[#allocation16_spill] sm:$0xff]  ;;  %v2757_v4 = vld [vmem:[#allocation17_spill] sm:$0xff] }
 0x188   :  { %830 = vmatpush.msra.mxu2 %v1839_v19  ;;  %855 = vmatpush.msra.mxu3 %v1799_v5  ;;  %v2758_v5 = vld [vmem:[#allocation32_spill] sm:$0xff]  ;;  %v2772_v19 = vld [vmem:[#allocation29_spill] sm:$0xff] }
 0x189   :  { %748 = vmatpush.msra.mxu0 %v1802_v6  ;;  %790 = vmatpush.msra.mxu1 %v1804_v7  ;;  %v2759_v6 = vld [vmem:[#allocation18_spill] sm:$0xff]  ;;  %v2760_v7 = vld [vmem:[#allocation19_spill] sm:$0xff] }
 0x18a   :  { %831 = vmatpush.msra.mxu2 %v1851_v23  ;;  %856 = vmatpush.msra.mxu3 %v1808_v8  ;;  %v2761_v8 = vld [vmem:[#allocation20_spill] sm:$0xff]  ;;  %v2776_v23 = vld [vmem:[#allocation33_spill] sm:$0xff] }
 0x18b   :  { %749 = vmatpush.msra.mxu0 %v1811_v9  ;;  %791 = vmatpush.msra.mxu1 %v1813_v10  ;;  %v2762_v9 = vld [vmem:[#allocation36_spill] sm:$0xff]  ;;  %v2763_v10 = vld [vmem:[#allocation21_spill] sm:$0xff] }
 0x18c   :  { %832 = vmatpush.msra.mxu2 %v1863_v27  ;;  %857 = vmatpush.msra.mxu3 %v1817_v11  ;;  %v2764_v11 = vld [vmem:[#allocation22_spill] sm:$0xff] }
 0x18d   :  { %750 = vmatpush.msra.mxu0 %v1820_v12  ;;  %792 = vmatpush.msra.mxu1 %v1822_v13  ;;  %v2765_v12 = vld [vmem:[#allocation23_spill] sm:$0xff]  ;;  %v2766_v13 = vld [vmem:[#allocation37_spill] sm:$0xff]  ;;  %v441_v27 = vld [vmem:[#allocation4 + $0x48] sm:$0xff] }
 0x18e   :  { %833 = vmatpush.msra.mxu2 %v1875_v31  ;;  %858 = vmatpush.msra.mxu3 %v1826_v14  ;;  %v2767_v14 = vld [vmem:[#allocation24_spill] sm:$0xff] }
 0x18f   :  { %751 = vmatpush.msra.mxu0 %v1829_v15  ;;  %793 = vmatpush.msra.mxu1 %v1831_v16  ;;  %v2768_v15 = vld [vmem:[#allocation25_spill] sm:$0xff]  ;;  %v2769_v16 = vld [vmem:[#allocation26_spill] sm:$0xff] }
 0x190   :  { %834 = vmatpush.msra.mxu2 %v1887_v35  ;;  %859 = vmatpush.msra.mxu3 %v1837_v18  ;;  %v2771_v18 = vld [vmem:[#allocation27_spill] sm:$0xff] }
 0x191   :  { %752 = vmatpush.msra.mxu0 %v1842_v20  ;;  %794 = vmatpush.msra.mxu1 %v1844_v21  ;;  %v2773_v20 = vld [vmem:[#allocation30_spill] sm:$0xff]  ;;  %v2774_v21 = vld [vmem:[#allocation39_spill] sm:$0xff] }
 0x192   :  { %835 = vmatpush.msra.mxu2 %v1899_v39  ;;  %860 = vmatpush.msra.mxu3 %v1849_v22  ;;  %v2775_v22 = vld [vmem:[#allocation31_spill] sm:$0xff]  ;;  %v549_v39 = vld [vmem:[#allocation4 + $0x58] sm:$0xff] }
 0x193   :  { %753 = vmatpush.msra.mxu0 %v1854_v24  ;;  %795 = vmatpush.msra.mxu1 %v1856_v25  ;;  %v2777_v24 = vld [vmem:[#allocation34_spill] sm:$0xff]  ;;  %v2778_v25 = vld [vmem:[#allocation40_spill] sm:$0xff] }
 0x194   :  { %836 = vmatpush.msra.mxu2 %v1911_v43  ;;  %861 = vmatpush.msra.mxu3 %v1861_v26  ;;  %v2779_v26 = vld [vmem:[#allocation35_spill] sm:$0xff] }
 0x195   :  { %754 = vmatpush.msra.mxu0 %v1866_v28  ;;  %796 = vmatpush.msra.mxu1 %v1868_v29  ;;  %v483_v28 = vld [vmem:[#allocation4 + $0x40] sm:$0xff] }
 0x196   :  { %837 = vmatpush.msra.mxu2 %v1923_v47  ;;  %862 = vmatpush.msra.mxu3 %v1873_v30 }
 0x197   :  { %755 = vmatpush.msra.mxu0 %v1878_v32  ;;  %797 = vmatpush.msra.mxu1 %v1880_v33 }
 0x198   :  { %838 = vmatpush.msra.mxu2 %v2754_v1  ;;  %863 = vmatpush.msra.mxu3 %v2755_v2 }
 0x199   :  { %756 = vmatpush.msra.mxu0 %v2756_v3  ;;  %798 = vmatpush.msra.mxu1 %v2757_v4 }
 0x19a   :  { %839 = vmatpush.msra.mxu2 %v2758_v5  ;;  %864 = vmatpush.msra.mxu3 %v2759_v6 }
 0x19b   :  { %757 = vmatpush.msra.mxu0 %v2760_v7  ;;  %799 = vmatpush.msra.mxu1 %v2761_v8 }
 0x19c   :  { %840 = vmatpush.msra.mxu2 %v2762_v9  ;;  %865 = vmatpush.msra.mxu3 %v2763_v10 }
 0x19d   :  { %758 = vmatpush.msra.mxu0 %v2764_v11  ;;  %800 = vmatpush.msra.mxu1 %v2765_v12 }
 0x19e   :  { %841 = vmatpush.msra.mxu2 %v2766_v13  ;;  %866 = vmatpush.msra.mxu3 %v2767_v14 }
 0x19f   :  { %759 = vmatpush.msra.mxu0 %v2768_v15  ;;  %801 = vmatpush.msra.mxu1 %v2769_v16 }
 0x1a0   :  { %842 = vmatpush.msra.mxu2 %v2770_v17  ;;  %867 = vmatpush.msra.mxu3 %v2771_v18 }
 0x1a1   :  { %760 = vmatpush.msra.mxu0 %v2772_v19  ;;  %802 = vmatpush.msra.mxu1 %v2773_v20 }
 0x1a2   :  { %843 = vmatpush.msra.mxu2 %v2774_v21  ;;  %868 = vmatpush.msra.mxu3 %v2775_v22  ;;  %v2249_v21 = vld [vmem:[#allocation7 + $0x1e0] sm:$0xff]  ;;  %v2252_v22 = vld [vmem:[#allocation7 + $0x1f0] sm:$0xff] }
 0x1a3   :  { %761 = vmatpush.msra.mxu0 %v2776_v23  ;;  %803 = vmatpush.msra.mxu1 %v2777_v24  ;;  %v2255_v23 = vld [vmem:[#allocation7 + $0x1f8] sm:$0xff]  ;;  %v2258_v24 = vld [vmem:[#allocation7 + $0x1c8] sm:$0xff] }
 0x1a4   :  { %844 = vmatpush.msra.mxu2 %v2778_v25  ;;  %869 = vmatpush.msra.mxu3 %v2779_v26  ;;  %v2261_v25 = vld [vmem:[#allocation7 + $0x1c0] sm:$0xff]  ;;  %v2264_v26 = vld [vmem:[#allocation7 + $0x1d0] sm:$0xff] }
 0x200   :  { %v459_v29 = vpop.f32.mrf.mxu0  ;;  %v501_v30 = vpop.f32.mrf.mxu1 }
 0x201   :  { %v462_v31 = vadd.f32 %v459_v29, %v441_v27  ;;  %v504_v32 = vadd.f32 %v501_v30, %v483_v28  ;;  %v2267_v27 = vld [vmem:[#allocation7 + $0x1d8] sm:$0xff]  ;;  %v2270_v28 = vld [vmem:[#allocation7 + $0x1a8] sm:$0xff]  ;;  %v2273_v29 = vld [vmem:[#allocation7 + $0x1a0] sm:$0xff] }
 0x202   :  { %v2276_v30 = vld [vmem:[#allocation7 + $0x1b0] sm:$0xff] }
 0x203   :  { %v1422_v33 = vmul.f32 -1.442695, %v462_v31  ;;  %v1423_v35 = vmul.f32 -1.442695, %v504_v32  ;;  %v2279_v31 = vld [vmem:[#allocation7 + $0x1b8] sm:$0xff]  ;;  %v2282_v32 = vld [vmem:[#allocation7 + $0x188] sm:$0xff] }
 0x205   :  { %1482 = vpow2.f32 %v1422_v33  ;;  %v2285_v33 = vld [vmem:[#allocation7 + $0x180] sm:$0xff] }
 0x206   :  { %1484 = vpow2.f32 %v1423_v35  ;;  %v2288_v35 = vld [vmem:[#allocation7 + $0x190] sm:$0xff] }
 0x207   :  { %v567_v43 = vpop.f32.mrf.mxu3  ;;  %v542_v49 = vpop.f32.mrf.mxu2 }
 0x208   :  { %v570_v47 = vadd.f32 %v567_v43, %v549_v39  ;;  %v545_v48 = vadd.f32 %v542_v49, %v524_v55  ;;  %v2291_v39 = vld [vmem:[#allocation7 + $0x198] sm:$0xff]  ;;  %v2294_v43 = vld [vmem:[#allocation7 + $0x168] sm:$0xff] }
 0x209   :  { %v2315_v55 = vld [vmem:[#allocation7 + $0x158] sm:$0xff]  ;;  %v2318_v49 = vld [vmem:[#allocation7 + $0x128] sm:$0xff] }
 0x20a   :  { %v1424_v60 = vmul.f32 -1.442695, %v570_v47  ;;  %v2297_v47 = vld [vmem:[#allocation7 + $0x160] sm:$0xff] }
 0x20b   :  { %v1483_v42 = vpop.eup %1482 }
 0x20c   :  { %v1485_v34 = vpop.eup %1484  ;;  %v466_v36 = vadd.f32 1.0, %v1483_v42  ;;  %1486 = vpow2.f32 %v1424_v60  ;;  %v2300_v60 = vld [vmem:[#allocation7 + $0x170] sm:$0xff]  ;;  %v2303_v42 = vld [vmem:[#allocation7 + $0x178] sm:$0xff] }
 0x20d   :  { %v508_v37 = vadd.f32 1.0, %v1485_v34  ;;  %v2306_v34 = vld [vmem:[#allocation7 + $0x148] sm:$0xff] }
 0x20e   :  { %1488 = vrcp.f32 %v466_v36  ;;  %v478_v63 = vand.u32 2147483648, %v466_v36  ;;  %v476_v53 = vand.u32 2147483647, %v466_v36  ;;  %vm472_vm10 = vweird.f32 %v466_v36 }
 0x20f   :  { %1490 = vrcp.f32 %v508_v37  ;;  %v520_v41 = vand.u32 2147483648, %v508_v37  ;;  %v518_v50 = vand.u32 2147483647, %v508_v37  ;;  %vm514_vm12 = vweird.f32 %v508_v37 }
 0x210   :  { %v479_v51 = vor.u32 1.1754944e-38, %v478_v63  ;;  %vm477_vm13 = vcmp.eq.f32.partialorder %v476_v53, 8.507059e+37  ;;  %v2345_v63 = vld [vmem:[#allocation7 + $0xe0] sm:$0xff]  ;;  %v2354_v53 = vld [vmem:[#allocation7 + $0xc8] sm:$0xff] }
 0x211   :  { %v521_v3 = vor.u32 1.1754944e-38, %v520_v41  ;;  %vm519_vm15 = vcmp.eq.f32.partialorder %v518_v50, 8.507059e+37  ;;  %v2357_v41 = vld [vmem:[#allocation7 + $0xc0] sm:$0xff]  ;;  %v2363_v50 = vld [vmem:[#allocation7 + $0xd8] sm:$0xff] }
 0x212   :  { %v1487_v61 = vpop.eup %1486  ;;  %2781 = vst [vmem:[#allocation28_spill] sm:$0xff] %v2363_v50 }
 0x213   :  { %v574_v38 = vadd.f32 1.0, %v1487_v61  ;;  %v2321_v61 = vld [vmem:[#allocation7 + $0x120] sm:$0xff] }
 0x214   :  { %v1489_v52 = vpop.eup %1488 }
 0x215   :  { %v1491_v54 = vpop.eup %1490  ;;  %v468_v59 = vmul.f32 %v1489_v52, %v466_v36  ;;  %1492 = vrcp.f32 %v574_v38  ;;  %vm473_vm8 = vweird.f32 %v1489_v52  ;;  %v586_v14 = vand.u32 2147483648, %v574_v38  ;;  %v2309_v36 = vld [vmem:[#allocation7 + $0x140] sm:$0xff] }
 0x216   :  { %v510_v46 = vmul.f32 %v1491_v54, %v508_v37  ;;  %1494 = vtanh.f32 %v545_v48  ;;  %vm515_vm9 = vweird.f32 %v1491_v54  ;;  %vm474_vm11 = vmor %vm472_vm10, %vm473_vm8  ;;  %vm580_vm1 = vweird.f32 %v574_v38  ;;  %v2312_v37 = vld [vmem:[#allocation7 + $0x150] sm:$0xff]  ;;  %v2330_v48 = vld [vmem:[#allocation7 + $0x108] sm:$0xff] }
 0x217   :  { %v469_v45 = vsub.f32 1.0, %v468_v59  ;;  %vm516_vm14 = vmor %vm514_vm12, %vm515_vm9  ;;  %v584_v15 = vand.u32 2147483647, %v574_v38  ;;  %v587_v17 = vor.u32 1.1754944e-38, %v586_v14  ;;  %v2336_v59 = vld [vmem:[#allocation7 + $0x110] sm:$0xff]  ;;  %v2414_v14 = vld [vmem:[#allocation7 + $0x28] sm:$0xff] }
 0x218   :  { %v511_v0 = vsub.f32 1.0, %v510_v46  ;;  %v2339_v46 = vld [vmem:[#allocation7 + $0x118] sm:$0xff]  ;;  %2798 = vst [vmem:[#allocation27_spill] sm:$0xff] %v2414_v14 }
 0x219   :  { %v470_v62 = vmul.f32 %v1489_v52, %v469_v45  ;;  %vm585_vm3 = vcmp.eq.f32.partialorder %v584_v15, 8.507059e+37  ;;  %v2342_v45 = vld [vmem:[#allocation7 + $0xe8] sm:$0xff]  ;;  %v2417_v15 = vld [vmem:[#allocation7 + $0x20] sm:$0xff] }
 0x21a   :  { %v512_v56 = vmul.f32 %v1491_v54, %v511_v0  ;;  %v2348_v0 = vld [vmem:[#allocation7 + $0xf0] sm:$0xff]  ;;  %2799 = vst [vmem:[#allocation29_spill] sm:$0xff] %v2417_v15 }
 0x21b   :  { %v1493_v40 = vpop.eup %1492  ;;  %v471_v57 = vadd.f32 %v1489_v52, %v470_v62  ;;  %v2351_v62 = vld [vmem:[#allocation7 + $0xf8] sm:$0xff] }
 0x21c   :  { %v513_v44 = vadd.f32 %v1491_v54, %v512_v56  ;;  %v576_v1 = vmul.f32 %v1493_v40, %v574_v38  ;;  %v1495_v4 = vpop.eup %1494  ;;  %vm581_vm0 = vweird.f32 %v1493_v40  ;;  %v2324_v38 = vld [vmem:[#allocation7 + $0x130] sm:$0xff] }
 0x21d   :  { %v475_v2 = vsel %vm474_vm11, %v1489_v52, %v471_v57  ;;  %vm582_vm2 = vmor %vm580_vm1, %vm581_vm0  ;;  %v2327_v52 = vld [vmem:[#allocation7 + $0x138] sm:$0xff]  ;;  %v2360_v56 = vld [vmem:[#allocation7 + $0xd0] sm:$0xff] }
 0x21e   :  { %v480_v5 = vsel %vm477_vm13, %v479_v51, %v475_v2  ;;  %v517_v6 = vsel %vm516_vm14, %v1491_v54, %v513_v44  ;;  %v577_v7 = vsub.f32 1.0, %v576_v1  ;;  %v2333_v54 = vld [vmem:[#allocation7 + $0x100] sm:$0xff]  ;;  %2780 = vst [vmem:[#allocation14_spill] sm:$0xff] %v2360_v56  ;;  %v2372_v51 = vld [vmem:[#allocation7 + $0xb0] sm:$0xff]  ;;  %v2375_v44 = vld [vmem:[#allocation7 + $0xb8] sm:$0xff] }
 0x21f   :  { %v482_v8 = vmul.f32 %v480_v5, %v2175_v58  ;;  %v522_v9 = vsel %vm519_vm15, %v521_v3, %v517_v6  ;;  %v2246_v58 = vld [vmem:[#allocation7 + $0x1e8] sm:$0xff]  ;;  %v2369_v57 = vld [vmem:[#allocation7 + $0xa0] sm:$0xff]  ;;  %2784 = vst [vmem:[#allocation17_spill] sm:$0xff] %v2372_v51  ;;  %v2384_v3 = vld [vmem:[#allocation7 + $0x90] sm:$0xff] }
 0x220   :  { %v547_v10 = vmul.f32 %v1495_v4, %v522_v9  ;;  %v578_v11 = vmul.f32 %v1493_v40, %v577_v7  ;;  %2783 = vst [vmem:[#allocation16_spill] sm:$0xff] %v2369_v57  ;;  %v2378_v1 = vld [vmem:[#allocation7 + $0x88] sm:$0xff]  ;;  %v2381_v2 = vld [vmem:[#allocation7 + $0x80] sm:$0xff]  ;;  %v2387_v4 = vld [vmem:[#allocation7 + $0x98] sm:$0xff] }
 0x221   :  { %2785 = vst [vmem:[#allocation32_spill] sm:$0xff] %v2375_v44  ;;  %v2390_v5 = vld [vmem:[#allocation7 + $0x68] sm:$0xff]  ;;  %v2393_v6 = vld [vmem:[#allocation7 + $0x60] sm:$0xff]  ;;  %v2396_v7 = vld [vmem:[#allocation7 + $0x70] sm:$0xff] }
 0x222   :  { %v2243_v12 = vadd.f32 %v547_v10, %v482_v8  ;;  %v579_v13 = vadd.f32 %v1493_v40, %v578_v11  ;;  %2786 = vst [vmem:[#allocation18_spill] sm:$0xff] %v2378_v1  ;;  %v2399_v8 = vld [vmem:[#allocation7 + $0x78] sm:$0xff]  ;;  %v2402_v9 = vld [vmem:[#allocation7 + $0x48] sm:$0xff]  ;;  %v2405_v10 = vld [vmem:[#allocation7 + $0x40] sm:$0xff] }
 0x223   :  { %2787 = vst [vmem:[#allocation19_spill] sm:$0xff] %v2381_v2  ;;  %v2408_v11 = vld [vmem:[#allocation7 + $0x50] sm:$0xff] }
 0x224   :  { %1496 = vtanh.f32 %v2243_v12  ;;  %v583_v16 = vsel %vm582_vm2, %v1493_v40, %v579_v13  ;;  %v2366_v40 = vld [vmem:[#allocation7 + $0xa8] sm:$0xff]  ;;  %2788 = vst [vmem:[#allocation20_spill] sm:$0xff] %v2384_v3  ;;  %v2411_v13 = vld [vmem:[#allocation7 + $0x58] sm:$0xff] }
 0x225   :  { %v588_v19 = vsel %vm585_vm3, %v587_v17, %v583_v16  ;;  %2782 = vst [vmem:[#allocation15_spill] sm:$0xff] %v2366_v40  ;;  %v2420_v16 = vld [vmem:[#allocation7 + $0x30] sm:$0xff]  ;;  %v2423_v17 = vld [vmem:[#allocation7 + $0x38] sm:$0xff] }
 0x226   :  { %2789 = vst [vmem:[#allocation36_spill] sm:$0xff] %v2387_v4 }
 0x227   :  { %2790 = vst [vmem:[#allocation21_spill] sm:$0xff] %v2390_v5 }
 0x228   :  { %2791 = vst [vmem:[#allocation22_spill] sm:$0xff] %v2393_v6 }
 0x229   :  { %2792 = vst [vmem:[#allocation23_spill] sm:$0xff] %v2396_v7 }
 0x22a   :  { %v1497_v18 = vpop.eup %1496  ;;  %2793 = vst [vmem:[#allocation37_spill] sm:$0xff] %v2399_v8 }
 0x22b   :  { %v591_v20 = vmul.f32 %v1497_v18, %v588_v19  ;;  %2794 = vst [vmem:[#allocation24_spill] sm:$0xff] %v2402_v9  ;;  %v2426_v18 = vld [vmem:[#allocation7 + $0x8] sm:$0xff]  ;;  %v2429_v19 = vld [vmem:[#allocation7] sm:$0xff] }
 0x22c   :  { %2795 = vst [vmem:[#allocation25_spill] sm:$0xff] %v2405_v10 }
 0x22d   :  { %610 = vmatmul.f32.vlgmr.msrb.gmra.mxu0 %v591_v20  ;;  %652 = vmatmul.f32.vlgmr.msrb.gmra.mxu1 %v591_v20  ;;  %2796 = vst [vmem:[#allocation26_spill] sm:$0xff] %v2408_v11 }
 0x22e   :  { %693 = vmatmul.f32.vlgmr.msrb.gmra.mxu2 %v591_v20  ;;  %718 = vmatmul.f32.vlgmr.msrb.gmra.mxu3 %v591_v20  ;;  %2797 = vst [vmem:[#allocation38_spill] sm:$0xff] %v2411_v13  ;;  %v2432_v20 = vld [vmem:[#allocation7 + $0x10] sm:$0xff] }
 0x22f   :  { %898 = vmatpush.msrb.mxu0 %v2246_v58  ;;  %940 = vmatpush.msrb.mxu1 %v2249_v21  ;;  %2800 = vst [vmem:[#allocation30_spill] sm:$0xff] %v2420_v16 }
 0x230   :  { %981 = vmatpush.msrb.mxu2 %v2252_v22  ;;  %1006 = vmatpush.msrb.mxu3 %v2255_v23  ;;  %2801 = vst [vmem:[#allocation39_spill] sm:$0xff] %v2423_v17 }
 0x231   :  { %899 = vmatpush.msrb.mxu0 %v2258_v24  ;;  %941 = vmatpush.msrb.mxu1 %v2261_v25  ;;  %2802 = vst [vmem:[#allocation31_spill] sm:$0xff] %v2426_v18 }
 0x232   :  { %982 = vmatpush.msrb.mxu2 %v2264_v26  ;;  %1007 = vmatpush.msrb.mxu3 %v2267_v27  ;;  %2803 = vst [vmem:[#allocation33_spill] sm:$0xff] %v2429_v19 }
 0x233   :  { %900 = vmatpush.msrb.mxu0 %v2270_v28  ;;  %942 = vmatpush.msrb.mxu1 %v2273_v29  ;;  %2804 = vst [vmem:[#allocation34_spill] sm:$0xff] %v2432_v20 }
 0x234   :  { %983 = vmatpush.msrb.mxu2 %v2276_v30  ;;  %1008 = vmatpush.msrb.mxu3 %v2279_v31 }
 0x235   :  { %901 = vmatpush.msrb.mxu0 %v2282_v32  ;;  %943 = vmatpush.msrb.mxu1 %v2285_v33 }
 0x236   :  { %984 = vmatpush.msrb.mxu2 %v2288_v35  ;;  %1009 = vmatpush.msrb.mxu3 %v2291_v39 }
 0x237   :  { %902 = vmatpush.msrb.mxu0 %v2294_v43  ;;  %944 = vmatpush.msrb.mxu1 %v2297_v47 }
 0x238   :  { %985 = vmatpush.msrb.mxu2 %v2300_v60  ;;  %1010 = vmatpush.msrb.mxu3 %v2303_v42 }
 0x239   :  { %903 = vmatpush.msrb.mxu0 %v2306_v34  ;;  %945 = vmatpush.msrb.mxu1 %v2309_v36 }
 0x23a   :  { %986 = vmatpush.msrb.mxu2 %v2312_v37  ;;  %1011 = vmatpush.msrb.mxu3 %v2315_v55 }
 0x23b   :  { %904 = vmatpush.msrb.mxu0 %v2318_v49  ;;  %946 = vmatpush.msrb.mxu1 %v2321_v61 }
 0x23c   :  { %987 = vmatpush.msrb.mxu2 %v2324_v38  ;;  %1012 = vmatpush.msrb.mxu3 %v2327_v52 }
 0x23d   :  { %905 = vmatpush.msrb.mxu0 %v2330_v48  ;;  %947 = vmatpush.msrb.mxu1 %v2333_v54 }
 0x23e   :  { %988 = vmatpush.msrb.mxu2 %v2336_v59  ;;  %1013 = vmatpush.msrb.mxu3 %v2339_v46 }
 0x23f   :  { %906 = vmatpush.msrb.mxu0 %v2342_v45  ;;  %948 = vmatpush.msrb.mxu1 %v2345_v63 }
 0x240   :  { %989 = vmatpush.msrb.mxu2 %v2348_v0  ;;  %1014 = vmatpush.msrb.mxu3 %v2351_v62 }
 0x241   :  { %907 = vmatpush.msrb.mxu0 %v2354_v53  ;;  %949 = vmatpush.msrb.mxu1 %v2357_v41 }
 0x242   :  { %990 = vmatpush.msrb.mxu2 %v2360_v56  ;;  %1015 = vmatpush.msrb.mxu3 %v2363_v50 }
 0x243   :  { %908 = vmatpush.msrb.mxu0 %v2366_v40  ;;  %950 = vmatpush.msrb.mxu1 %v2369_v57 }
 0x244   :  { %991 = vmatpush.msrb.mxu2 %v2372_v51  ;;  %1016 = vmatpush.msrb.mxu3 %v2375_v44 }
 0x245   :  { %909 = vmatpush.msrb.mxu0 %v2378_v1  ;;  %951 = vmatpush.msrb.mxu1 %v2381_v2 }
 0x246   :  { %992 = vmatpush.msrb.mxu2 %v2384_v3  ;;  %1017 = vmatpush.msrb.mxu3 %v2387_v4 }
 0x247   :  { %910 = vmatpush.msrb.mxu0 %v2390_v5  ;;  %952 = vmatpush.msrb.mxu1 %v2393_v6 }
 0x248   :  { %993 = vmatpush.msrb.mxu2 %v2396_v7  ;;  %1018 = vmatpush.msrb.mxu3 %v2399_v8  ;;  %v701_v8 = vld [vmem:[#allocation4 + $0x78] sm:$0xff] }
 0x249   :  { %911 = vmatpush.msrb.mxu0 %v2402_v9  ;;  %953 = vmatpush.msrb.mxu1 %v2405_v10 }
 0x24a   :  { %994 = vmatpush.msrb.mxu2 %v2408_v11  ;;  %1019 = vmatpush.msrb.mxu3 %v2411_v13 }
 0x24b   :  { %912 = vmatpush.msrb.mxu0 %v2414_v14  ;;  %954 = vmatpush.msrb.mxu1 %v2417_v15  ;;  %v2435_v15 = vld [vmem:[#allocation7 + $0x18] sm:$0xff]  ;;  %v635_v14 = vld [vmem:[#allocation4 + $0x60] sm:$0xff] }
 0x24c   :  { %995 = vmatpush.msrb.mxu2 %v2420_v16  ;;  %1020 = vmatpush.msrb.mxu3 %v2423_v17  ;;  %2805 = vst [vmem:[#allocation40_spill] sm:$0xff] %v2435_v15  ;;  %v593_v16 = vld [vmem:[#allocation4 + $0x68] sm:$0xff] }
 0x24d   :  { %913 = vmatpush.msrb.mxu0 %v2426_v18  ;;  %955 = vmatpush.msrb.mxu1 %v2429_v19 }
 0x24e   :  { %996 = vmatpush.msrb.mxu2 %v2432_v20  ;;  %1021 = vmatpush.msrb.mxu3 %v2435_v15  ;;  %v676_v15 = vld [vmem:[#allocation4 + $0x70] sm:$0xff] }
 0x2aa   :  { %v611_v13 = vpop.f32.mrf.mxu0  ;;  %v653_v17 = vpop.f32.mrf.mxu1 }
 0x2ab   :  { %v614_v11 = vadd.f32 %v611_v13, %v593_v16  ;;  %v656_v10 = vadd.f32 %v653_v17, %v635_v14 }
 0x2ad   :  { %v1425_v9 = vmul.f32 -1.442695, %v614_v11  ;;  %v1426_v18 = vmul.f32 -1.442695, %v656_v10 }
 0x2af   :  { %1498 = vpow2.f32 %v1425_v9 }
 0x2b0   :  { %1500 = vpow2.f32 %v1426_v18 }
 0x2b1   :  { %v719_v19 = vpop.f32.mrf.mxu3  ;;  %v694_v2 = vpop.f32.mrf.mxu2 }
 0x2b2   :  { %v722_v7 = vadd.f32 %v719_v19, %v701_v8  ;;  %v697_v11 = vadd.f32 %v694_v2, %v676_v15 }
 0x2b4   :  { %v1427_v6 = vmul.f32 -1.442695, %v722_v7 }
 0x2b5   :  { %v1499_v5 = vpop.eup %1498 }
 0x2b6   :  { %v1501_v20 = vpop.eup %1500  ;;  %v618_v4 = vadd.f32 1.0, %v1499_v5  ;;  %1502 = vpow2.f32 %v1427_v6 }
 0x2b7   :  { %v660_v3 = vadd.f32 1.0, %v1501_v20 }
 0x2b8   :  { %1504 = vrcp.f32 %v618_v4  ;;  %v630_v8 = vand.u32 2147483648, %v618_v4  ;;  %v628_v5 = vand.u32 2147483647, %v618_v4  ;;  %vm624_vm6 = vweird.f32 %v618_v4 }
 0x2b9   :  { %1506 = vrcp.f32 %v660_v3  ;;  %v672_v6 = vand.u32 2147483648, %v660_v3  ;;  %v670_v20 = vand.u32 2147483647, %v660_v3  ;;  %vm666_vm8 = vweird.f32 %v660_v3 }
 0x2ba   :  { %v631_v2 = vor.u32 1.1754944e-38, %v630_v8  ;;  %vm629_vm9 = vcmp.eq.f32.partialorder %v628_v5, 8.507059e+37 }
 0x2bb   :  { %vm671_vm11 = vcmp.eq.f32.partialorder %v670_v20, 8.507059e+37  ;;  %v2813_v20 = vld [vmem:[#allocation19_spill] sm:$0xff] }
 0x2bc   :  { %v1503_v1 = vpop.eup %1502 }
 0x2bd   :  { %v726_v13 = vadd.f32 1.0, %v1503_v1 }
 0x2be   :  { %v1505_v14 = vpop.eup %1504 }
 0x2bf   :  { %v1507_v10 = vpop.eup %1506  ;;  %v620_v9 = vmul.f32 %v1505_v14, %v618_v4  ;;  %1508 = vrcp.f32 %v726_v13  ;;  %vm625_vm4 = vweird.f32 %v1505_v14  ;;  %vm732_vm13 = vweird.f32 %v726_v13 }
 0x2c0   :  { %v662_v16 = vmul.f32 %v1507_v10, %v660_v3  ;;  %1510 = vtanh.f32 %v697_v11  ;;  %vm667_vm5 = vweird.f32 %v1507_v10  ;;  %vm626_vm7 = vmor %vm624_vm6, %vm625_vm4  ;;  %v738_v3 = vand.u32 2147483648, %v726_v13 }
 0x2c1   :  { %v621_v17 = vsub.f32 1.0, %v620_v9  ;;  %vm668_vm10 = vmor %vm666_vm8, %vm667_vm5  ;;  %v673_v9 = vor.u32 1.1754944e-38, %v672_v6 }
 0x2c2   :  { %v663_v7 = vsub.f32 1.0, %v662_v16 }
 0x2c3   :  { %v622_v18 = vmul.f32 %v1505_v14, %v621_v17 }
 0x2c4   :  { %v664_v19 = vmul.f32 %v1507_v10, %v663_v7 }
 0x2c5   :  { %v1509_v44 = vpop.eup %1508  ;;  %v623_v1 = vadd.f32 %v1505_v14, %v622_v18 }
 0x2c6   :  { %v665_v15 = vadd.f32 %v1507_v10, %v664_v19  ;;  %v728_v51 = vmul.f32 %v1509_v44, %v726_v13  ;;  %v1511_v11 = vpop.eup %1510  ;;  %vm733_vm12 = vweird.f32 %v1509_v44  ;;  %v2812_v19 = vld [vmem:[#allocation18_spill] sm:$0xff] }
 0x2c7   :  { %v627_v57 = vsel %vm626_vm7, %v1505_v14, %v623_v1  ;;  %v736_v14 = vand.u32 2147483647, %v726_v13  ;;  %vm734_vm14 = vmor %vm732_vm13, %vm733_vm12  ;;  %v2811_v13 = vld [vmem:[#allocation32_spill] sm:$0xff] }
 0x2c8   :  { %v632_v16 = vsel %vm629_vm9, %v631_v2, %v627_v57  ;;  %v669_v17 = vsel %vm668_vm10, %v1507_v10, %v665_v15  ;;  %v729_v40 = vsub.f32 1.0, %v728_v51  ;;  %v739_v57 = vor.u32 1.1754944e-38, %v738_v3  ;;  %v2814_v1 = vld [vmem:[#allocation20_spill] sm:$0xff]  ;;  %v2816_v15 = vld [vmem:[#allocation21_spill] sm:$0xff]  ;;  %v2824_v3 = vld [vmem:[#allocation27_spill] sm:$0xff] }
 0x2c9   :  { %v634_v7 = vmul.f32 %v632_v16, %v2243_v12  ;;  %v674_v50 = vsel %vm671_vm11, %v673_v9, %v669_v17  ;;  %vm737_vm15 = vcmp.eq.f32.partialorder %v736_v14, 8.507059e+37  ;;  %v2806_v12 = vld [vmem:[#allocation14_spill] sm:$0xff]  ;;  %v2815_v2 = vld [vmem:[#allocation36_spill] sm:$0xff]  ;;  %v2819_v16 = vld [vmem:[#allocation37_spill] sm:$0xff] }
 0x2ca   :  { %v699_v56 = vmul.f32 %v1511_v11, %v674_v50  ;;  %v730_v4 = vmul.f32 %v1509_v44, %v729_v40  ;;  %v2808_v50 = vld [vmem:[#allocation15_spill] sm:$0xff]  ;;  %v2809_v40 = vld [vmem:[#allocation16_spill] sm:$0xff]  ;;  %v2817_v9 = vld [vmem:[#allocation22_spill] sm:$0xff] }
 0x2cb   :  { %v2818_v11 = vld [vmem:[#allocation23_spill] sm:$0xff]  ;;  %v2820_v17 = vld [vmem:[#allocation24_spill] sm:$0xff]  ;;  %v2825_v14 = vld [vmem:[#allocation29_spill] sm:$0xff] }
 0x2cc   :  { %v2439_v18 = vadd.f32 %v699_v56, %v634_v7  ;;  %v731_v8 = vadd.f32 %v1509_v44, %v730_v4  ;;  %v2807_v56 = vld [vmem:[#allocation28_spill] sm:$0xff]  ;;  %v2821_v7 = vld [vmem:[#allocation25_spill] sm:$0xff]  ;;  %v2822_v4 = vld [vmem:[#allocation26_spill] sm:$0xff] }
 0x2ce   :  { %1512 = vtanh.f32 %v2439_v18  ;;  %v735_v5 = vsel %vm734_vm14, %v1509_v44, %v731_v8  ;;  %v2810_v44 = vld [vmem:[#allocation17_spill] sm:$0xff]  ;;  %v2823_v8 = vld [vmem:[#allocation38_spill] sm:$0xff] }
 0x2cf   :  { %v740_v51 = vsel %vm737_vm15, %v739_v57, %v735_v5  ;;  %v2826_v5 = vld [vmem:[#allocation30_spill] sm:$0xff]  ;;  %v2827_v57 = vld [vmem:[#allocation39_spill] sm:$0xff] }
 0x2d4   :  { %v1513_v10 = vpop.eup %1512 }
 0x2d5   :  { %v743_v6 = vmul.f32 %v1513_v10, %v740_v51  ;;  %v2828_v10 = vld [vmem:[#allocation31_spill] sm:$0xff]  ;;  %v2829_v51 = vld [vmem:[#allocation33_spill] sm:$0xff] }
 0x2d7   :  { %762 = vmatmul.f32.vlgmr.msra.gmra.mxu0 %v743_v6  ;;  %804 = vmatmul.f32.vlgmr.msra.gmra.mxu1 %v743_v6 }
 0x2d8   :  { %845 = vmatmul.f32.vlgmr.msra.gmra.mxu2 %v743_v6  ;;  %870 = vmatmul.f32.vlgmr.msra.gmra.mxu3 %v743_v6  ;;  %v2830_v6 = vld [vmem:[#allocation34_spill] sm:$0xff] }
 0x2d9   :  { %1050 = vmatpush.msra.mxu0 %v2246_v58  ;;  %1092 = vmatpush.msra.mxu1 %v2249_v21 }
 0x2da   :  { %1133 = vmatpush.msra.mxu2 %v2252_v22  ;;  %1158 = vmatpush.msra.mxu3 %v2255_v23 }
 0x2db   :  { %1051 = vmatpush.msra.mxu0 %v2258_v24  ;;  %1093 = vmatpush.msra.mxu1 %v2261_v25 }
 0x2dc   :  { %1134 = vmatpush.msra.mxu2 %v2264_v26  ;;  %1159 = vmatpush.msra.mxu3 %v2267_v27 }
 0x2dd   :  { %1052 = vmatpush.msra.mxu0 %v2270_v28  ;;  %1094 = vmatpush.msra.mxu1 %v2273_v29 }
 0x2de   :  { %1135 = vmatpush.msra.mxu2 %v2276_v30  ;;  %1160 = vmatpush.msra.mxu3 %v2279_v31 }
 0x2df   :  { %1053 = vmatpush.msra.mxu0 %v2282_v32  ;;  %1095 = vmatpush.msra.mxu1 %v2285_v33 }
 0x2e0   :  { %1136 = vmatpush.msra.mxu2 %v2288_v35  ;;  %1161 = vmatpush.msra.mxu3 %v2291_v39 }
 0x2e1   :  { %1054 = vmatpush.msra.mxu0 %v2294_v43  ;;  %1096 = vmatpush.msra.mxu1 %v2297_v47 }
 0x2e2   :  { %1137 = vmatpush.msra.mxu2 %v2300_v60  ;;  %1162 = vmatpush.msra.mxu3 %v2303_v42 }
 0x2e3   :  { %1055 = vmatpush.msra.mxu0 %v2306_v34  ;;  %1097 = vmatpush.msra.mxu1 %v2309_v36 }
 0x2e4   :  { %1138 = vmatpush.msra.mxu2 %v2312_v37  ;;  %1163 = vmatpush.msra.mxu3 %v2315_v55 }
 0x2e5   :  { %1056 = vmatpush.msra.mxu0 %v2318_v49  ;;  %1098 = vmatpush.msra.mxu1 %v2321_v61 }
 0x2e6   :  { %1139 = vmatpush.msra.mxu2 %v2324_v38  ;;  %1164 = vmatpush.msra.mxu3 %v2327_v52 }
 0x2e7   :  { %1057 = vmatpush.msra.mxu0 %v2330_v48  ;;  %1099 = vmatpush.msra.mxu1 %v2333_v54 }
 0x2e8   :  { %1140 = vmatpush.msra.mxu2 %v2336_v59  ;;  %1165 = vmatpush.msra.mxu3 %v2339_v46 }
 0x2e9   :  { %1058 = vmatpush.msra.mxu0 %v2342_v45  ;;  %1100 = vmatpush.msra.mxu1 %v2345_v63 }
 0x2ea   :  { %1141 = vmatpush.msra.mxu2 %v2348_v0  ;;  %1166 = vmatpush.msra.mxu3 %v2351_v62 }
 0x2eb   :  { %1059 = vmatpush.msra.mxu0 %v2354_v53  ;;  %1101 = vmatpush.msra.mxu1 %v2357_v41 }
 0x2ec   :  { %1142 = vmatpush.msra.mxu2 %v2806_v12  ;;  %1167 = vmatpush.msra.mxu3 %v2807_v56 }
 0x2ed   :  { %1060 = vmatpush.msra.mxu0 %v2808_v50  ;;  %1102 = vmatpush.msra.mxu1 %v2809_v40 }
 0x2ee   :  { %1143 = vmatpush.msra.mxu2 %v2810_v44  ;;  %1168 = vmatpush.msra.mxu3 %v2811_v13 }
 0x2ef   :  { %1061 = vmatpush.msra.mxu0 %v2812_v19  ;;  %1103 = vmatpush.msra.mxu1 %v2813_v20 }
 0x2f0   :  { %1144 = vmatpush.msra.mxu2 %v2814_v1  ;;  %1169 = vmatpush.msra.mxu3 %v2815_v2 }
 0x2f1   :  { %1062 = vmatpush.msra.mxu0 %v2816_v15  ;;  %1104 = vmatpush.msra.mxu1 %v2817_v9 }
 0x2f2   :  { %1145 = vmatpush.msra.mxu2 %v2818_v11  ;;  %1170 = vmatpush.msra.mxu3 %v2819_v16 }
 0x2f3   :  { %1063 = vmatpush.msra.mxu0 %v2820_v17  ;;  %1105 = vmatpush.msra.mxu1 %v2821_v7  ;;  %v2831_v17 = vld [vmem:[#allocation40_spill] sm:$0xff]  ;;  %v745_v7 = vld [vmem:[#allocation4 + $0x88] sm:$0xff] }
 0x2f4   :  { %1146 = vmatpush.msra.mxu2 %v2822_v4  ;;  %1171 = vmatpush.msra.mxu3 %v2823_v8  ;;  %v787_v4 = vld [vmem:[#allocation4 + $0x80] sm:$0xff] }
 0x2f5   :  { %1064 = vmatpush.msra.mxu0 %v2824_v3  ;;  %1106 = vmatpush.msra.mxu1 %v2825_v14 }
 0x2f6   :  { %1147 = vmatpush.msra.mxu2 %v2826_v5  ;;  %1172 = vmatpush.msra.mxu3 %v2827_v57  ;;  %v853_v5 = vld [vmem:[#allocation4 + $0x98] sm:$0xff] }
 0x2f7   :  { %1065 = vmatpush.msra.mxu0 %v2828_v10  ;;  %1107 = vmatpush.msra.mxu1 %v2829_v51 }
 0x2f8   :  { %1148 = vmatpush.msra.mxu2 %v2830_v6  ;;  %1173 = vmatpush.msra.mxu3 %v2831_v17  ;;  %v828_v17 = vld [vmem:[#allocation4 + $0x90] sm:$0xff] }
 0x354   :  { %v763_v16 = vpop.f32.mrf.mxu0  ;;  %v805_v8 = vpop.f32.mrf.mxu1 }
 0x355   :  { %v766_v11 = vadd.f32 %v763_v16, %v745_v7  ;;  %v808_v3 = vadd.f32 %v805_v8, %v787_v4 }
 0x357   :  { %v1428_v9 = vmul.f32 -1.442695, %v766_v11  ;;  %v1429_v14 = vmul.f32 -1.442695, %v808_v3 }
 0x359   :  { %1514 = vpow2.f32 %v1428_v9 }
 0x35a   :  { %1516 = vpow2.f32 %v1429_v14 }
 0x35b   :  { %v871_v57 = vpop.f32.mrf.mxu3  ;;  %v846_v20 = vpop.f32.mrf.mxu2 }
 0x35c   :  { %v874_v15 = vadd.f32 %v871_v57, %v853_v5  ;;  %v849_v11 = vadd.f32 %v846_v20, %v828_v17 }
 0x35e   :  { %v1430_v10 = vmul.f32 -1.442695, %v874_v15 }
 0x35f   :  { %v1515_v2 = vpop.eup %1514 }
 0x360   :  { %v1517_v51 = vpop.eup %1516  ;;  %v770_v1 = vadd.f32 1.0, %v1515_v2  ;;  %1518 = vpow2.f32 %v1430_v10 }
 0x361   :  { %v812_v6 = vadd.f32 1.0, %v1517_v51 }
 0x362   :  { %1520 = vrcp.f32 %v770_v1  ;;  %v782_v14 = vand.u32 2147483648, %v770_v1  ;;  %v780_v2 = vand.u32 2147483647, %v770_v1  ;;  %vm776_vm2 = vweird.f32 %v770_v1 }
 0x363   :  { %1522 = vrcp.f32 %v812_v6  ;;  %v824_v57 = vand.u32 2147483648, %v812_v6  ;;  %v822_v51 = vand.u32 2147483647, %v812_v6  ;;  %vm818_vm4 = vweird.f32 %v812_v6 }
 0x364   :  { %v783_v20 = vor.u32 1.1754944e-38, %v782_v14  ;;  %vm781_vm5 = vcmp.eq.f32.partialorder %v780_v2, 8.507059e+37 }
 0x365   :  { %vm823_vm7 = vcmp.eq.f32.partialorder %v822_v51, 8.507059e+37 }
 0x366   :  { %v1519_v19 = vpop.eup %1518 }
 0x367   :  { %v878_v16 = vadd.f32 1.0, %v1519_v19 }
 0x368   :  { %v1521_v7 = vpop.eup %1520 }
 0x369   :  { %v1523_v4 = vpop.eup %1522  ;;  %v772_v9 = vmul.f32 %v1521_v7, %v770_v1  ;;  %1524 = vrcp.f32 %v878_v16  ;;  %vm777_vm0 = vweird.f32 %v1521_v7  ;;  %vm884_vm9 = vweird.f32 %v878_v16 }
 0x36a   :  { %v814_v8 = vmul.f32 %v1523_v4, %v812_v6  ;;  %1526 = vtanh.f32 %v849_v11  ;;  %vm819_vm1 = vweird.f32 %v1523_v4  ;;  %vm778_vm3 = vmor %vm776_vm2, %vm777_vm0  ;;  %v890_v6 = vand.u32 2147483648, %v878_v16 }
 0x36b   :  { %v773_v3 = vsub.f32 1.0, %v772_v9  ;;  %vm820_vm6 = vmor %vm818_vm4, %vm819_vm1  ;;  %v825_v9 = vor.u32 1.1754944e-38, %v824_v57 }
 0x36c   :  { %v815_v15 = vsub.f32 1.0, %v814_v8 }
 0x36d   :  { %v774_v5 = vmul.f32 %v1521_v7, %v773_v3 }
 0x36e   :  { %v816_v10 = vmul.f32 %v1523_v4, %v815_v15 }
 0x36f   :  { %v1525_v13 = vpop.eup %1524  ;;  %v775_v19 = vadd.f32 %v1521_v7, %v774_v5 }
 0x370   :  { %v817_v17 = vadd.f32 %v1523_v4, %v816_v10  ;;  %v880_v44 = vmul.f32 %v1525_v13, %v878_v16  ;;  %v1527_v11 = vpop.eup %1526  ;;  %vm885_vm8 = vweird.f32 %v1525_v13 }
 0x371   :  { %v779_v40 = vsel %vm778_vm3, %v1521_v7, %v775_v19  ;;  %v888_v7 = vand.u32 2147483647, %v878_v16  ;;  %vm886_vm10 = vmor %vm884_vm9, %vm885_vm8 }
 0x372   :  { %v784_v8 = vsel %vm781_vm5, %v783_v20, %v779_v40  ;;  %v821_v3 = vsel %vm820_vm6, %v1523_v4, %v817_v17  ;;  %v881_v50 = vsub.f32 1.0, %v880_v44  ;;  %v891_v40 = vor.u32 1.1754944e-38, %v890_v6 }
 0x373   :  { %v786_v15 = vmul.f32 %v784_v8, %v2439_v18  ;;  %v826_v56 = vsel %vm823_vm7, %v825_v9, %v821_v3  ;;  %vm889_vm11 = vcmp.eq.f32.partialorder %v888_v7, 8.507059e+37 }
 0x374   :  { %v851_v12 = vmul.f32 %v1527_v11, %v826_v56  ;;  %v882_v1 = vmul.f32 %v1525_v13, %v881_v50 }
 0x376   :  { %v2507_v5 = vadd.f32 %v851_v12, %v786_v15  ;;  %v883_v14 = vadd.f32 %v1525_v13, %v882_v1 }
 0x378   :  { %1528 = vtanh.f32 %v2507_v5  ;;  %v887_v2 = vsel %vm886_vm10, %v1525_v13, %v883_v14  ;;  %v980_v13 = vld [vmem:[#allocation4 + $0xb0] sm:$0xff] }
 0x379   :  { %v892_v44 = vsel %vm889_vm11, %v891_v40, %v887_v2 }
 0x37e   :  { %v1529_v4 = vpop.eup %1528 }
 0x37f   :  { %v895_v57 = vmul.f32 %v1529_v4, %v892_v44 }
 0x381   :  { %914 = vmatmul.f32.vlgmr.msrb.gmra.mxu0 %v895_v57  ;;  %956 = vmatmul.f32.vlgmr.msrb.gmra.mxu1 %v895_v57 }
 0x382   :  { %997 = vmatmul.f32.vlgmr.msrb.gmra.mxu2 %v895_v57  ;;  %1022 = vmatmul.f32.vlgmr.msrb.gmra.mxu3 %v895_v57 }
 0x383   :  { %1202 = vmatpush.msrb.mxu0 %v2246_v58  ;;  %1244 = vmatpush.msrb.mxu1 %v2249_v21  ;;  %v2832_v58 = vld [vmem:[#allocation14_spill] sm:$0xff]  ;;  %v2833_v21 = vld [vmem:[#allocation28_spill] sm:$0xff] }
 0x384   :  { %1285 = vmatpush.msrb.mxu2 %v2252_v22  ;;  %1310 = vmatpush.msrb.mxu3 %v2255_v23  ;;  %v2834_v22 = vld [vmem:[#allocation15_spill] sm:$0xff]  ;;  %v2835_v23 = vld [vmem:[#allocation16_spill] sm:$0xff] }
 0x385   :  { %1203 = vmatpush.msrb.mxu0 %v2258_v24  ;;  %1245 = vmatpush.msrb.mxu1 %v2261_v25  ;;  %v2836_v24 = vld [vmem:[#allocation17_spill] sm:$0xff]  ;;  %v2837_v25 = vld [vmem:[#allocation32_spill] sm:$0xff] }
 0x386   :  { %1286 = vmatpush.msrb.mxu2 %v2264_v26  ;;  %1311 = vmatpush.msrb.mxu3 %v2267_v27  ;;  %v2838_v26 = vld [vmem:[#allocation18_spill] sm:$0xff]  ;;  %v2839_v27 = vld [vmem:[#allocation19_spill] sm:$0xff] }
 0x387   :  { %1204 = vmatpush.msrb.mxu0 %v2270_v28  ;;  %1246 = vmatpush.msrb.mxu1 %v2273_v29  ;;  %v2840_v28 = vld [vmem:[#allocation20_spill] sm:$0xff] }
 0x388   :  { %1287 = vmatpush.msrb.mxu2 %v2276_v30  ;;  %1312 = vmatpush.msrb.mxu3 %v2279_v31  ;;  %v2841_v29 = vld [vmem:[#allocation36_spill] sm:$0xff]  ;;  %v2842_v30 = vld [vmem:[#allocation21_spill] sm:$0xff]  ;;  %v2843_v31 = vld [vmem:[#allocation22_spill] sm:$0xff] }
 0x389   :  { %1205 = vmatpush.msrb.mxu0 %v2282_v32  ;;  %1247 = vmatpush.msrb.mxu1 %v2285_v33  ;;  %v2844_v32 = vld [vmem:[#allocation23_spill] sm:$0xff]  ;;  %v2845_v33 = vld [vmem:[#allocation37_spill] sm:$0xff] }
 0x38a   :  { %1288 = vmatpush.msrb.mxu2 %v2288_v35  ;;  %1313 = vmatpush.msrb.mxu3 %v2291_v39  ;;  %v2846_v35 = vld [vmem:[#allocation24_spill] sm:$0xff]  ;;  %v2847_v39 = vld [vmem:[#allocation25_spill] sm:$0xff] }
 0x38b   :  { %1206 = vmatpush.msrb.mxu0 %v2294_v43  ;;  %1248 = vmatpush.msrb.mxu1 %v2297_v47  ;;  %v2848_v43 = vld [vmem:[#allocation26_spill] sm:$0xff] }
 0x38c   :  { %1289 = vmatpush.msrb.mxu2 %v2300_v60  ;;  %1314 = vmatpush.msrb.mxu3 %v2303_v42  ;;  %v2849_v47 = vld [vmem:[#allocation38_spill] sm:$0xff]  ;;  %v2850_v60 = vld [vmem:[#allocation27_spill] sm:$0xff]  ;;  %v2851_v42 = vld [vmem:[#allocation29_spill] sm:$0xff] }
 0x38d   :  { %1207 = vmatpush.msrb.mxu0 %v2306_v34  ;;  %1249 = vmatpush.msrb.mxu1 %v2309_v36  ;;  %v2852_v34 = vld [vmem:[#allocation30_spill] sm:$0xff]  ;;  %v2853_v36 = vld [vmem:[#allocation39_spill] sm:$0xff] }
 0x38e   :  { %1290 = vmatpush.msrb.mxu2 %v2312_v37  ;;  %1315 = vmatpush.msrb.mxu3 %v2315_v55  ;;  %v2854_v37 = vld [vmem:[#allocation31_spill] sm:$0xff]  ;;  %v2855_v55 = vld [vmem:[#allocation33_spill] sm:$0xff] }
 0x38f   :  { %1208 = vmatpush.msrb.mxu0 %v2318_v49  ;;  %1250 = vmatpush.msrb.mxu1 %v2321_v61  ;;  %v2856_v49 = vld [vmem:[#allocation34_spill] sm:$0xff]  ;;  %v2857_v61 = vld [vmem:[#allocation40_spill] sm:$0xff] }
 0x390   :  { %1291 = vmatpush.msrb.mxu2 %v2324_v38  ;;  %1316 = vmatpush.msrb.mxu3 %v2327_v52  ;;  %v897_v38 = vld [vmem:[#allocation4 + $0xa8] sm:$0xff]  ;;  %v939_v52 = vld [vmem:[#allocation4 + $0xa0] sm:$0xff] }
 0x391   :  { %1209 = vmatpush.msrb.mxu0 %v2330_v48  ;;  %1251 = vmatpush.msrb.mxu1 %v2333_v54 }
 0x392   :  { %1292 = vmatpush.msrb.mxu2 %v2336_v59  ;;  %1317 = vmatpush.msrb.mxu3 %v2339_v46 }
 0x393   :  { %1210 = vmatpush.msrb.mxu0 %v2342_v45  ;;  %1252 = vmatpush.msrb.mxu1 %v2345_v63 }
 0x394   :  { %1293 = vmatpush.msrb.mxu2 %v2348_v0  ;;  %1318 = vmatpush.msrb.mxu3 %v2351_v62  ;;  %v1005_v0 = vld [vmem:[#allocation4 + $0xb8] sm:$0xff] }
 0x395   :  { %1211 = vmatpush.msrb.mxu0 %v2354_v53  ;;  %1253 = vmatpush.msrb.mxu1 %v2357_v41 }
 0x396   :  { %1294 = vmatpush.msrb.mxu2 %v2832_v58  ;;  %1319 = vmatpush.msrb.mxu3 %v2833_v21 }
 0x397   :  { %1212 = vmatpush.msrb.mxu0 %v2834_v22  ;;  %1254 = vmatpush.msrb.mxu1 %v2835_v23 }
 0x398   :  { %1295 = vmatpush.msrb.mxu2 %v2836_v24  ;;  %1320 = vmatpush.msrb.mxu3 %v2837_v25 }
 0x399   :  { %1213 = vmatpush.msrb.mxu0 %v2838_v26  ;;  %1255 = vmatpush.msrb.mxu1 %v2839_v27 }
 0x39a   :  { %1296 = vmatpush.msrb.mxu2 %v2840_v28  ;;  %1321 = vmatpush.msrb.mxu3 %v2841_v29 }
 0x39b   :  { %1214 = vmatpush.msrb.mxu0 %v2842_v30  ;;  %1256 = vmatpush.msrb.mxu1 %v2843_v31 }
 0x39c   :  { %1297 = vmatpush.msrb.mxu2 %v2844_v32  ;;  %1322 = vmatpush.msrb.mxu3 %v2845_v33 }
 0x39d   :  { %1215 = vmatpush.msrb.mxu0 %v2846_v35  ;;  %1257 = vmatpush.msrb.mxu1 %v2847_v39 }
 0x39e   :  { %1298 = vmatpush.msrb.mxu2 %v2848_v43  ;;  %1323 = vmatpush.msrb.mxu3 %v2849_v47 }
 0x39f   :  { %1216 = vmatpush.msrb.mxu0 %v2850_v60  ;;  %1258 = vmatpush.msrb.mxu1 %v2851_v42 }
 0x3a0   :  { %1299 = vmatpush.msrb.mxu2 %v2852_v34  ;;  %1324 = vmatpush.msrb.mxu3 %v2853_v36  ;;  %v1091_v34 = vld [vmem:[#allocation4 + $0xc0] sm:$0xff] }
 0x3a1   :  { %1217 = vmatpush.msrb.mxu0 %v2854_v37  ;;  %1259 = vmatpush.msrb.mxu1 %v2855_v55 }
 0x3a2   :  { %1300 = vmatpush.msrb.mxu2 %v2856_v49  ;;  %1325 = vmatpush.msrb.mxu3 %v2857_v61 }
 0x3fe   :  { %v915_v48 = vpop.f32.mrf.mxu0  ;;  %v957_v54 = vpop.f32.mrf.mxu1 }
 0x3ff   :  { %v918_v59 = vadd.f32 %v915_v48, %v897_v38  ;;  %v960_v46 = vadd.f32 %v957_v54, %v939_v52  ;;  %v1157_v52 = vld [vmem:[#allocation4 + $0xd8] sm:$0xff] }
 0x401   :  { %v1431_v45 = vmul.f32 -1.442695, %v918_v59  ;;  %v1432_v63 = vmul.f32 -1.442695, %v960_v46 }
 0x403   :  { %1530 = vpow2.f32 %v1431_v45 }
 0x404   :  { %1532 = vpow2.f32 %v1432_v63 }
 0x405   :  { %v1023_v62 = vpop.f32.mrf.mxu3  ;;  %v998_v16 = vpop.f32.mrf.mxu2 }
 0x406   :  { %v1026_v53 = vadd.f32 %v1023_v62, %v1005_v0  ;;  %v1001_v20 = vadd.f32 %v998_v16, %v980_v13  ;;  %v1132_v62 = vld [vmem:[#allocation4 + $0xd0] sm:$0xff] }
 0x408   :  { %v1433_v41 = vmul.f32 -1.442695, %v1026_v53 }
 0x409   :  { %v1531_v18 = vpop.eup %1530 }
 0x40a   :  { %v1533_v12 = vpop.eup %1532  ;;  %v922_v56 = vadd.f32 1.0, %v1531_v18  ;;  %1534 = vpow2.f32 %v1433_v41 }
 0x40b   :  { %v964_v50 = vadd.f32 1.0, %v1533_v12 }
 0x40c   :  { %1536 = vrcp.f32 %v922_v56  ;;  %v934_v3 = vand.u32 2147483648, %v922_v56  ;;  %v932_v14 = vand.u32 2147483647, %v922_v56  ;;  %vm928_vm14 = vweird.f32 %v922_v56 }
 0x40d   :  { %1538 = vrcp.f32 %v964_v50  ;;  %v976_v6 = vand.u32 2147483648, %v964_v50  ;;  %v974_v2 = vand.u32 2147483647, %v964_v50  ;;  %vm970_vm0 = vweird.f32 %v964_v50 }
 0x40e   :  { %v935_v44 = vor.u32 1.1754944e-38, %v934_v3  ;;  %vm933_vm1 = vcmp.eq.f32.partialorder %v932_v14, 8.507059e+37 }
 0x40f   :  { %v977_v22 = vor.u32 1.1754944e-38, %v976_v6  ;;  %vm975_vm3 = vcmp.eq.f32.partialorder %v974_v2, 8.507059e+37 }
 0x410   :  { %v1535_v10 = vpop.eup %1534 }
 0x411   :  { %v1030_v51 = vadd.f32 1.0, %v1535_v10 }
 0x412   :  { %v1537_v19 = vpop.eup %1536 }
 0x413   :  { %v1539_v17 = vpop.eup %1538  ;;  %v924_v9 = vmul.f32 %v1537_v19, %v922_v56  ;;  %1540 = vrcp.f32 %v1030_v51  ;;  %vm929_vm12 = vweird.f32 %v1537_v19  ;;  %v1042_v33 = vand.u32 2147483648, %v1030_v51 }
 0x414   :  { %v966_v11 = vmul.f32 %v1539_v17, %v964_v50  ;;  %1542 = vtanh.f32 %v1001_v20  ;;  %vm971_vm13 = vweird.f32 %v1539_v17  ;;  %vm930_vm15 = vmor %vm928_vm14, %vm929_vm12  ;;  %vm1036_vm5 = vweird.f32 %v1030_v51 }
 0x415   :  { %v925_v8 = vsub.f32 1.0, %v924_v9  ;;  %vm972_vm2 = vmor %vm970_vm0, %vm971_vm13  ;;  %v1040_v35 = vand.u32 2147483647, %v1030_v51  ;;  %v1043_v43 = vor.u32 1.1754944e-38, %v1042_v33 }
 0x416   :  { %v967_v15 = vsub.f32 1.0, %v966_v11 }
 0x417   :  { %v926_v1 = vmul.f32 %v1537_v19, %v925_v8  ;;  %vm1041_vm7 = vcmp.eq.f32.partialorder %v1040_v35, 8.507059e+37  ;;  %v1371_v35 = vld [vmem:[#allocation9 + $0x70] sm:$0xff] }
 0x418   :  { %v968_v7 = vmul.f32 %v1539_v17, %v967_v15 }
 0x419   :  { %v1541_v40 = vpop.eup %1540  ;;  %v927_v4 = vadd.f32 %v1537_v19, %v926_v1 }
 0x41a   :  { %v969_v57 = vadd.f32 %v1539_v17, %v968_v7  ;;  %v1032_v58 = vmul.f32 %v1541_v40, %v1030_v51  ;;  %v1543_v23 = vpop.eup %1542  ;;  %vm1037_vm4 = vweird.f32 %v1541_v40 }
 0x41b   :  { %v931_v21 = vsel %vm930_vm15, %v1537_v19, %v927_v4  ;;  %vm1038_vm6 = vmor %vm1036_vm5, %vm1037_vm4 }
 0x41c   :  { %v936_v24 = vsel %vm933_vm1, %v935_v44, %v931_v21  ;;  %v973_v25 = vsel %vm972_vm2, %v1539_v17, %v969_v57  ;;  %v1033_v26 = vsub.f32 1.0, %v1032_v58 }
 0x41d   :  { %v938_v27 = vmul.f32 %v936_v24, %v2507_v5  ;;  %v978_v28 = vsel %vm975_vm3, %v977_v22, %v973_v25  ;;  %v1049_v5 = vld [vmem:[#allocation4 + $0xc8] sm:$0xff] }
 0x41e   :  { %v1003_v29 = vmul.f32 %v1543_v23, %v978_v28  ;;  %v1034_v30 = vmul.f32 %v1541_v40, %v1033_v26 }
 0x420   :  { %v2575_v31 = vadd.f32 %v1003_v29, %v938_v27  ;;  %v1035_v32 = vadd.f32 %v1541_v40, %v1034_v30 }
 0x422   :  { %1544 = vtanh.f32 %v2575_v31  ;;  %v1039_v39 = vsel %vm1038_vm6, %v1541_v40, %v1035_v32 }
 0x423   :  { %v1044_v60 = vsel %vm1041_vm7, %v1043_v43, %v1039_v39  ;;  %v1370_v39 = vld [vmem:[#allocation9 + $0x68] sm:$0xff]  ;;  %v1369_v43 = vld [vmem:[#allocation9 + $0x60] sm:$0xff] }
 0x428   :  { %v1545_v47 = vpop.eup %1544 }
 0x429   :  { %v1047_v42 = vmul.f32 %v1545_v47, %v1044_v60  ;;  %v1368_v47 = vld [vmem:[#allocation9 + $0x58] sm:$0xff]  ;;  %v1367_v60 = vld [vmem:[#allocation9 + $0x50] sm:$0xff] }
 0x42b   :  { %1066 = vmatmul.f32.vlgmr.msra.gmra.mxu0 %v1047_v42  ;;  %1108 = vmatmul.f32.vlgmr.msra.gmra.mxu1 %v1047_v42 }
 0x42c   :  { %1149 = vmatmul.f32.vlgmr.msra.gmra.mxu2 %v1047_v42  ;;  %1174 = vmatmul.f32.vlgmr.msra.gmra.mxu3 %v1047_v42  ;;  %v1366_v42 = vld [vmem:[#allocation9 + $0x48] sm:$0xff] }
 0x4a8   :  { %v1067_v36 = vpop.f32.mrf.mxu0  ;;  %v1109_v37 = vpop.f32.mrf.mxu1 }
 0x4a9   :  { %v1070_v55 = vadd.f32 %v1067_v36, %v1049_v5  ;;  %v1112_v49 = vadd.f32 %v1109_v37, %v1091_v34  ;;  %v1365_v5 = vld [vmem:[#allocation9 + $0x40] sm:$0xff]  ;;  %v1364_v34 = vld [vmem:[#allocation9 + $0x38] sm:$0xff]  ;;  %v1201_v36 = vld [vmem:[#allocation4 + $0xe8] sm:$0xff] }
 0x4aa   :  { %v1243_v37 = vld [vmem:[#allocation4 + $0xe0] sm:$0xff] }
 0x4ab   :  { %v1434_v61 = vmul.f32 -1.442695, %v1070_v55  ;;  %v1435_v38 = vmul.f32 -1.442695, %v1112_v49  ;;  %v1363_v55 = vld [vmem:[#allocation9 + $0x30] sm:$0xff] }
 0x4ad   :  { %1546 = vpow2.f32 %v1434_v61 }
 0x4ae   :  { %1548 = vpow2.f32 %v1435_v38 }
 0x4af   :  { %v1175_v48 = vpop.f32.mrf.mxu3  ;;  %v1150_v53 = vpop.f32.mrf.mxu2 }
 0x4b0   :  { %v1178_v54 = vadd.f32 %v1175_v48, %v1157_v52  ;;  %v1153_v56 = vadd.f32 %v1150_v53, %v1132_v62  ;;  %v1362_v48 = vld [vmem:[#allocation9 + $0x28] sm:$0xff] }
 0x4b1   :  { %v1358_v53 = vld [vmem:[#allocation9 + $0x8] sm:$0xff] }
 0x4b2   :  { %v1436_v59 = vmul.f32 -1.442695, %v1178_v54 }
 0x4b3   :  { %v1547_v46 = vpop.eup %1546 }
 0x4b4   :  { %v1549_v45 = vpop.eup %1548  ;;  %v1074_v63 = vadd.f32 1.0, %v1547_v46  ;;  %1550 = vpow2.f32 %v1436_v59  ;;  %v1361_v46 = vld [vmem:[#allocation9 + $0x20] sm:$0xff] }
 0x4b5   :  { %v1116_v0 = vadd.f32 1.0, %v1549_v45  ;;  %v1360_v45 = vld [vmem:[#allocation9 + $0x18] sm:$0xff] }
 0x4b6   :  { %1552 = vrcp.f32 %v1074_v63  ;;  %v1086_v51 = vand.u32 2147483648, %v1074_v63  ;;  %v1084_v17 = vand.u32 2147483647, %v1074_v63  ;;  %vm1080_vm10 = vweird.f32 %v1074_v63 }
 0x4b7   :  { %1554 = vrcp.f32 %v1116_v0  ;;  %v1128_v9 = vand.u32 2147483648, %v1116_v0  ;;  %v1126_v8 = vand.u32 2147483647, %v1116_v0  ;;  %vm1122_vm12 = vweird.f32 %v1116_v0 }
 0x4b8   :  { %v1087_v1 = vor.u32 1.1754944e-38, %v1086_v51  ;;  %vm1085_vm13 = vcmp.eq.f32.partialorder %v1084_v17, 8.507059e+37 }
 0x4b9   :  { %v1129_v2 = vor.u32 1.1754944e-38, %v1128_v9  ;;  %vm1127_vm15 = vcmp.eq.f32.partialorder %v1126_v8, 8.507059e+37 }
 0x4ba   :  { %v1551_v41 = vpop.eup %1550 }
 0x4bb   :  { %v1182_v18 = vadd.f32 1.0, %v1551_v41 }
 0x4bc   :  { %v1553_v12 = vpop.eup %1552 }
 0x4bd   :  { %v1555_v50 = vpop.eup %1554  ;;  %v1076_v13 = vmul.f32 %v1553_v12, %v1074_v63  ;;  %1556 = vrcp.f32 %v1182_v18  ;;  %vm1081_vm8 = vweird.f32 %v1553_v12  ;;  %v1194_v26 = vand.u32 2147483648, %v1182_v18  ;;  %v1309_v63 = vld [vmem:[#allocation4 + $0xf8] sm:$0xff] }
 0x4be   :  { %v1118_v16 = vmul.f32 %v1555_v50, %v1116_v0  ;;  %1558 = vtanh.f32 %v1153_v56  ;;  %vm1123_vm9 = vweird.f32 %v1555_v50  ;;  %vm1082_vm11 = vmor %vm1080_vm10, %vm1081_vm8  ;;  %vm1188_vm1 = vweird.f32 %v1182_v18  ;;  %v1359_v0 = vld [vmem:[#allocation9 + $0x10] sm:$0xff] }
 0x4bf   :  { %v1077_v10 = vsub.f32 1.0, %v1076_v13  ;;  %vm1124_vm14 = vmor %vm1122_vm12, %vm1123_vm9  ;;  %v1192_v27 = vand.u32 2147483647, %v1182_v18  ;;  %v1195_v29 = vor.u32 1.1754944e-38, %v1194_v26 }
 0x4c0   :  { %v1119_v19 = vsub.f32 1.0, %v1118_v16 }
 0x4c1   :  { %v1078_v20 = vmul.f32 %v1553_v12, %v1077_v10  ;;  %vm1193_vm3 = vcmp.eq.f32.partialorder %v1192_v27, 8.507059e+37  ;;  %v1284_v10 = vld [vmem:[#allocation4 + $0xf0] sm:$0xff] }
 0x4c2   :  { %v1120_v11 = vmul.f32 %v1555_v50, %v1119_v19 }
 0x4c3   :  { %v1557_v3 = vpop.eup %1556  ;;  %v1079_v15 = vadd.f32 %v1553_v12, %v1078_v20 }
 0x4c4   :  { %v1121_v14 = vadd.f32 %v1555_v50, %v1120_v11  ;;  %v1184_v6 = vmul.f32 %v1557_v3, %v1182_v18  ;;  %v1559_v40 = vpop.eup %1558  ;;  %vm1189_vm0 = vweird.f32 %v1557_v3  ;;  %v1357_v18 = vld [vmem:[#allocation9] sm:$0xff] }
 0x4c5   :  { %v1083_v7 = vsel %vm1082_vm11, %v1553_v12, %v1079_v15  ;;  %vm1190_vm2 = vmor %vm1188_vm1, %vm1189_vm0 }
 0x4c6   :  { %v1088_v4 = vsel %vm1085_vm13, %v1087_v1, %v1083_v7  ;;  %v1125_v44 = vsel %vm1124_vm14, %v1555_v50, %v1121_v14  ;;  %v1185_v57 = vsub.f32 1.0, %v1184_v6 }
 0x4c7   :  { %v1090_v58 = vmul.f32 %v1088_v4, %v2575_v31  ;;  %v1130_v21 = vsel %vm1127_vm15, %v1129_v2, %v1125_v44  ;;  %v1372_v31 = vld [vmem:[#allocation9 + $0x78] sm:$0xff] }
 0x4c8   :  { %v1155_v22 = vmul.f32 %v1559_v40, %v1130_v21  ;;  %v1186_v23 = vmul.f32 %v1557_v3, %v1185_v57  ;;  %1377 = vmatpush.msra.mxu0 %v1372_v31 }
 0x4ca   :  { %v2579_v24 = vadd.f32 %v1155_v22, %v1090_v58  ;;  %v1187_v25 = vadd.f32 %v1557_v3, %v1186_v23  ;;  %1378 = vmatpush.msra.mxu0 %v1371_v35 }
 0x4cc   :  { %1560 = vtanh.f32 %v2579_v24  ;;  %v1191_v28 = vsel %vm1190_vm2, %v1557_v3, %v1187_v25  ;;  %1379 = vmatpush.msra.mxu0 %v1370_v39 }
 0x4cd   :  { %v1196_v32 = vsel %vm1193_vm3, %v1195_v29, %v1191_v28 }
 0x4ce   :  { %1380 = vmatpush.msra.mxu0 %v1369_v43 }
 0x4d0   :  { %1381 = vmatpush.msra.mxu0 %v1368_v47 }
 0x4d2   :  { %v1561_v30 = vpop.eup %1560  ;;  %1382 = vmatpush.msra.mxu0 %v1367_v60 }
 0x4d3   :  { %v1199_v33 = vmul.f32 %v1561_v30, %v1196_v32 }
 0x4d4   :  { %1383 = vmatpush.msra.mxu0 %v1366_v42 }
 0x4d5   :  { %1218 = vmatmul.f32.vlgmr.msrb.gmra.mxu0 %v1199_v33  ;;  %1260 = vmatmul.f32.vlgmr.msrb.gmra.mxu1 %v1199_v33 }
 0x4d6   :  { %1301 = vmatmul.f32.vlgmr.msrb.gmra.mxu2 %v1199_v33  ;;  %1326 = vmatmul.f32.vlgmr.msrb.gmra.mxu3 %v1199_v33 }
 0x4d7   :  { %1384 = vmatpush.msra.mxu0 %v1365_v5 }
 0x4d9   :  { %1385 = vmatpush.msra.mxu0 %v1364_v34 }
 0x4db   :  { %1386 = vmatpush.msra.mxu0 %v1363_v55 }
 0x4dd   :  { %1387 = vmatpush.msra.mxu0 %v1362_v48 }
 0x4df   :  { %1388 = vmatpush.msra.mxu0 %v1361_v46 }
 0x4e1   :  { %1389 = vmatpush.msra.mxu0 %v1360_v45 }
 0x4e3   :  { %1390 = vmatpush.msra.mxu0 %v1359_v0 }
 0x4e5   :  { %1391 = vmatpush.msra.mxu0 %v1358_v53 }
 0x4e7   :  { %1392 = vmatpush.msra.mxu0 %v1357_v18 }
 0x552   :  { %v1219_v49 = vpop.f32.mrf.mxu0  ;;  %v1261_v61 = vpop.f32.mrf.mxu1 }
 0x553   :  { %v1222_v38 = vadd.f32 %v1219_v49, %v1201_v36  ;;  %v1264_v52 = vadd.f32 %v1261_v61, %v1243_v37 }
 0x555   :  { %v1437_v54 = vmul.f32 -1.442695, %v1222_v38  ;;  %v1438_v59 = vmul.f32 -1.442695, %v1264_v52 }
 0x557   :  { %1562 = vpow2.f32 %v1437_v54 }
 0x558   :  { %1564 = vpow2.f32 %v1438_v59 }
 0x559   :  { %v1327_v62 = vpop.f32.mrf.mxu3  ;;  %v1302_v51 = vpop.f32.mrf.mxu2 }
 0x55a   :  { %v1330_v41 = vadd.f32 %v1327_v62, %v1309_v63  ;;  %v1305_v9 = vadd.f32 %v1302_v51, %v1284_v10 }
 0x55c   :  { %v1439_v12 = vmul.f32 -1.442695, %v1330_v41 }
 0x55d   :  { %v1563_v56 = vpop.eup %1562 }
 0x55e   :  { %v1565_v50 = vpop.eup %1564  ;;  %v1226_v13 = vadd.f32 1.0, %v1563_v56  ;;  %1566 = vpow2.f32 %v1439_v12 }
 0x55f   :  { %v1268_v16 = vadd.f32 1.0, %v1565_v50 }
 0x560   :  { %1568 = vrcp.f32 %v1226_v13  ;;  %v1238_v1 = vand.u32 2147483648, %v1226_v13  ;;  %v1236_v7 = vand.u32 2147483647, %v1226_v13  ;;  %vm1232_vm6 = vweird.f32 %v1226_v13 }
 0x561   :  { %1570 = vrcp.f32 %v1268_v16  ;;  %v1280_v2 = vand.u32 2147483648, %v1268_v16  ;;  %v1278_v4 = vand.u32 2147483647, %v1268_v16  ;;  %vm1274_vm8 = vweird.f32 %v1268_v16 }
 0x562   :  { %v1239_v58 = vor.u32 1.1754944e-38, %v1238_v1  ;;  %vm1237_vm9 = vcmp.eq.f32.partialorder %v1236_v7, 8.507059e+37 }
 0x563   :  { %v1281_v25 = vor.u32 1.1754944e-38, %v1280_v2  ;;  %vm1279_vm11 = vcmp.eq.f32.partialorder %v1278_v4, 8.507059e+37 }
 0x564   :  { %v1567_v19 = vpop.eup %1566 }
 0x565   :  { %v1334_v20 = vadd.f32 1.0, %v1567_v19 }
 0x566   :  { %v1569_v17 = vpop.eup %1568 }
 0x567   :  { %v1571_v11 = vpop.eup %1570  ;;  %v1228_v8 = vmul.f32 %v1569_v17, %v1226_v13  ;;  %1572 = vrcp.f32 %v1334_v20  ;;  %vm1233_vm4 = vweird.f32 %v1569_v17  ;;  %v1346_v43 = vand.u32 2147483648, %v1334_v20 }
 0x568   :  { %v1270_v3 = vmul.f32 %v1571_v11, %v1268_v16  ;;  %1574 = vtanh.f32 %v1305_v9  ;;  %vm1275_vm5 = vweird.f32 %v1571_v11  ;;  %vm1234_vm7 = vmor %vm1232_vm6, %vm1233_vm4  ;;  %vm1340_vm13 = vweird.f32 %v1334_v20 }
 0x569   :  { %v1229_v15 = vsub.f32 1.0, %v1228_v8  ;;  %vm1276_vm10 = vmor %vm1274_vm8, %vm1275_vm5  ;;  %v1344_v47 = vand.u32 2147483647, %v1334_v20  ;;  %v1347_v42 = vor.u32 1.1754944e-38, %v1346_v43 }
 0x56a   :  { %v1271_v14 = vsub.f32 1.0, %v1270_v3 }
 0x56b   :  { %v1230_v6 = vmul.f32 %v1569_v17, %v1229_v15  ;;  %vm1345_vm15 = vcmp.eq.f32.partialorder %v1344_v47, 8.507059e+37 }
 0x56c   :  { %v1272_v40 = vmul.f32 %v1571_v11, %v1271_v14 }
 0x56d   :  { %v1573_v44 = vpop.eup %1572  ;;  %v1231_v57 = vadd.f32 %v1569_v17, %v1230_v6 }
 0x56e   :  { %v1273_v21 = vadd.f32 %v1571_v11, %v1272_v40  ;;  %v1336_v22 = vmul.f32 %v1573_v44, %v1334_v20  ;;  %v1575_v26 = vpop.eup %1574  ;;  %vm1341_vm12 = vweird.f32 %v1573_v44 }
 0x56f   :  { %v1235_v23 = vsel %vm1234_vm7, %v1569_v17, %v1231_v57  ;;  %vm1342_vm14 = vmor %vm1340_vm13, %vm1341_vm12 }
 0x570   :  { %v1240_v27 = vsel %vm1237_vm9, %v1239_v58, %v1235_v23  ;;  %v1277_v28 = vsel %vm1276_vm10, %v1571_v11, %v1273_v21  ;;  %v1337_v29 = vsub.f32 1.0, %v1336_v22 }
 0x571   :  { %v1242_v30 = vmul.f32 %v1240_v27, %v2579_v24  ;;  %v1282_v32 = vsel %vm1279_vm11, %v1281_v25, %v1277_v28  ;;  %v1449_v24 = vld [vmem:[%s2592_s3] ss:$0 sm:$0xff] }
 0x572   :  { %v1307_v33 = vmul.f32 %v1575_v26, %v1282_v32  ;;  %v1338_v31 = vmul.f32 %v1573_v44, %v1337_v29 }
 0x574   :  { %v1308_v35 = vadd.f32 %v1307_v33, %v1242_v30  ;;  %v1339_v39 = vadd.f32 %v1573_v44, %v1338_v31 }
 0x576   :  { %1576 = vtanh.f32 %v1308_v35  ;;  %v1343_v60 = vsel %vm1342_vm14, %v1573_v44, %v1339_v39 }
 0x577   :  { %v1348_v34 = vsel %vm1345_vm15, %v1347_v42, %v1343_v60 }
 0x57c   :  { %v1577_v5 = vpop.eup %1576 }
 0x57d   :  { %v1351_v36 = vmul.f32 %v1577_v5, %v1348_v34 }
 0x57f   :  { %1393 = vmatmul.f32.vlgmr.msra.gmra.mxu0 %v1351_v36 }
 0x5fc   :  { %v1394_v37 = vpop.f32.mrf.mxu0 }
 0x5fd   :  { %v1395_v55 = vadd.f32 %v1449_v24, %v1394_v37 }
 0x5ff   :  { %1397 = vst [vmem:[#allocation10] sm:$0xff] %v1395_v55 }
 0x600   :  { %1408 = dma.vmem_to_hbm [thread:$0]  %s1404_s8, 128, %s1406_s11, [#allocation6]  }
 0x601   :  { %1742 = dma.done.wait [#allocation6], 128  }
 0x602   :  { %1743 = vsyncadd [#allocation6], 4294967168 }
 0x603   :  { %1413 = vsyncpa [#allocation5], 1 }
 0x604   :  { %1414 = vsyncpa [#allocation8], 1 }
 0x605   :  { %1415 = vsyncpa [#allocation6], 1 }

</bundles_post_ra>
